<compile_context>
chip_gen: v6e
topology: v6e:2x2x1
jax: 0.10.0
libtpu: 0.0.40
codegen_flags: <defaults>
</compile_context>

<pallas_src>
import functools

import jax
import jax.numpy as jnp
from jax import lax
from jax.experimental import pallas as pl
from jax.experimental.pallas import tpu as pltpu


_ALIGN = 16  # bf16 sublane packing: widths that are multiples of 16 keep reshapes free


def _round_up(v, m):
    return -(-v // m) * m


# ------------------------- Pallas kernels -------------------------

def _build_patch(x_ref, patch_ref, row0, taps, tr, wo_p):
    """Stage the 9 conv taps into a (tr*wo_p, 9*cin) bf16 patch slab (in-VMEM im2col)."""
    cin = x_ref.shape[-1]
    for t, (p, dy, dx) in enumerate(taps):
        xs = x_ref[p, pl.ds(row0 + dy, tr), pl.ds(dx, wo_p), :]      # (tr, wo_p, cin)
        patch_ref[:, t * cin:(t + 1) * cin] = xs.reshape(tr * wo_p, cin)


def _finish(acc, o_ref, tr, wo, wo_p):
    """ReLU, zero out the alignment-padded columns, cast, store."""
    cout = o_ref.shape[-1]
    res = jnp.maximum(acc, 0.0).reshape(tr, wo_p, cout)
    if wo_p > wo:
        col = lax.broadcasted_iota(jnp.int32, (tr, wo_p, cout), 1)
        res = jnp.where(col < wo, res, 0.0)
    o_ref[0] = res.astype(o_ref.dtype)


def _conv_relu_kernel(x_ref, w_ref, o_ref, patch_ref, *, taps, tr, wo, wo_p):
    # conv3x3 + ReLU (conv1)
    row0 = pl.multiple_of(pl.program_id(1) * tr, tr)
    _build_patch(x_ref, patch_ref, row0, taps, tr, wo_p)
    acc = jnp.dot(patch_ref[...], w_ref[...], preferred_element_type=jnp.float32)
    _finish(acc, o_ref, tr, wo, wo_p)


def _conv_add_relu_kernel(x_ref, w_ref, id_ref, o_ref, patch_ref, *, taps, tr, wo, wo_p):
    # conv3x3 + identity residual + ReLU (conv2, in_channels == out_channels)
    row0 = pl.multiple_of(pl.program_id(1) * tr, tr)
    _build_patch(x_ref, patch_ref, row0, taps, tr, wo_p)
    cout = o_ref.shape[-1]
    acc = jnp.dot(patch_ref[...], w_ref[...], preferred_element_type=jnp.float32)
    ident = id_ref[0].reshape(tr * wo_p, cout).astype(jnp.float32)
    _finish(acc + ident, o_ref, tr, wo, wo_p)


def _conv_proj_add_relu_kernel(x_ref, w_ref, id_ref, ws_ref, o_ref, patch_ref,
                               *, taps, tr, wo, wo_p):
    # conv3x3 + 1x1 projection shortcut + residual add + ReLU (conv2, channels change)
    row0 = pl.multiple_of(pl.program_id(1) * tr, tr)
    _build_patch(x_ref, patch_ref, row0, taps, tr, wo_p)
    cid = id_ref.shape[-1]
    acc = jnp.dot(patch_ref[...], w_ref[...], preferred_element_type=jnp.float32)
    ident = jnp.dot(id_ref[0].reshape(tr * wo_p, cid), ws_ref[...],
                    preferred_element_type=jnp.float32)
    _finish(acc + ident, o_ref, tr, wo, wo_p)


# ------------------------- tiling / VMEM heuristics -------------------------

def _vmem_limit_bytes():
    """Scoped-VMEM limit with generous headroom (v7x: 64 MiB, v5e/v6e: 128 MiB)."""
    try:
        cap = pltpu.get_tpu_info().vmem_capacity_bytes
    except Exception:  # be conservative: assume the smallest (v7x) capacity
        cap = 64 * 1024 * 1024
    return max(min(cap * 2 // 3, cap - 24 * 1024 * 1024), 32 * 1024 * 1024)


def _pick_row_tile(N, ho, wo_p, cin, cout, cid, s, kd, H_arr, W_arr,
                   out_bytes, vmem_limit, proj):
    """Largest row tile (multiple of 8) whose resident + streamed blocks fit VMEM,
    with the f32 result tile and the patch slab kept small."""
    tr_cap = _round_up(ho, 8)
    if N == 1 and ho > 8:                       # keep >= 2 grid steps (v7x: 2 TCs)
        tr_cap = min(tr_cap, _round_up(-(-ho // 2), 8))
    best, cand = 8, 8
    while cand <= min(tr_cap, 256):
        ntiles = -(-ho // cand)
        hq = max(ntiles * cand + kd, -(-(H_arr + 1) // s))
        wq = max(wo_p + kd, -(-(W_arr + 1) // s))
        resident = (2 * s * s * hq * wq * cin * 2           # phase-split x (2 buffers)
                    + 2 * 9 * cin * cout * 2                # weights
                    + (2 * cid * cout * 2 if proj else 0))  # 1x1 projection weights
        streamed = (2 * cand * wo_p * cout * out_bytes      # output blocks
                    + (2 * cand * wo_p * cid * 2 if cid else 0)   # identity blocks
                    + cand * wo_p * 9 * cin * 2             # patch slab scratch
                    + 2 * cand * wo_p * cout * 4)           # f32 result + temps
        acc_bytes = cand * wo_p * cout * 4
        patch_bytes = cand * wo_p * 9 * cin * 2
        if (resident + streamed <= vmem_limit
                and acc_bytes <= 512 * 1024 and patch_bytes <= 4 * 1024 * 1024):
            best = cand
        cand += 8
    # Sanity check: the always-resident phase-split sample block must fit.
    ntiles = -(-ho // best)
    hq = max(ntiles * best + kd, -(-(H_arr + 1) // s))
    wq = max(wo_p + kd, -(-(W_arr + 1) // s))
    if 2 * s * s * hq * wq * cin * 2 > vmem_limit:
        # TODO(synk): halo row-tile the input with manual DMA for huge samples.
        raise ValueError("input sample too large to keep VMEM-resident in this kernel")
    return best


# ------------------------- fused conv3x3 (+shortcut/add/ReLU) -------------------------

def _fused_conv3x3(x, w_flat, *, stride, out_dtype, true_hw=None,
                   identity=None, ws=None):
    """3x3 conv (pad=1, `stride`) + ReLU, optionally fused with a residual add
    (identity or 1x1-projection shortcut), as one pallas_call.

    x       : (N, H_arr, W_arr, cin) bf16 NHWC; content beyond `true_hw` must be zero.
    w_flat  : (9*cin, cout) bf16 weights, tap-major flattened HWIO (k = (3*ky+kx)*cin+c).
    identity: None
              | ("rows",  arr)          arr (N, >=ho, >=wo, cid), row/col aligned
              | ("phase", xph_src, s0)  phase-split source; phase s0+1 holds x[::s0,::s0]
    Returns (out (N, ho, wo_p, cout) with zeroed pad cols, xph, (ho, wo, wo_p)).
    """
    N, H_arr, W_arr, cin = x.shape
    cout = w_flat.shape[-1]
    H_t, W_t = true_hw if true_hw is not None else (H_arr, W_arr)
    s = stride
    ho = (H_t - 1) // s + 1
    wo = (W_t - 1) // s + 1
    wo_p = _round_up(wo, _ALIGN)
    kd = 2 // s

    cid = identity[1].shape[-1] if identity is not None else 0

    vmem_limit = _vmem_limit_bytes()
    out_bytes = jnp.dtype(out_dtype).itemsize
    tr = _pick_row_tile(N, ho, wo_p, cin, cout, cid, s, kd, H_arr, W_arr,
                        out_bytes, vmem_limit, proj=ws is not None)
    ntiles = pl.cdiv(ho, tr)
    hq = max(ntiles * tr + kd, -(-(H_arr + 1) // s))
    wq = max(wo_p + kd, -(-(W_arr + 1) // s))

    # Pad once (conv pad=1 + alignment) and split into s*s spatial phases so every tap
    # inside the kernel is a unit-stride slice (in-kernel im2col, no HBM patch matrix).
    xp = jnp.pad(x, ((0, 0), (1, s * hq - (H_arr + 1)),
                     (1, s * wq - (W_arr + 1)), (0, 0)))
    xph = (xp.reshape(N, hq, s, wq, s, cin)
             .transpose(0, 2, 4, 1, 3, 5)
             .reshape(N * s * s, hq, wq, cin))

    # tap t = 3*ky + kx  ->  (phase index, row offset, col offset)
    taps = tuple(((ky % s) * s + (kx % s), ky // s, kx // s)
                 for ky in range(3) for kx in range(3))

    in_specs = [
        pl.BlockSpec((s * s, hq, wq, cin), lambda n, j: (n, 0, 0, 0)),
        pl.BlockSpec((9 * cin, cout), lambda n, j: (0, 0)),
    ]
    args = [xph, w_flat]

    if identity is None:
        kernel = functools.partial(_conv_relu_kernel, taps=taps, tr=tr, wo=wo, wo_p=wo_p)
    else:
        kind, id_arr = identity[0], identity[1]
        if kind == "rows":
            if id_arr.shape[2] < wo_p:   # lane/sublane-aligned identity block width
                id_arr = jnp.pad(id_arr, ((0, 0), (0, 0),
                                          (0, wo_p - id_arr.shape[2]), (0, 0)))
            in_specs.append(pl.BlockSpec((1, tr, wo_p, cid), lambda n, j: (n, j, 0, 0)))
        else:
            # "phase": reuse conv1's phase-split x as the strided identity source --
            # phase (1,1) of a stride-s split holds exactly x[:, ::s, ::s, :].
            s0 = identity[2]
            P, pidx = s0 * s0, s0 + 1
            in_specs.append(pl.BlockSpec((1, tr, wo_p, cid),
                                         lambda n, j: (n * P + pidx, j, 0, 0)))
        args.append(id_arr)
        if ws is None:
            kernel = functools.partial(_conv_add_relu_kernel,
                                       taps=taps, tr=tr, wo=wo, wo_p=wo_p)
        else:
            in_specs.append(pl.BlockSpec((cid, cout), lambda n, j: (0, 0)))
            args.append(ws)
            kernel = functools.partial(_conv_proj_add_relu_kernel,
                                       taps=taps, tr=tr, wo=wo, wo_p=wo_p)

    out = pl.pallas_call(
        kernel,
        out_shape=jax.ShapeDtypeStruct((N, ho, wo_p, cout), out_dtype),
        grid=(N, ntiles),
        in_specs=in_specs,
        out_specs=pl.BlockSpec((1, tr, wo_p, cout), lambda n, j: (n, j, 0, 0)),
        scratch_shapes=[pltpu.VMEM((tr * wo_p, 9 * cin), jnp.bfloat16)],
        compiler_params=pltpu.CompilerParams(
            dimension_semantics=("parallel", "parallel"),
            vmem_limit_bytes=vmem_limit),
    )(*args)
    return out, xph, (ho, wo, wo_p)


# ------------------------- BasicBlock forward -------------------------

def basic_block_init(key, in_channels, out_channels, bias=False):
    """Deterministic parameter init. Conv weights are HWIO (3,3,Cin,Cout), f32."""
    k1, k2, k3 = jax.random.split(key, 3)
    scale1 = 1.0 / jnp.sqrt(9.0 * in_channels)
    scale2 = 1.0 / jnp.sqrt(9.0 * out_channels)
    params = {
        "w1": jax.random.normal(k1, (3, 3, in_channels, out_channels),
                                jnp.float32) * scale1,
        "w2": jax.random.normal(k2, (3, 3, out_channels, out_channels),
                                jnp.float32) * scale2,
    }
    if in_channels != out_channels:
        params["ws"] = jax.random.normal(
            k3, (in_channels, out_channels), jnp.float32) / jnp.sqrt(float(in_channels))
    # bias=False (module default); BatchNorm2d(affine=False) has no params.
    return params


@functools.partial(jax.jit, static_argnames=("stride",))
def basic_block_forward(params, x_nchw, stride):
    """x_nchw: [N, Cin, H, W] f32 -> [N, Cout, Ho, Wo] f32 (PyTorch-facing NCHW).

    NOTE: if the surrounding model can carry NHWC, drop the two transposes here —
    they are pure HBM traffic.
    """
    x = jnp.transpose(x_nchw, (0, 2, 3, 1)).astype(jnp.bfloat16)    # NCHW -> NHWC bf16
    N, H, W, cin = x.shape
    cout = params["w1"].shape[-1]
    if "ws" not in params and stride != 1:
        # PyTorch's BasicBlock has no shortcut conv when channels match; stride != 1
        # would shape-error there as well.
        raise ValueError("identity shortcut requires stride == 1")

    w1 = params["w1"].astype(jnp.bfloat16).reshape(9 * cin, cout)
    w2 = params["w2"].astype(jnp.bfloat16).reshape(9 * cout, cout)

    # conv1 (3x3, stride, pad=1) + ReLU; keep the phase-split input for the shortcut.
    h1, x_ph1, (ho1, wo1, _) = _fused_conv3x3(
        x, w1, stride=stride, out_dtype=jnp.bfloat16)

    # conv2 (3x3, stride 1, pad=1) + shortcut + residual add + ReLU in ONE kernel.
    if "ws" in params:
        ws = params["ws"].astype(jnp.bfloat16)
        if stride == 1:
            identity = ("rows", x)                       # no striding needed
        else:
            identity = ("phase", x_ph1, stride)          # x[:, ::s, ::s, :] without a gather
        out, _, (ho2, wo2, _) = _fused_conv3x3(
            h1, w2, stride=1, true_hw=(ho1, wo1), identity=identity, ws=ws,
            out_dtype=jnp.float32)
    else:
        out, _, (ho2, wo2, _) = _fused_conv3x3(
            h1, w2, stride=1, true_hw=(ho1, wo1), identity=("rows", x),
            out_dtype=jnp.float32)

    out = out[:, :, :wo2, :]                             # drop alignment-pad columns
    return jnp.transpose(out, (0, 3, 1, 2))              # NHWC -> NCHW (fuses the slice)


# ------------------------- pure-JAX reference (same quantization points) ----------

def _ref_forward(params, x_nchw, stride):
    f32 = jnp.float32
    x = jnp.transpose(x_nchw, (0, 2, 3, 1)).astype(jnp.bfloat16).astype(f32)
    w1 = params["w1"].astype(jnp.bfloat16).astype(f32)
    w2 = params["w2"].astype(jnp.bfloat16).astype(f32)
    dn = ("NHWC", "HWIO", "NHWC")
    hp = lax.Precision.HIGHEST
    h1 = lax.conv_general_dilated(x, w1, (stride, stride), ((1, 1), (1, 1)),
                                  dimension_numbers=dn, precision=hp)
    h1 = jnp.maximum(h1, 0.0).astype(jnp.bfloat16).astype(f32)
    h2 = lax.conv_general_dilated(h1, w2, (1, 1), ((1, 1), (1, 1)),
                                  dimension_numbers=dn, precision=hp)
    if "ws" in params:
        ws = params["ws"].astype(jnp.bfloat16).astype(f32)
        ws = ws.reshape(1, 1, *params["ws"].shape)
        ident = lax.conv_general_dilated(x, ws, (stride, stride), ((0, 0), (0, 0)),
                                         dimension_numbers=dn, precision=hp)
    else:
        ident = x
    out = jnp.maximum(h2 + ident, 0.0)
    return jnp.transpose(out, (0, 3, 1, 2))


# ------------------------- main -------------------------

if __name__ == "__main__":
    key = jax.random.PRNGKey(0)
    kx1, kp1, kx2, kp2 = jax.random.split(key, 4)

    # Path 1: projection shortcut (channels change, stride 2).
    N, Cin, Cout, H, W, stride = 2, 4, 8, 16, 16, 2
    x = jax.random.normal(kx1, (N, Cin, H, W), jnp.float32)
    params = basic_block_init(kp1, Cin, Cout)
    out = jax.block_until_ready(basic_block_forward(params, x, stride))
    ref = jax.block_until_ready(_ref_forward(params, x, stride))
    assert out.shape == (N, Cout, H // stride, W // stride), out.shape
    err = float(jnp.max(jnp.abs(out - ref)))
    assert jnp.allclose(out, ref, atol=1e-2, rtol=1e-2), err

    # Path 2: identity shortcut (channels equal, stride 1).
    C2 = 8
    x2 = jax.random.normal(kx2, (N, C2, H, W), jnp.float32)
    params2 = basic_block_init(kp2, C2, C2)
    out2 = jax.block_until_ready(basic_block_forward(params2, x2, 1))
    ref2 = jax.block_until_ready(_ref_forward(params2, x2, 1))
    assert out2.shape == (N, C2, H, W), out2.shape
    err2 = float(jnp.max(jnp.abs(out2 - ref2)))
    assert jnp.allclose(out2, ref2, atol=1e-2, rtol=1e-2), err2

    print("KERNEL_OK")
</pallas_src>

<mosaic_0001>
module attributes {stable_mosaic.version = 11 : i64} {
  func.func @_conv_relu_kernel(%arg0: i32, %arg1: i32, %arg2: memref<4x9x17x4xbf16, #tpu.memory_space<vmem>>, %arg3: memref<36x8xbf16, #tpu.memory_space<vmem>>, %arg4: memref<1x8x16x8xbf16, #tpu.memory_space<vmem>>, %arg5: memref<128x36xbf16, #tpu.memory_space<vmem>>) attributes {dimension_semantics = [#tpu.dimension_semantics<parallel>, #tpu.dimension_semantics<parallel>], iteration_bounds = array<i64: 2, 1>, scalar_prefetch = 0 : i64, scratch_operands = 1 : i64, tpu.core_type = #tpu.core_type<tc>, window_params = [{transform_indices = @transform_0, window_bounds = array<i64: 4, 9, 17, 4>}, {pipeline_mode = #tpu.pipeline_mode<synchronous>, transform_indices = @transform_1, window_bounds = array<i64: 36, 8>}, {transform_indices = @transform_2, window_bounds = array<i64: 1, 8, 16, 8>}]} {
    %c8_i32 = arith.constant 8 : i32
    %0 = arith.muli %arg1, %c8_i32 : i32
    %1 = tpu.assume_multiple %0, 8 : i32
    %c0_i32 = arith.constant 0 : i32
    %2 = arith.addi %1, %c0_i32 : i32
    %c0 = arith.constant 0 : index
    %3 = arith.index_cast %2 : i32 to index
    %c0_0 = arith.constant 0 : index
    %c0_1 = arith.constant 0 : index
    %4 = vector.load %arg2[%c0, %3, %c0_0, %c0_1] : memref<4x9x17x4xbf16, #tpu.memory_space<vmem>>, vector<1x8x16x4xbf16>
    %5 = vector.shape_cast %4 : vector<1x8x16x4xbf16> to vector<8x16x4xbf16>
    %6 = vector.shape_cast %5 : vector<8x16x4xbf16> to vector<128x4xbf16>
    %c0_2 = arith.constant 0 : index
    %c0_3 = arith.constant 0 : index
    %7 = vector.load %arg5[%c0_2, %c0_3] : memref<128x36xbf16, #tpu.memory_space<vmem>>, vector<128x4xbf16>
    tpu.vector_store %arg5[%c0_2, %c0_3], %6 {strides = array<i32>} : memref<128x36xbf16, #tpu.memory_space<vmem>>, vector<128x4xbf16>,
    %c0_i32_4 = arith.constant 0 : i32
    %8 = arith.addi %1, %c0_i32_4 : i32
    %c1 = arith.constant 1 : index
    %9 = arith.index_cast %8 : i32 to index
    %c0_5 = arith.constant 0 : index
    %c0_6 = arith.constant 0 : index
    %10 = vector.load %arg2[%c1, %9, %c0_5, %c0_6] : memref<4x9x17x4xbf16, #tpu.memory_space<vmem>>, vector<1x8x16x4xbf16>
    %11 = vector.shape_cast %10 : vector<1x8x16x4xbf16> to vector<8x16x4xbf16>
    %12 = vector.shape_cast %11 : vector<8x16x4xbf16> to vector<128x4xbf16>
    %c0_7 = arith.constant 0 : index
    %c4 = arith.constant 4 : index
    %13 = vector.load %arg5[%c0_7, %c4] : memref<128x36xbf16, #tpu.memory_space<vmem>>, vector<128x4xbf16>
    tpu.vector_store %arg5[%c0_7, %c4], %12 {strides = array<i32>} : memref<128x36xbf16, #tpu.memory_space<vmem>>, vector<128x4xbf16>,
    %c0_i32_8 = arith.constant 0 : i32
    %14 = arith.addi %1, %c0_i32_8 : i32
    %c0_9 = arith.constant 0 : index
    %15 = arith.index_cast %14 : i32 to index
    %c1_10 = arith.constant 1 : index
    %c0_11 = arith.constant 0 : index
    %16 = vector.load %arg2[%c0_9, %15, %c1_10, %c0_11] : memref<4x9x17x4xbf16, #tpu.memory_space<vmem>>, vector<1x8x16x4xbf16>
    %17 = vector.shape_cast %16 : vector<1x8x16x4xbf16> to vector<8x16x4xbf16>
    %18 = vector.shape_cast %17 : vector<8x16x4xbf16> to vector<128x4xbf16>
    %c0_12 = arith.constant 0 : index
    %c8 = arith.constant 8 : index
    %19 = vector.load %arg5[%c0_12, %c8] : memref<128x36xbf16, #tpu.memory_space<vmem>>, vector<128x4xbf16>
    tpu.vector_store %arg5[%c0_12, %c8], %18 {strides = array<i32>} : memref<128x36xbf16, #tpu.memory_space<vmem>>, vector<128x4xbf16>,
    %c0_i32_13 = arith.constant 0 : i32
    %20 = arith.addi %1, %c0_i32_13 : i32
    %c2 = arith.constant 2 : index
    %21 = arith.index_cast %20 : i32 to index
    %c0_14 = arith.constant 0 : index
    %c0_15 = arith.constant 0 : index
    %22 = vector.load %arg2[%c2, %21, %c0_14, %c0_15] : memref<4x9x17x4xbf16, #tpu.memory_space<vmem>>, vector<1x8x16x4xbf16>
    %23 = vector.shape_cast %22 : vector<1x8x16x4xbf16> to vector<8x16x4xbf16>
    %24 = vector.shape_cast %23 : vector<8x16x4xbf16> to vector<128x4xbf16>
    %c0_16 = arith.constant 0 : index
    %c12 = arith.constant 12 : index
    %25 = vector.load %arg5[%c0_16, %c12] : memref<128x36xbf16, #tpu.memory_space<vmem>>, vector<128x4xbf16>
    tpu.vector_store %arg5[%c0_16, %c12], %24 {strides = array<i32>} : memref<128x36xbf16, #tpu.memory_space<vmem>>, vector<128x4xbf16>,
    %c0_i32_17 = arith.constant 0 : i32
    %26 = arith.addi %1, %c0_i32_17 : i32
    %c3 = arith.constant 3 : index
    %27 = arith.index_cast %26 : i32 to index
    %c0_18 = arith.constant 0 : index
    %c0_19 = arith.constant 0 : index
    %28 = vector.load %arg2[%c3, %27, %c0_18, %c0_19] : memref<4x9x17x4xbf16, #tpu.memory_space<vmem>>, vector<1x8x16x4xbf16>
    %29 = vector.shape_cast %28 : vector<1x8x16x4xbf16> to vector<8x16x4xbf16>
    %30 = vector.shape_cast %29 : vector<8x16x4xbf16> to vector<128x4xbf16>
    %c0_20 = arith.constant 0 : index
    %c16 = arith.constant 16 : index
    %31 = vector.load %arg5[%c0_20, %c16] : memref<128x36xbf16, #tpu.memory_space<vmem>>, vector<128x4xbf16>
    tpu.vector_store %arg5[%c0_20, %c16], %30 {strides = array<i32>} : memref<128x36xbf16, #tpu.memory_space<vmem>>, vector<128x4xbf16>,
    %c0_i32_21 = arith.constant 0 : i32
    %32 = arith.addi %1, %c0_i32_21 : i32
    %c2_22 = arith.constant 2 : index
    %33 = arith.index_cast %32 : i32 to index
    %c1_23 = arith.constant 1 : index
    %c0_24 = arith.constant 0 : index
    %34 = vector.load %arg2[%c2_22, %33, %c1_23, %c0_24] : memref<4x9x17x4xbf16, #tpu.memory_space<vmem>>, vector<1x8x16x4xbf16>
    %35 = vector.shape_cast %34 : vector<1x8x16x4xbf16> to vector<8x16x4xbf16>
    %36 = vector.shape_cast %35 : vector<8x16x4xbf16> to vector<128x4xbf16>
    %c0_25 = arith.constant 0 : index
    %c20 = arith.constant 20 : index
    %37 = vector.load %arg5[%c0_25, %c20] : memref<128x36xbf16, #tpu.memory_space<vmem>>, vector<128x4xbf16>
    tpu.vector_store %arg5[%c0_25, %c20], %36 {strides = array<i32>} : memref<128x36xbf16, #tpu.memory_space<vmem>>, vector<128x4xbf16>,
    %c1_i32 = arith.constant 1 : i32
    %38 = arith.addi %1, %c1_i32 : i32
    %c0_26 = arith.constant 0 : index
    %39 = arith.index_cast %38 : i32 to index
    %c0_27 = arith.constant 0 : index
    %c0_28 = arith.constant 0 : index
    %40 = vector.load %arg2[%c0_26, %39, %c0_27, %c0_28] : memref<4x9x17x4xbf16, #tpu.memory_space<vmem>>, vector<1x8x16x4xbf16>
    %41 = vector.shape_cast %40 : vector<1x8x16x4xbf16> to vector<8x16x4xbf16>
    %42 = vector.shape_cast %41 : vector<8x16x4xbf16> to vector<128x4xbf16>
    %c0_29 = arith.constant 0 : index
    %c24 = arith.constant 24 : index
    %43 = vector.load %arg5[%c0_29, %c24] : memref<128x36xbf16, #tpu.memory_space<vmem>>, vector<128x4xbf16>
    tpu.vector_store %arg5[%c0_29, %c24], %42 {strides = array<i32>} : memref<128x36xbf16, #tpu.memory_space<vmem>>, vector<128x4xbf16>,
    %c1_i32_30 = arith.constant 1 : i32
    %44 = arith.addi %1, %c1_i32_30 : i32
    %c1_31 = arith.constant 1 : index
    %45 = arith.index_cast %44 : i32 to index
    %c0_32 = arith.constant 0 : index
    %c0_33 = arith.constant 0 : index
    %46 = vector.load %arg2[%c1_31, %45, %c0_32, %c0_33] : memref<4x9x17x4xbf16, #tpu.memory_space<vmem>>, vector<1x8x16x4xbf16>
    %47 = vector.shape_cast %46 : vector<1x8x16x4xbf16> to vector<8x16x4xbf16>
    %48 = vector.shape_cast %47 : vector<8x16x4xbf16> to vector<128x4xbf16>
    %c0_34 = arith.constant 0 : index
    %c28 = arith.constant 28 : index
    %49 = vector.load %arg5[%c0_34, %c28] : memref<128x36xbf16, #tpu.memory_space<vmem>>, vector<128x4xbf16>
    tpu.vector_store %arg5[%c0_34, %c28], %48 {strides = array<i32>} : memref<128x36xbf16, #tpu.memory_space<vmem>>, vector<128x4xbf16>,
    %c1_i32_35 = arith.constant 1 : i32
    %50 = arith.addi %1, %c1_i32_35 : i32
    %c0_36 = arith.constant 0 : index
    %51 = arith.index_cast %50 : i32 to index
    %c1_37 = arith.constant 1 : index
    %c0_38 = arith.constant 0 : index
    %52 = vector.load %arg2[%c0_36, %51, %c1_37, %c0_38] : memref<4x9x17x4xbf16, #tpu.memory_space<vmem>>, vector<1x8x16x4xbf16>
    %53 = vector.shape_cast %52 : vector<1x8x16x4xbf16> to vector<8x16x4xbf16>
    %54 = vector.shape_cast %53 : vector<8x16x4xbf16> to vector<128x4xbf16>
    %c0_39 = arith.constant 0 : index
    %c32 = arith.constant 32 : index
    %55 = vector.load %arg5[%c0_39, %c32] : memref<128x36xbf16, #tpu.memory_space<vmem>>, vector<128x4xbf16>
    tpu.vector_store %arg5[%c0_39, %c32], %54 {strides = array<i32>} : memref<128x36xbf16, #tpu.memory_space<vmem>>, vector<128x4xbf16>,
    %c0_40 = arith.constant 0 : index
    %c0_41 = arith.constant 0 : index
    %56 = vector.load %arg5[%c0_40, %c0_41] : memref<128x36xbf16, #tpu.memory_space<vmem>>, vector<128x36xbf16>
    %c0_42 = arith.constant 0 : index
    %c0_43 = arith.constant 0 : index
    %57 = vector.load %arg3[%c0_42, %c0_43] : memref<36x8xbf16, #tpu.memory_space<vmem>>, vector<36x8xbf16>
    %cst = arith.constant dense<0.000000e+00> : vector<128x8xf32>
    %58 = tpu.matmul %56, %57, %cst {dimension_numbers = #tpu.dot_dimension_numbers<[1], [0], [0], [1], [0, 0, 1, 1], [], []>} : vector<128x36xbf16>, vector<36x8xbf16>, vector<128x8xf32> -> vector<128x8xf32>
    %cst_44 = arith.constant 0.000000e+00 : f32
    %59 = vector.broadcast %cst_44 : f32 to vector<128x8xf32>
    %60 = arith.maximumf %58, %59 : vector<128x8xf32>
    %61 = vector.shape_cast %60 : vector<128x8xf32> to vector<8x16x8xf32>
    %62 = tpu.iota {dimensions = array<i32: 1>} : vector<8x16x8xi32>
    %c8_i32_45 = arith.constant 8 : i32
    %63 = vector.broadcast %c8_i32_45 : i32 to vector<8x16x8xi32>
    %64 = arith.cmpi slt, %62, %63 : vector<8x16x8xi32>
    %cst_46 = arith.constant 0.000000e+00 : f32
    %65 = vector.broadcast %cst_46 : f32 to vector<8x16x8xf32>
    %66 = arith.select %64, %61, %65 : vector<8x16x8xi1>, vector<8x16x8xf32>
    %67 = arith.truncf %66 : vector<8x16x8xf32> to vector<8x16x8xbf16>
    %c0_47 = arith.constant 0 : index
    %c0_48 = arith.constant 0 : index
    %c0_49 = arith.constant 0 : index
    %c0_50 = arith.constant 0 : index
    %68 = vector.load %arg4[%c0_47, %c0_48, %c0_49, %c0_50] : memref<1x8x16x8xbf16, #tpu.memory_space<vmem>>, vector<1x8x16x8xbf16>
    %69 = vector.shape_cast %68 : vector<1x8x16x8xbf16> to vector<8x16x8xbf16>
    %70 = vector.shape_cast %67 : vector<8x16x8xbf16> to vector<1x8x16x8xbf16>
    tpu.vector_store %arg4[%c0_47, %c0_48, %c0_49, %c0_50], %70 {strides = array<i32>} : memref<1x8x16x8xbf16, #tpu.memory_space<vmem>>, vector<1x8x16x8xbf16>,
    return
  }
  func.func @transform_0(%arg0: i32, %arg1: i32) -> (i32, i32, i32, i32) {
    %c0_i32 = arith.constant 0 : i32
    %c0_i32_0 = arith.constant 0 : i32
    %c0_i32_1 = arith.constant 0 : i32
    %c0_i32_2 = arith.constant 0 : i32
    return %arg0, %c0_i32, %c0_i32_0, %c0_i32_1 : i32, i32, i32, i32
  }
  func.func @transform_1(%arg0: i32, %arg1: i32) -> (i32, i32) {
    %c0_i32 = arith.constant 0 : i32
    %c0_i32_0 = arith.constant 0 : i32
    %c0_i32_1 = arith.constant 0 : i32
    return %c0_i32, %c0_i32_0 : i32, i32
  }
  func.func @transform_2(%arg0: i32, %arg1: i32) -> (i32, i32, i32, i32) {
    %c0_i32 = arith.constant 0 : i32
    %c0_i32_0 = arith.constant 0 : i32
    %c0_i32_1 = arith.constant 0 : i32
    return %arg0, %arg1, %c0_i32, %c0_i32_0 : i32, i32, i32, i32
  }
}

module attributes {stable_mosaic.version = 11 : i64} {
  func.func @_conv_proj_add_relu_kernel(%arg0: i32, %arg1: i32, %arg2: memref<1x10x18x8xbf16, #tpu.memory_space<vmem>>, %arg3: memref<72x8xbf16, #tpu.memory_space<vmem>>, %arg4: memref<1x8x16x4xbf16, #tpu.memory_space<vmem>>, %arg5: memref<4x8xbf16, #tpu.memory_space<vmem>>, %arg6: memref<1x8x16x8xf32, #tpu.memory_space<vmem>>, %arg7: memref<128x72xbf16, #tpu.memory_space<vmem>>) attributes {dimension_semantics = [#tpu.dimension_semantics<parallel>, #tpu.dimension_semantics<parallel>], iteration_bounds = array<i64: 2, 1>, scalar_prefetch = 0 : i64, scratch_operands = 1 : i64, tpu.core_type = #tpu.core_type<tc>, window_params = [{transform_indices = @transform_0, window_bounds = array<i64: 1, 10, 18, 8>}, {pipeline_mode = #tpu.pipeline_mode<synchronous>, transform_indices = @transform_1, window_bounds = array<i64: 72, 8>}, {transform_indices = @transform_2, window_bounds = array<i64: 1, 8, 16, 4>}, {pipeline_mode = #tpu.pipeline_mode<synchronous>, transform_indices = @transform_3, window_bounds = array<i64: 4, 8>}, {transform_indices = @transform_4, window_bounds = array<i64: 1, 8, 16, 8>}]} {
    %c8_i32 = arith.constant 8 : i32
    %0 = arith.muli %arg1, %c8_i32 : i32
    %1 = tpu.assume_multiple %0, 8 : i32
    %c0_i32 = arith.constant 0 : i32
    %2 = arith.addi %1, %c0_i32 : i32
    %c0 = arith.constant 0 : index
    %3 = arith.index_cast %2 : i32 to index
    %c0_0 = arith.constant 0 : index
    %c0_1 = arith.constant 0 : index
    %4 = vector.load %arg2[%c0, %3, %c0_0, %c0_1] : memref<1x10x18x8xbf16, #tpu.memory_space<vmem>>, vector<1x8x16x8xbf16>
    %5 = vector.shape_cast %4 : vector<1x8x16x8xbf16> to vector<8x16x8xbf16>
    %6 = vector.shape_cast %5 : vector<8x16x8xbf16> to vector<128x8xbf16>
    %c0_2 = arith.constant 0 : index
    %c0_3 = arith.constant 0 : index
    %7 = vector.load %arg7[%c0_2, %c0_3] : memref<128x72xbf16, #tpu.memory_space<vmem>>, vector<128x8xbf16>
    tpu.vector_store %arg7[%c0_2, %c0_3], %6 {strides = array<i32>} : memref<128x72xbf16, #tpu.memory_space<vmem>>, vector<128x8xbf16>,
    %c0_i32_4 = arith.constant 0 : i32
    %8 = arith.addi %1, %c0_i32_4 : i32
    %c0_5 = arith.constant 0 : index
    %9 = arith.index_cast %8 : i32 to index
    %c1 = arith.constant 1 : index
    %c0_6 = arith.constant 0 : index
    %10 = vector.load %arg2[%c0_5, %9, %c1, %c0_6] : memref<1x10x18x8xbf16, #tpu.memory_space<vmem>>, vector<1x8x16x8xbf16>
    %11 = vector.shape_cast %10 : vector<1x8x16x8xbf16> to vector<8x16x8xbf16>
    %12 = vector.shape_cast %11 : vector<8x16x8xbf16> to vector<128x8xbf16>
    %c0_7 = arith.constant 0 : index
    %c8 = arith.constant 8 : index
    %13 = vector.load %arg7[%c0_7, %c8] : memref<128x72xbf16, #tpu.memory_space<vmem>>, vector<128x8xbf16>
    tpu.vector_store %arg7[%c0_7, %c8], %12 {strides = array<i32>} : memref<128x72xbf16, #tpu.memory_space<vmem>>, vector<128x8xbf16>,
    %c0_i32_8 = arith.constant 0 : i32
    %14 = arith.addi %1, %c0_i32_8 : i32
    %c0_9 = arith.constant 0 : index
    %15 = arith.index_cast %14 : i32 to index
    %c2 = arith.constant 2 : index
    %c0_10 = arith.constant 0 : index
    %16 = vector.load %arg2[%c0_9, %15, %c2, %c0_10] : memref<1x10x18x8xbf16, #tpu.memory_space<vmem>>, vector<1x8x16x8xbf16>
    %17 = vector.shape_cast %16 : vector<1x8x16x8xbf16> to vector<8x16x8xbf16>
    %18 = vector.shape_cast %17 : vector<8x16x8xbf16> to vector<128x8xbf16>
    %c0_11 = arith.constant 0 : index
    %c16 = arith.constant 16 : index
    %19 = vector.load %arg7[%c0_11, %c16] : memref<128x72xbf16, #tpu.memory_space<vmem>>, vector<128x8xbf16>
    tpu.vector_store %arg7[%c0_11, %c16], %18 {strides = array<i32>} : memref<128x72xbf16, #tpu.memory_space<vmem>>, vector<128x8xbf16>,
    %c1_i32 = arith.constant 1 : i32
    %20 = arith.addi %1, %c1_i32 : i32
    %c0_12 = arith.constant 0 : index
    %21 = arith.index_cast %20 : i32 to index
    %c0_13 = arith.constant 0 : index
    %c0_14 = arith.constant 0 : index
    %22 = vector.load %arg2[%c0_12, %21, %c0_13, %c0_14] : memref<1x10x18x8xbf16, #tpu.memory_space<vmem>>, vector<1x8x16x8xbf16>
    %23 = vector.shape_cast %22 : vector<1x8x16x8xbf16> to vector<8x16x8xbf16>
    %24 = vector.shape_cast %23 : vector<8x16x8xbf16> to vector<128x8xbf16>
    %c0_15 = arith.constant 0 : index
    %c24 = arith.constant 24 : index
    %25 = vector.load %arg7[%c0_15, %c24] : memref<128x72xbf16, #tpu.memory_space<vmem>>, vector<128x8xbf16>
    tpu.vector_store %arg7[%c0_15, %c24], %24 {strides = array<i32>} : memref<128x72xbf16, #tpu.memory_space<vmem>>, vector<128x8xbf16>,
    %c1_i32_16 = arith.constant 1 : i32
    %26 = arith.addi %1, %c1_i32_16 : i32
    %c0_17 = arith.constant 0 : index
    %27 = arith.index_cast %26 : i32 to index
    %c1_18 = arith.constant 1 : index
    %c0_19 = arith.constant 0 : index
    %28 = vector.load %arg2[%c0_17, %27, %c1_18, %c0_19] : memref<1x10x18x8xbf16, #tpu.memory_space<vmem>>, vector<1x8x16x8xbf16>
    %29 = vector.shape_cast %28 : vector<1x8x16x8xbf16> to vector<8x16x8xbf16>
    %30 = vector.shape_cast %29 : vector<8x16x8xbf16> to vector<128x8xbf16>
    %c0_20 = arith.constant 0 : index
    %c32 = arith.constant 32 : index
    %31 = vector.load %arg7[%c0_20, %c32] : memref<128x72xbf16, #tpu.memory_space<vmem>>, vector<128x8xbf16>
    tpu.vector_store %arg7[%c0_20, %c32], %30 {strides = array<i32>} : memref<128x72xbf16, #tpu.memory_space<vmem>>, vector<128x8xbf16>,
    %c1_i32_21 = arith.constant 1 : i32
    %32 = arith.addi %1, %c1_i32_21 : i32
    %c0_22 = arith.constant 0 : index
    %33 = arith.index_cast %32 : i32 to index
    %c2_23 = arith.constant 2 : index
    %c0_24 = arith.constant 0 : index
    %34 = vector.load %arg2[%c0_22, %33, %c2_23, %c0_24] : memref<1x10x18x8xbf16, #tpu.memory_space<vmem>>, vector<1x8x16x8xbf16>
    %35 = vector.shape_cast %34 : vector<1x8x16x8xbf16> to vector<8x16x8xbf16>
    %36 = vector.shape_cast %35 : vector<8x16x8xbf16> to vector<128x8xbf16>
    %c0_25 = arith.constant 0 : index
    %c40 = arith.constant 40 : index
    %37 = vector.load %arg7[%c0_25, %c40] : memref<128x72xbf16, #tpu.memory_space<vmem>>, vector<128x8xbf16>
    tpu.vector_store %arg7[%c0_25, %c40], %36 {strides = array<i32>} : memref<128x72xbf16, #tpu.memory_space<vmem>>, vector<128x8xbf16>,
    %c2_i32 = arith.constant 2 : i32
    %38 = arith.addi %1, %c2_i32 : i32
    %c0_26 = arith.constant 0 : index
    %39 = arith.index_cast %38 : i32 to index
    %c0_27 = arith.constant 0 : index
    %c0_28 = arith.constant 0 : index
    %40 = vector.load %arg2[%c0_26, %39, %c0_27, %c0_28] : memref<1x10x18x8xbf16, #tpu.memory_space<vmem>>, vector<1x8x16x8xbf16>
    %41 = vector.shape_cast %40 : vector<1x8x16x8xbf16> to vector<8x16x8xbf16>
    %42 = vector.shape_cast %41 : vector<8x16x8xbf16> to vector<128x8xbf16>
    %c0_29 = arith.constant 0 : index
    %c48 = arith.constant 48 : index
    %43 = vector.load %arg7[%c0_29, %c48] : memref<128x72xbf16, #tpu.memory_space<vmem>>, vector<128x8xbf16>
    tpu.vector_store %arg7[%c0_29, %c48], %42 {strides = array<i32>} : memref<128x72xbf16, #tpu.memory_space<vmem>>, vector<128x8xbf16>,
    %c2_i32_30 = arith.constant 2 : i32
    %44 = arith.addi %1, %c2_i32_30 : i32
    %c0_31 = arith.constant 0 : index
    %45 = arith.index_cast %44 : i32 to index
    %c1_32 = arith.constant 1 : index
    %c0_33 = arith.constant 0 : index
    %46 = vector.load %arg2[%c0_31, %45, %c1_32, %c0_33] : memref<1x10x18x8xbf16, #tpu.memory_space<vmem>>, vector<1x8x16x8xbf16>
    %47 = vector.shape_cast %46 : vector<1x8x16x8xbf16> to vector<8x16x8xbf16>
    %48 = vector.shape_cast %47 : vector<8x16x8xbf16> to vector<128x8xbf16>
    %c0_34 = arith.constant 0 : index
    %c56 = arith.constant 56 : index
    %49 = vector.load %arg7[%c0_34, %c56] : memref<128x72xbf16, #tpu.memory_space<vmem>>, vector<128x8xbf16>
    tpu.vector_store %arg7[%c0_34, %c56], %48 {strides = array<i32>} : memref<128x72xbf16, #tpu.memory_space<vmem>>, vector<128x8xbf16>,
    %c2_i32_35 = arith.constant 2 : i32
    %50 = arith.addi %1, %c2_i32_35 : i32
    %c0_36 = arith.constant 0 : index
    %51 = arith.index_cast %50 : i32 to index
    %c2_37 = arith.constant 2 : index
    %c0_38 = arith.constant 0 : index
    %52 = vector.load %arg2[%c0_36, %51, %c2_37, %c0_38] : memref<1x10x18x8xbf16, #tpu.memory_space<vmem>>, vector<1x8x16x8xbf16>
    %53 = vector.shape_cast %52 : vector<1x8x16x8xbf16> to vector<8x16x8xbf16>
    %54 = vector.shape_cast %53 : vector<8x16x8xbf16> to vector<128x8xbf16>
    %c0_39 = arith.constant 0 : index
    %c64 = arith.constant 64 : index
    %55 = vector.load %arg7[%c0_39, %c64] : memref<128x72xbf16, #tpu.memory_space<vmem>>, vector<128x8xbf16>
    tpu.vector_store %arg7[%c0_39, %c64], %54 {strides = array<i32>} : memref<128x72xbf16, #tpu.memory_space<vmem>>, vector<128x8xbf16>,
    %c0_40 = arith.constant 0 : index
    %c0_41 = arith.constant 0 : index
    %56 = vector.load %arg7[%c0_40, %c0_41] : memref<128x72xbf16, #tpu.memory_space<vmem>>, vector<128x72xbf16>
    %c0_42 = arith.constant 0 : index
    %c0_43 = arith.constant 0 : index
    %57 = vector.load %arg3[%c0_42, %c0_43] : memref<72x8xbf16, #tpu.memory_space<vmem>>, vector<72x8xbf16>
    %cst = arith.constant dense<0.000000e+00> : vector<128x8xf32>
    %58 = tpu.matmul %56, %57, %cst {dimension_numbers = #tpu.dot_dimension_numbers<[1], [0], [0], [1], [0, 0, 1, 1], [], []>} : vector<128x72xbf16>, vector<72x8xbf16>, vector<128x8xf32> -> vector<128x8xf32>
    %c0_44 = arith.constant 0 : index
    %c0_45 = arith.constant 0 : index
    %c0_46 = arith.constant 0 : index
    %c0_47 = arith.constant 0 : index
    %59 = vector.load %arg4[%c0_44, %c0_45, %c0_46, %c0_47] : memref<1x8x16x4xbf16, #tpu.memory_space<vmem>>, vector<1x8x16x4xbf16>
    %60 = vector.shape_cast %59 : vector<1x8x16x4xbf16> to vector<8x16x4xbf16>
    %61 = vector.shape_cast %60 : vector<8x16x4xbf16> to vector<128x4xbf16>
    %c0_48 = arith.constant 0 : index
    %c0_49 = arith.constant 0 : index
    %62 = vector.load %arg5[%c0_48, %c0_49] : memref<4x8xbf16, #tpu.memory_space<vmem>>, vector<4x8xbf16>
    %cst_50 = arith.constant dense<0.000000e+00> : vector<128x8xf32>
    %63 = tpu.matmul %61, %62, %cst_50 {dimension_numbers = #tpu.dot_dimension_numbers<[1], [0], [0], [1], [0, 0, 1, 1], [], []>} : vector<128x4xbf16>, vector<4x8xbf16>, vector<128x8xf32> -> vector<128x8xf32>
    %64 = arith.addf %58, %63 : vector<128x8xf32>
    %cst_51 = arith.constant 0.000000e+00 : f32
    %65 = vector.broadcast %cst_51 : f32 to vector<128x8xf32>
    %66 = arith.maximumf %64, %65 : vector<128x8xf32>
    %67 = vector.shape_cast %66 : vector<128x8xf32> to vector<8x16x8xf32>
    %68 = tpu.iota {dimensions = array<i32: 1>} : vector<8x16x8xi32>
    %c8_i32_52 = arith.constant 8 : i32
    %69 = vector.broadcast %c8_i32_52 : i32 to vector<8x16x8xi32>
    %70 = arith.cmpi slt, %68, %69 : vector<8x16x8xi32>
    %cst_53 = arith.constant 0.000000e+00 : f32
    %71 = vector.broadcast %cst_53 : f32 to vector<8x16x8xf32>
    %72 = arith.select %70, %67, %71 : vector<8x16x8xi1>, vector<8x16x8xf32>
    %c0_54 = arith.constant 0 : index
    %c0_55 = arith.constant 0 : index
    %c0_56 = arith.constant 0 : index
    %c0_57 = arith.constant 0 : index
    %73 = vector.load %arg6[%c0_54, %c0_55, %c0_56, %c0_57] : memref<1x8x16x8xf32, #tpu.memory_space<vmem>>, vector<1x8x16x8xf32>
    %74 = vector.shape_cast %73 : vector<1x8x16x8xf32> to vector<8x16x8xf32>
    %75 = vector.shape_cast %72 : vector<8x16x8xf32> to vector<1x8x16x8xf32>
    tpu.vector_store %arg6[%c0_54, %c0_55, %c0_56, %c0_57], %75 {strides = array<i32>} : memref<1x8x16x8xf32, #tpu.memory_space<vmem>>, vector<1x8x16x8xf32>,
    return
  }
  func.func @transform_0(%arg0: i32, %arg1: i32) -> (i32, i32, i32, i32) {
    %c0_i32 = arith.constant 0 : i32
    %c0_i32_0 = arith.constant 0 : i32
    %c0_i32_1 = arith.constant 0 : i32
    %c0_i32_2 = arith.constant 0 : i32
    return %arg0, %c0_i32, %c0_i32_0, %c0_i32_1 : i32, i32, i32, i32
  }
  func.func @transform_1(%arg0: i32, %arg1: i32) -> (i32, i32) {
    %c0_i32 = arith.constant 0 : i32
    %c0_i32_0 = arith.constant 0 : i32
    %c0_i32_1 = arith.constant 0 : i32
    return %c0_i32, %c0_i32_0 : i32, i32
  }
  func.func @transform_2(%arg0: i32, %arg1: i32) -> (i32, i32, i32, i32) {
    %c4_i32 = arith.constant 4 : i32
    %0 = arith.muli %arg0, %c4_i32 : i32
    %c3_i32 = arith.constant 3 : i32
    %1 = arith.addi %0, %c3_i32 : i32
    %c0_i32 = arith.constant 0 : i32
    %c0_i32_0 = arith.constant 0 : i32
    %c0_i32_1 = arith.constant 0 : i32
    return %1, %arg1, %c0_i32, %c0_i32_0 : i32, i32, i32, i32
  }
  func.func @transform_3(%arg0: i32, %arg1: i32) -> (i32, i32) {
    %c0_i32 = arith.constant 0 : i32
    %c0_i32_0 = arith.constant 0 : i32
    %c0_i32_1 = arith.constant 0 : i32
    return %c0_i32, %c0_i32_0 : i32, i32
  }
  func.func @transform_4(%arg0: i32, %arg1: i32) -> (i32, i32, i32, i32) {
    %c0_i32 = arith.constant 0 : i32
    %c0_i32_0 = arith.constant 0 : i32
    %c0_i32_1 = arith.constant 0 : i32
    return %arg0, %arg1, %c0_i32, %c0_i32_0 : i32, i32, i32, i32
  }
}

</mosaic_0001>

<bundles_post_ra>
// kernel: basic_block_forward.2
= control target key start
LH: loop header
LB: loop body
LE: loop exit
PB: predicated region body
PF: predicated region fallthrough
CT: control target
= control target key end

     0   :  { %s2314_s9 = smov 0   ;;  %s2316_s10 = smov 0   ;;  %s3003_s0 = inlined_call_operand.vmem [shape: bf16[8,9,17,4], index: 0, kind: input, shape index: {}]   ;;  %s3004_s1 = inlined_call_operand.vmem [shape: bf16[36,8], index: 1, kind: input, shape index: {}]   ;;  %s3005_s2 = inlined_call_operand.vmem [shape: bf16[2,8,16,8], index: 2, kind: output, shape index: {}]  }
   0x1   :  { %s2318_s11 = smov 0  }
   0x2 LB: > { %s24_s12 = sadd.s32 1, %s2284_s10  ;;  %p1993_p0 = scmp.ge.s32.totalorder %s2288_s11, 1  ;;  %s2288_s11 = sphi %s2318_s11, %s12_s11   ;;  %s2284_s10 = sphi %s2316_s10, %s3009_s10   ;;  %s2280_s9 = sphi %s2314_s9, %s3008_s9  }
   0x3   : > { %p26_p1 = scmp.ge.s32.totalorder %s24_s12, 2  ;;  %p128_p2 = scmp.lt.s32.totalorder %s2288_s11, 3 }
   0x5   : > { %s3011_s12 = smov (%p26_p1, %s24_s12), 0  ;;  %p129_p3 = pnand %p1993_p0, %p128_p2 }
   0x6   : > { %s1994_s13 = sshll.u32 (!%p129_p3), %s2280_s9, 2  ;;  %s2290_s18 = smov (!%p129_p3), 4  }
   0x7   : > { %132 = sbr.rel (%p129_p3) target bundleno = 592 (0x250), region = 28  ;;  %p157_p4 = scmp.lt.s32.totalorder (!%p129_p3), %s1994_s13, 7 }
   0x8   : > { %s2291_s19 = smov (!%p129_p3), 8   ;;  %s2292_s20 = smov (!%p129_p3), 12  }
   0x9   : > { %s2293_s21 = smov (!%p129_p3), 16   ;;  %s2294_s22 = smov (!%p129_p3), 20  }
   0xa   : > { %s2295_s23 = smov (!%p129_p3), 24   ;;  %s2296_s24 = smov (!%p129_p3), 28  }
   0xb   : > { %s2297_s27 = smov (!%p129_p3), 32   ;;  %p164_p5 = scmp.lt.s32.totalorder (!%p129_p3), %s2280_s9, 1 }
   0xc   : > { %s3013_s13 = smov (!%p157_p4, %s1994_s13), 7  ;;  %vm336_vm0 = vsmask.f32 3328  ;;  %vm337_vm1 = vsmask.f32 7440  ;;  %vm195_vm3 = vcmask 27648  }
   0xd   : > { %s2221_s14 = smul.u32 108, %s3013_s13  ;;  %vm2367_vm2 = vmor %vm336_vm0, %vm337_vm1  ;;  %vm295_vm4 = vcmask 60448   ;;  %vm1660_vm5 = vcmask 1041408   ;;  %vm579_vm6 = vcmask 93248   ;;  %vm679_vm7 = vcmask 126048   ;;  %s3015_s9 = smov (!%p164_p5, %s2280_s9), 1 }
   0xe   : > { %vm779_vm8 = vcmask 158848   ;;  %vm1060_vm9 = vcmask 191648   ;;  %vm1161_vm10 = vcmask 224448   ;;  %vm1261_vm11 = vcmask 257248   ;;  %s2163_s4 = sshll.u32 %s3015_s9, 6 }
   0xf   : > { %s2338_s17 = scalar_lea.vmem %s3003_s0, %s2221_s14  ;;  %vm1542_vm12 = vcmask 290048   ;;  %vm1635_vm13 = vcmask 293888   ;;  %s2932_s7 = scalar_lea.vmem %s3005_s2, %s2163_s4  ;;  %vm1862_vm14 = vcmask 60416  }
  0x10   : > { %v2006_v0 = vld [vmem:[%s2338_s17 + $0x9c] sm:$0xf]  ;;  %v1998_v1 = vld [vmem:[%s2338_s17 + $0x6c] sm:$0xf]  ;;  %v2007_v2 = vld [vmem:[%s2338_s17 + $0xa0] sm:$0xf] }
  0x11   : > { %263 = vrot.lane.b32.xlu1 %v2006_v0, %s2290_s18  ;;  %247 = vrot.lane.b32.xlu0 %v1998_v1, %s2290_s18  ;;  %v1999_v3 = vld [vmem:[%s2338_s17 + $0x70] sm:$0xf]  ;;  %v313_v4 = vld [vmem:[%s2338_s17 + $0x4] sm:$0xf] }
  0x12   : > { %v314_v5 = vld [vmem:[%s2338_s17 + $0x8] sm:$0x1]  ;;  %v312_v6 = vld [vmem:[%s2338_s17] sm:$0xf]  ;;  %v2001_v7 = vld [vmem:[%s2338_s17 + $0x7c] sm:$0xf] }
  0x13   : > { %v2000_v8 = vld [vmem:[%s2338_s17 + $0x78] sm:$0xf]  ;;  %v349_v9 = vshll.u32 %v313_v4, 16  ;;  %v353_v10 = vshrl.u32 %v313_v4, 16  ;;  %v340_v11 = vshrl.u32 %v312_v6, 16  ;;  %v359_v13 = vshll.u32 %v314_v5, 16 }
  0x14   : > { %v325_v12 = vld [vmem:[%s2338_s17 + $0x34] sm:$0xf]  ;;  %v343_v14 = vshll.u32 %v312_v6, 16  ;;  %v326_v15 = vld [vmem:[%s2338_s17 + $0x38] sm:$0x1] }
  0x15   : > { %265 = vrot.lane.b32.xlu1 %v2007_v2, %s2290_s18  ;;  %249 = vrot.lane.b32.xlu0 %v1999_v3, %s2290_s18  ;;  %v445_v16 = vshll.u32 %v325_v12, 16  ;;  %v449_v17 = vshrl.u32 %v325_v12, 16  ;;  %v351_v18 = vrot.slane %v349_v9, 5  ;;  %v355_v19 = vrot.slane %v353_v10, 4  ;;  %v324_v21 = vld [vmem:[%s2338_s17 + $0x30] sm:$0xf] }
  0x16   : > { %v342_v20 = vrot.slane %v340_v11, 4  ;;  %v345_v22 = vrot.slane %v343_v14, 5  ;;  %v455_v25 = vshll.u32 %v326_v15, 16  ;;  %v316_v26 = vld [vmem:[%s2338_s17 + $0x10] sm:$0xf]  ;;  %v436_v29 = vshrl.u32 %v324_v21, 16 }
  0x17   : > { %v2356_v23 = vrot.slane %v445_v16, 5  ;;  %v451_v24 = vrot.slane %v449_v17, 4  ;;  %v2009_v27 = vld [vmem:[%s2338_s17 + $0xac] sm:$0xf]  ;;  %v356_v28 = vor.u32 %v355_v19, %v351_v18  ;;  %v439_v30 = vshll.u32 %v324_v21, 16 }
  0x18   : > { %v373_v31 = vshll.u32 %v316_v26, 16  ;;  %v2008_v32 = vld [vmem:[%s2338_s17 + $0xa8] sm:$0xf]  ;;  %v361_v33 = vrot.slane %v359_v13, 5  ;;  %v346_v34 = vor.u32 %v345_v22, %v342_v20  ;;  %v377_v36 = vshrl.u32 %v316_v26, 16 }
  0x19   : > { %253 = vrot.lane.b32.xlu1 %v2001_v7, %s2290_s18  ;;  %251 = vrot.lane.b32.xlu0 %v2000_v8, %s2290_s18  ;;  %v452_v35 = vor.u32 %v451_v24, %v2356_v23  ;;  %v315_v37 = vld [vmem:[%s2338_s17 + $0xc] sm:$0xf]  ;;  %v357_v39 = vrot.slane %v356_v28, 4  ;;  %v438_v40 = vrot.slane %v436_v29, 4  ;;  %v441_v41 = vrot.slane %v439_v30, 5 }
  0x1a   : > { %v317_v42 = vld [vmem:[%s2338_s17 + $0x14] sm:$0x1]  ;;  %v375_v43 = vrot.slane %v373_v31, 5  ;;  %v347_v44 = vrot.slane %v346_v34, 4  ;;  %v457_v45 = vrot.slane %v455_v25, 5  ;;  %v379_v46 = vrot.slane %v377_v36, 4 }
  0x1b   : > { %v328_v47 = vld [vmem:[%s2338_s17 + $0x40] sm:$0xf]  ;;  %v453_v48 = vrot.slane %v452_v35, 4  ;;  %v442_v49 = vor.u32 %v441_v41, %v438_v40  ;;  %v364_v50 = vshrl.u32 %v315_v37, 16  ;;  %v367_v51 = vshll.u32 %v315_v37, 16 }
  0x1c   : > { %v327_v52 = vld [vmem:[%s2338_s17 + $0x3c] sm:$0xf]  ;;  %v362_v53 = vsel %vm2367_vm2, %v357_v39, %v361_v33  ;;  %v352_v54 = vsel %vm2367_vm2, %v347_v44, %v351_v18  ;;  %v380_v55 = vor.u32 %v379_v46, %v375_v43  ;;  %v383_v56 = vshll.u32 %v317_v42, 16  ;;  %v329_v61 = vld [vmem:[%s2338_s17 + $0x44] sm:$0x1] }
  0x1d   : > { %269 = vrot.lane.b32.xlu1 %v2009_v27, %s2290_s18  ;;  %267 = vrot.lane.b32.xlu0 %v2008_v32, %s2290_s18  ;;  %v443_v57 = vrot.slane %v442_v49, 4  ;;  %v366_v58 = vrot.slane %v364_v50, 4  ;;  %v369_v59 = vrot.slane %v367_v51, 5  ;;  %v469_v60 = vshll.u32 %v328_v47, 16  ;;  %v2015_v21 = vld [vmem:[%s2338_s17 + $0xdc] sm:$0xf] }
  0x1e   : > { %v473_v62 = vshrl.u32 %v328_v47, 16  ;;  %v460_v63 = vshrl.u32 %v327_v52, 16  ;;  %v458_v0 = vsel %vm2367_vm2, %v453_v48, %v457_v45  ;;  %v463_v3 = vshll.u32 %v327_v52, 16  ;;  %v2014_v22 = vld [vmem:[%s2338_s17 + $0xd8] sm:$0xf] }
  0x1f   : > { %v370_v1 = vor.u32 %v369_v59, %v366_v58  ;;  %v471_v2 = vrot.slane %v469_v60, 5  ;;  %v381_v4 = vrot.slane %v380_v55, 4  ;;  %v385_v5 = vrot.slane %v383_v56, 5  ;;  %v2022_v24 = vld [vmem:[%s2338_s17 + $0x108] sm:$0xf] }
  0x20   : > { %v475_v6 = vrot.slane %v473_v62, 4  ;;  %v462_v7 = vrot.slane %v460_v63, 4  ;;  %v448_v8 = vsel %vm2367_vm2, %v443_v57, %v2356_v23  ;;  %v479_v10 = vshll.u32 %v329_v61, 16  ;;  %v2023_v23 = vld [vmem:[%s2338_s17 + $0x10c] sm:$0xf] }
  0x21   : > { %533 = vrot.lane.b32.xlu1 %v362_v53, %s2291_s19  ;;  %531 = vrot.lane.b32.xlu0 %v352_v54, %s2291_s19  ;;  %v371_v9 = vrot.slane %v370_v1, 4  ;;  %v465_v11 = vrot.slane %v463_v3, 5  ;;  %v386_v14 = vsel %vm2367_vm2, %v381_v4, %v385_v5  ;;  %v2017_v25 = vld [vmem:[%s2338_s17 + $0xe8] sm:$0xf]  ;;  %v2016_v26 = vld [vmem:[%s2338_s17 + $0xe4] sm:$0xf] }
  0x22   : > { %v476_v12 = vor.u32 %v475_v6, %v471_v2  ;;  %v481_v17 = vrot.slane %v479_v10, 5  ;;  %v2047_v27 = vld [vmem:[%s2338_s17 + $0xdc] sm:$0xf]  ;;  %v2046_v28 = vld [vmem:[%s2338_s17 + $0xd8] sm:$0xf] }
  0x23   : > { %v466_v13 = vor.u32 %v465_v11, %v462_v7  ;;  %v376_v15 = vsel %vm2367_vm2, %v371_v9, %v375_v43  ;;  %v187_v29 = vld [vmem:[%s2338_s17 + $0x30] sm:$0xf]  ;;  %v2025_v30 = vld [vmem:[%s2338_s17 + $0x118] sm:$0xf]  ;;  %v2024_v31 = vld [vmem:[%s2338_s17 + $0x114] sm:$0xf] }
  0x24   : > { %v477_v16 = vrot.slane %v476_v12, 4  ;;  %204 = vst.msk [vmem:[#allocation2 + $0x20] sm:$0xf] %vm195_vm3, %v187_v29  ;;  %v179_v32 = vld [vmem:[%s2338_s17] sm:$0xf]  ;;  %v830_v33 = vshll.u32 %v2047_v27, 16 }
  0x25   : > { %549 = vrot.lane.b32.xlu1 %v458_v0, %s2291_s19  ;;  %547 = vrot.lane.b32.xlu0 %v448_v8, %s2291_s19  ;;  %v467_v18 = vrot.slane %v466_v13, 4  ;;  %v834_v34 = vshrl.u32 %v2047_v27, 16  ;;  %196 = vst.msk [vmem:[#allocation2] sm:$0xf] %vm195_vm3, %v179_v32  ;;  %v2031_v35 = vld [vmem:[%s2338_s17 + $0x148] sm:$0xf] }
  0x26   : > { %v482_v19 = vsel %vm2367_vm2, %v477_v16, %v481_v17  ;;  %v821_v36 = vshrl.u32 %v2046_v28, 16  ;;  %v824_v37 = vshll.u32 %v2046_v28, 16  ;;  %v2059_v39 = vld [vmem:[%s2338_s17 + $0x10c] sm:$0xf]  ;;  %v188_v40 = vld [vmem:[%s2338_s17 + $0x34] sm:$0xf] }
  0x27   : > { %v472_v20 = vsel %vm2367_vm2, %v467_v18, %v471_v2  ;;  %v2030_v41 = vld [vmem:[%s2338_s17 + $0x144] sm:$0xf]  ;;  %v2058_v42 = vld [vmem:[%s2338_s17 + $0x108] sm:$0xf]  ;;  %205 = vst.msk [vmem:[#allocation2 + $0x24] sm:$0xf] %vm195_vm3, %v188_v40 }
  0x28   : > { %v180_v43 = vld [vmem:[%s2338_s17 + $0x4] sm:$0xf]  ;;  %v2048_v44 = vld [vmem:[%s2338_s17 + $0xe0] sm:$0x1]  ;;  %v2432_v45 = vrot.slane %v830_v33, 5  ;;  %v836_v46 = vrot.slane %v834_v34, 4 }
  0x29   : > { %537 = vrot.lane.b32.xlu1 %v386_v14, %s2291_s19  ;;  %535 = vrot.lane.b32.xlu0 %v376_v15, %s2291_s19  ;;  %197 = vst.msk [vmem:[#allocation2 + $0x4] sm:$0xf] %vm195_vm3, %v180_v43  ;;  %v2039_v47 = vld [vmem:[%s2338_s17 + $0x178] sm:$0xf]  ;;  %v823_v48 = vrot.slane %v821_v36, 4  ;;  %v826_v49 = vrot.slane %v824_v37, 5 }
  0x2a   : > { %v926_v50 = vshll.u32 %v2059_v39, 16  ;;  %v930_v51 = vshrl.u32 %v2059_v39, 16  ;;  %v182_v52 = vld [vmem:[%s2338_s17 + $0x10] sm:$0xf]  ;;  %v917_v53 = vshrl.u32 %v2058_v42, 16  ;;  %v920_v54 = vshll.u32 %v2058_v42, 16 }
  0x2b   : > { %v2050_v55 = vld [vmem:[%s2338_s17 + $0xe8] sm:$0xf]  ;;  %199 = vst.msk [vmem:[#allocation2 + $0xc] sm:$0xf] %vm195_vm3, %v182_v52  ;;  %v181_v56 = vld [vmem:[%s2338_s17 + $0xc] sm:$0xf]  ;;  %v837_v60 = vor.u32 %v836_v46, %v2432_v45  ;;  %v827_v63 = vor.u32 %v826_v49, %v823_v48 }
  0x2c   : > { %v2038_v57 = vld [vmem:[%s2338_s17 + $0x174] sm:$0xf]  ;;  %v2049_v58 = vld [vmem:[%s2338_s17 + $0xe4] sm:$0xf]  ;;  %198 = vst.msk [vmem:[#allocation2 + $0x8] sm:$0xf] %vm195_vm3, %v181_v56 }
  0x2d   : > { %553 = vrot.lane.b32.xlu1 %v482_v19, %s2291_s19  ;;  %551 = vrot.lane.b32.xlu0 %v472_v20, %s2291_s19  ;;  %v190_v59 = vld [vmem:[%s2338_s17 + $0x40] sm:$0xf]  ;;  %v840_v61 = vshll.u32 %v2048_v44, 16  ;;  %v189_v62 = vld [vmem:[%s2338_s17 + $0x3c] sm:$0xf]  ;;  %v928_v1 = vrot.slane %v926_v50, 5 }
  0x2e   : > { %207 = vst.msk [vmem:[#allocation2 + $0x2c] sm:$0xf] %vm195_vm3, %v190_v59  ;;  %v2060_v0 = vld [vmem:[%s2338_s17 + $0x110] sm:$0x1]  ;;  %v932_v2 = vrot.slane %v930_v51, 4  ;;  %v854_v3 = vshll.u32 %v2050_v55, 16 }
  0x2f   : > { %206 = vst.msk [vmem:[#allocation2 + $0x28] sm:$0xf] %vm195_vm3, %v189_v62  ;;  %v2033_v4 = vld [vmem:[%s2338_s17 + $0x154] sm:$0xf]  ;;  %v919_v5 = vrot.slane %v917_v53, 4  ;;  %v922_v6 = vrot.slane %v920_v54, 5 }
  0x30   : > { %v858_v7 = vshrl.u32 %v2050_v55, 16  ;;  %v845_v8 = vshrl.u32 %v2049_v58, 16  ;;  %v2032_v9 = vld [vmem:[%s2338_s17 + $0x150] sm:$0xf]  ;;  %v848_v10 = vshll.u32 %v2049_v58, 16  ;;  %v842_v12 = vrot.slane %v840_v61, 5 }
  0x31   : > { %633 = vrot.lane.b32.xlu1 %v2015_v21, %s2292_s20  ;;  %631 = vrot.lane.b32.xlu0 %v2014_v22, %s2292_s20  ;;  %v2062_v11 = vld [vmem:[%s2338_s17 + $0x118] sm:$0xf]  ;;  %v936_v13 = vshll.u32 %v2060_v0, 16  ;;  %v2061_v14 = vld [vmem:[%s2338_s17 + $0x114] sm:$0xf]  ;;  %v838_v16 = vrot.slane %v837_v60, 4  ;;  %v933_v18 = vor.u32 %v932_v2, %v928_v1  ;;  %v923_v20 = vor.u32 %v922_v6, %v919_v5 }
  0x32   : > { %v2041_v15 = vld [vmem:[%s2338_s17 + $0x184] sm:$0xf]  ;;  %v828_v17 = vrot.slane %v827_v63, 4  ;;  %v856_v19 = vrot.slane %v854_v3, 5  ;;  %v2051_v21 = vld [vmem:[%s2338_s17 + $0xec] sm:$0x1] }
  0x33   : > { %v860_v22 = vrot.slane %v858_v7, 4  ;;  %v954_v27 = vshrl.u32 %v2062_v11, 16  ;;  %v941_v28 = vshrl.u32 %v2061_v14, 16  ;;  %v944_v29 = vshll.u32 %v2061_v14, 16  ;;  %v2063_v43 = vld [vmem:[%s2338_s17 + $0x11c] sm:$0x1] }
  0x34   : > { %v938_v32 = vrot.slane %v936_v13, 5  ;;  %v864_v33 = vshll.u32 %v2051_v21, 16  ;;  %v833_v34 = vsel %vm2367_vm2, %v828_v17, %v2432_v45  ;;  %v960_v50 = vshll.u32 %v2063_v43, 16  ;;  %v2071_v59 = vld [vmem:[%s2338_s17 + $0x10] sm:$0xf] }
  0x35   : > { %649 = vrot.lane.b32.xlu1 %v2023_v23, %s2292_s20  ;;  %647 = vrot.lane.b32.xlu0 %v2022_v24, %s2292_s20  ;;  %v847_v23 = vrot.slane %v845_v8, 4  ;;  %v950_v24 = vshll.u32 %v2062_v11, 16  ;;  %v861_v36 = vor.u32 %v860_v22, %v856_v19  ;;  %v956_v40 = vrot.slane %v954_v27, 4  ;;  %v2070_v60 = vld [vmem:[%s2338_s17 + $0xc] sm:$0xf] }
  0x36   : > { %v946_v42 = vrot.slane %v944_v29, 5  ;;  %v962_v55 = vrot.slane %v960_v50, 5  ;;  %v2079_v61 = vld [vmem:[%s2338_s17 + $0x40] sm:$0xf]  ;;  %v2078_v62 = vld [vmem:[%s2338_s17 + $0x3c] sm:$0xf] }
  0x37   : > { %v952_v37 = vrot.slane %v950_v24, 5  ;;  %v862_v45 = vrot.slane %v861_v36, 4  ;;  %v2073_v63 = vld [vmem:[%s2338_s17 + $0x1c] sm:$0xf]  ;;  %v2072_v0 = vld [vmem:[%s2338_s17 + $0x18] sm:$0xf] }
  0x38   : > { %v2081_v2 = vld [vmem:[%s2338_s17 + $0x4c] sm:$0xf]  ;;  %v2080_v3 = vld [vmem:[%s2338_s17 + $0x48] sm:$0xf]  ;;  %v2087_v11 = vld [vmem:[%s2338_s17 + $0x7c] sm:$0xf] }
  0x39   : > { %637 = vrot.lane.b32.xlu1 %v2017_v25, %s2292_s20  ;;  %635 = vrot.lane.b32.xlu0 %v2016_v26, %s2292_s20  ;;  %v2040_v25 = vld [vmem:[%s2338_s17 + $0x180] sm:$0xf]  ;;  %v850_v26 = vrot.slane %v848_v10, 5  ;;  %v957_v49 = vor.u32 %v956_v40, %v952_v37  ;;  %v2114_v10 = vld [vmem:[%s2338_s17 + $0x3c] sm:$0xf] }
  0x3a   : > { %v2095_v21 = vld [vmem:[%s2338_s17 + $0xac] sm:$0xf]  ;;  %v2094_v22 = vld [vmem:[%s2338_s17 + $0xa8] sm:$0xf]  ;;  %v2116_v24 = vld [vmem:[%s2338_s17 + $0x44] sm:$0x1] }
  0x3b   : > { %v851_v39 = vor.u32 %v850_v26, %v847_v23  ;;  %v958_v54 = vrot.slane %v957_v49, 4  ;;  %v2104_v23 = vld [vmem:[%s2338_s17 + $0x14] sm:$0x1]  ;;  %v2106_v43 = vld [vmem:[%s2338_s17 + $0x1c] sm:$0xf] }
  0x3c   : > { %v2096_v36 = vld [vmem:[%s2338_s17 + $0xb4] sm:$0xf]  ;;  %v1336_v50 = vshll.u32 %v2106_v43, 16 }
  0x3d   : > { %653 = vrot.lane.b32.xlu1 %v2025_v30, %s2292_s20  ;;  %651 = vrot.lane.b32.xlu0 %v2024_v31, %s2292_s20  ;;  %v843_v30 = vsel %vm2367_vm2, %v838_v16, %v842_v12  ;;  %v934_v31 = vrot.slane %v933_v18, 4  ;;  %v852_v48 = vrot.slane %v851_v39, 4  ;;  %v2086_v12 = vld [vmem:[%s2338_s17 + $0x78] sm:$0xf]  ;;  %v1402_v16 = vshll.u32 %v2114_v10, 16 }
  0x3f   : > { %v939_v44 = vsel %vm2367_vm2, %v934_v31, %v938_v32  ;;  %v857_v53 = vsel %vm2367_vm2, %v852_v48, %v856_v19  ;;  %v2089_v32 = vld [vmem:[%s2338_s17 + $0x88] sm:$0xf] }
  0x41   : > { %733 = vrot.lane.b32.xlu1 %v2031_v35, %s2293_s21  ;;  %731 = vrot.lane.b32.xlu0 %v2030_v41, %s2293_s21  ;;  %v924_v35 = vrot.slane %v923_v20, 4  ;;  %v943_v41 = vrot.slane %v941_v28, 4  ;;  %v1404_v28 = vrot.slane %v1402_v16, 5 }
  0x43   : > { %v929_v46 = vsel %vm2367_vm2, %v924_v35, %v928_v1  ;;  %v947_v51 = vor.u32 %v946_v42, %v943_v41  ;;  %v2103_v1 = vld [vmem:[%s2338_s17 + $0x10] sm:$0xf]  ;;  %v2097_v35 = vld [vmem:[%s2338_s17 + $0xb8] sm:$0xf] }
  0x44   : > { %v1312_v5 = vshll.u32 %v2103_v1, 16  ;;  %v1316_v6 = vshrl.u32 %v2103_v1, 16 }
  0x45   : > { %749 = vrot.lane.b32.xlu1 %v2039_v47, %s2293_s21  ;;  %747 = vrot.lane.b32.xlu0 %v2038_v57, %s2293_s21  ;;  %v866_v47 = vrot.slane %v864_v33, 5  ;;  %v948_v56 = vrot.slane %v947_v51, 4  ;;  %v963_v57 = vsel %vm2367_vm2, %v958_v54, %v962_v55  ;;  %v2088_v33 = vld [vmem:[%s2338_s17 + $0x84] sm:$0xf]  ;;  %v1340_v51 = vshrl.u32 %v2106_v43, 16 }
  0x46   : > { %v1314_v17 = vrot.slane %v1312_v5, 5  ;;  %v1318_v18 = vrot.slane %v1316_v6, 4 }
  0x47   : > { %v867_v52 = vsel %vm2367_vm2, %v862_v45, %v866_v47  ;;  %v953_v58 = vsel %vm2367_vm2, %v948_v56, %v952_v37  ;;  %v183_v45 = vld [vmem:[%s2338_s17 + $0x18] sm:$0xf]  ;;  %v2118_v56 = vld [vmem:[%s2338_s17 + $0x4c] sm:$0xf] }
  0x48   : > { %v1319_v29 = vor.u32 %v1318_v18, %v1314_v17  ;;  %200 = vst.msk [vmem:[#allocation2 + $0x10] sm:$0xf] %vm195_vm3, %v183_v45  ;;  %v2119_v18 = vld [vmem:[%s2338_s17 + $0x50] sm:$0x1] }
  0x49   : > { %737 = vrot.lane.b32.xlu1 %v2033_v4, %s2293_s21  ;;  %735 = vrot.lane.b32.xlu0 %v2032_v9, %s2293_s21  ;;  %v2102_v4 = vld [vmem:[%s2338_s17 + $0xc] sm:$0xf]  ;;  %v2115_v9 = vld [vmem:[%s2338_s17 + $0x40] sm:$0xf] }
  0x4a   : > { %v1303_v7 = vshrl.u32 %v2102_v4, 16  ;;  %v1306_v8 = vshll.u32 %v2102_v4, 16  ;;  %v1408_v13 = vshll.u32 %v2115_v9, 16  ;;  %v1412_v14 = vshrl.u32 %v2115_v9, 16  ;;  %v2107_v4 = vld [vmem:[%s2338_s17 + $0x20] sm:$0x1] }
  0x4b   : > { %v1320_v40 = vrot.slane %v1319_v29, 4  ;;  %v318_v29 = vld [vmem:[%s2338_s17 + $0x18] sm:$0xf] }
  0x4c   : > { %v1305_v19 = vrot.slane %v1303_v7, 4  ;;  %v1308_v20 = vrot.slane %v1306_v8, 5  ;;  %v1414_v26 = vrot.slane %v1412_v14, 4  ;;  %v391_v43 = vshll.u32 %v318_v29, 16 }
  0x4d   : > { %753 = vrot.lane.b32.xlu1 %v2041_v15, %s2293_s21  ;;  %751 = vrot.lane.b32.xlu0 %v2040_v25, %s2293_s21  ;;  %v1399_v15 = vshrl.u32 %v2114_v10, 16  ;;  %v2518_v25 = vrot.slane %v1408_v13, 5  ;;  %v2002_v13 = vld [vmem:[%s2338_s17 + $0x84] sm:$0xf] }
  0x4e   : > { %v1309_v31 = vor.u32 %v1308_v20, %v1305_v19 }
  0x4f   : > { %v1401_v27 = vrot.slane %v1399_v15, 4  ;;  %v1415_v37 = vor.u32 %v1414_v26, %v2518_v25  ;;  %v1346_v15 = vshll.u32 %v2107_v4, 16 }
  0x50   : > { %v1310_v42 = vrot.slane %v1309_v31, 4  ;;  %v2010_v31 = vld [vmem:[%s2338_s17 + $0xb4] sm:$0xf] }
  0x51   : > { %1014 = vrot.lane.b32.xlu1 %v843_v30, %s2294_s22  ;;  %1012 = vrot.lane.b32.xlu0 %v833_v34, %s2294_s22  ;;  %v1322_v30 = vshll.u32 %v2104_v23, 16  ;;  %v1418_v34 = vshll.u32 %v2116_v24, 16  ;;  %v1405_v39 = vor.u32 %v1404_v28, %v1401_v27  ;;  %v1416_v48 = vrot.slane %v1415_v37, 4  ;;  %v319_v24 = vld [vmem:[%s2338_s17 + $0x1c] sm:$0xf] }
  0x52   : > { %v1315_v54 = vsel %vm2367_vm2, %v1310_v42, %v1314_v17  ;;  %v1348_v27 = vrot.slane %v1346_v15, 5  ;;  %v1442_v28 = vshll.u32 %v2119_v18, 16  ;;  %v388_v42 = vshrl.u32 %v318_v29, 16  ;;  %v2005_v18 = vld [vmem:[%s2338_s17 + $0x94] sm:$0xf] }
  0x53   : > { %v1324_v41 = vrot.slane %v1322_v30, 5  ;;  %v1420_v47 = vrot.slane %v1418_v34, 5  ;;  %v1406_v49 = vrot.slane %v1405_v39, 4  ;;  %v2011_v30 = vld [vmem:[%s2338_s17 + $0xb8] sm:$0xf]  ;;  %v401_v39 = vshrl.u32 %v319_v24, 16 }
  0x54   : > { %v1444_v45 = vrot.slane %v1442_v28, 5 }
  0x55   : > { %1030 = vrot.lane.b32.xlu1 %v939_v44, %s2294_s22  ;;  %1028 = vrot.lane.b32.xlu0 %v929_v46, %s2294_s22  ;;  %v2105_v44 = vld [vmem:[%s2338_s17 + $0x18] sm:$0xf]  ;;  %v184_v46 = vld [vmem:[%s2338_s17 + $0x1c] sm:$0xf] }
  0x56   : > { %201 = vst.msk [vmem:[#allocation2 + $0x14] sm:$0xf] %vm195_vm3, %v184_v46  ;;  %v1330_v55 = vshll.u32 %v2105_v44, 16 }
  0x58   : > { %v1332_v5 = vrot.slane %v1330_v55, 5 }
  0x59   : > { %1018 = vrot.lane.b32.xlu1 %v867_v52, %s2294_s22  ;;  %1016 = vrot.lane.b32.xlu0 %v857_v53, %s2294_s22  ;;  %v1327_v52 = vshrl.u32 %v2105_v44, 16  ;;  %v1325_v53 = vsel %vm2367_vm2, %v1320_v40, %v1324_v41  ;;  %v186_v40 = vld [vmem:[%s2338_s17 + $0x28] sm:$0xf]  ;;  %v185_v41 = vld [vmem:[%s2338_s17 + $0x24] sm:$0xf] }
  0x5a   : > { %v331_v44 = vld [vmem:[%s2338_s17 + $0x4c] sm:$0xf]  ;;  %203 = vst.msk [vmem:[#allocation2 + $0x1c] sm:$0xf] %vm195_vm3, %v186_v40  ;;  %202 = vst.msk [vmem:[#allocation2 + $0x18] sm:$0xf] %vm195_vm3, %v185_v41 }
  0x5b   : > { %v1329_v1 = vrot.slane %v1327_v52, 4  ;;  %v493_v55 = vshll.u32 %v331_v44, 16 }
  0x5d   : > { %1034 = vrot.lane.b32.xlu1 %v963_v57, %s2294_s22  ;;  %1032 = vrot.lane.b32.xlu0 %v953_v58, %s2294_s22  ;;  %v2117_v57 = vld [vmem:[%s2338_s17 + $0x48] sm:$0xf]  ;;  %v192_v58 = vld [vmem:[%s2338_s17 + $0x4c] sm:$0xf]  ;;  %v1333_v17 = vor.u32 %v1332_v5, %v1329_v1 }
  0x5e   : > { %209 = vst.msk [vmem:[#allocation2 + $0x34] sm:$0xf] %vm195_vm3, %v192_v58  ;;  %v1423_v6 = vshrl.u32 %v2117_v57, 16  ;;  %v1426_v7 = vshll.u32 %v2117_v57, 16  ;;  %v193_v57 = vld [vmem:[%s2338_s17 + $0x54] sm:$0xf] }
  0x5f   : > { %v320_v58 = vld [vmem:[%s2338_s17 + $0x20] sm:$0x1]  ;;  %210 = vst.msk [vmem:[#allocation2 + $0x38] sm:$0xf] %vm195_vm3, %v193_v57 }
  0x60   : > { %v1425_v20 = vrot.slane %v1423_v6, 4 }
  0x61   : > { %1115 = vrot.lane.b32.xlu1 %v2071_v59, %s2295_s23  ;;  %1113 = vrot.lane.b32.xlu0 %v2070_v60, %s2295_s23  ;;  %v191_v59 = vld [vmem:[%s2338_s17 + $0x48] sm:$0xf]  ;;  %v1421_v60 = vsel %vm2367_vm2, %v1416_v48, %v1420_v47 }
  0x62   : > { %208 = vst.msk [vmem:[#allocation2 + $0x30] sm:$0xf] %vm195_vm3, %v191_v59  ;;  %v330_v47 = vld [vmem:[%s2338_s17 + $0x48] sm:$0xf]  ;;  %v390_v59 = vrot.slane %v388_v42, 4 }
  0x65   : > { %1131 = vrot.lane.b32.xlu1 %v2079_v61, %s2295_s23  ;;  %1129 = vrot.lane.b32.xlu0 %v2078_v62, %s2295_s23  ;;  %v1411_v61 = vsel %vm2367_vm2, %v1406_v49, %v2518_v25  ;;  %v2550_v62 = vrot.slane %v1336_v50, 5  ;;  %v2259_v25 = vld [vmem:[%s3004_s1] sm:$0xff]  }
  0x69   : > { %1119 = vrot.lane.b32.xlu1 %v2073_v63, %s2295_s23  ;;  %1117 = vrot.lane.b32.xlu0 %v2072_v0, %s2295_s23  ;;  %v1342_v63 = vrot.slane %v1340_v51, 4  ;;  %v2256_v0 = vld [vmem:[%s3004_s1 + $0x10] ss:$0 sps:$4 sm:$0x33]  }
  0x6a   : > { %2219 = vmatprep.subr.msk.bf16.mxu0 %vm1660_vm5, %v2256_v0  ;;  %v1662_v8 = vsel %vm1660_vm5, %v2256_v0, 0  ;;  %2220 = vmatprep.subr.msk.bf16.mxu1 %vm1660_vm5, %v2256_v0  ;;  %v322_v0 = vld [vmem:[%s2338_s17 + $0x28] sm:$0xf] }
  0x6b   : > { %2192 = vmatpush3.bf16.msra.mxu0 %v1662_v8  ;;  %2216 = vmatpush3.bf16.msra.mxu1 %v1662_v8  ;;  %v1343_v14 = vor.u32 %v1342_v63, %v2550_v62  ;;  %v487_v63 = vshll.u32 %v330_v47, 16  ;;  %v2619_v8 = vrot.slane %v493_v55, 5  ;;  %v425_v15 = vshrl.u32 %v322_v0, 16 }
  0x6d   : > { %1135 = vrot.lane.b32.xlu1 %v2081_v2, %s2295_s23  ;;  %1133 = vrot.lane.b32.xlu0 %v2080_v3, %s2295_s23  ;;  %v1432_v2 = vshll.u32 %v2118_v56, 16  ;;  %v1436_v3 = vshrl.u32 %v2118_v56, 16  ;;  %v1344_v26 = vrot.slane %v1343_v14, 4  ;;  %v194_v56 = vld [vmem:[%s2338_s17 + $0x58] sm:$0xf]  ;;  %v489_v14 = vrot.slane %v487_v63, 5 }
  0x6e   : > { %211 = vst.msk [vmem:[#allocation2 + $0x3c] sm:$0xf] %vm195_vm3, %v194_v56 }
  0x6f   : > { %v2570_v16 = vrot.slane %v1432_v2, 5  ;;  %v1438_v19 = vrot.slane %v1436_v3, 4  ;;  %v1349_v46 = vsel %vm2367_vm2, %v1344_v26, %v1348_v27  ;;  %v321_v3 = vld [vmem:[%s2338_s17 + $0x24] sm:$0xf] }
  0x70   : > { %v2013_v26 = vld [vmem:[%s2338_s17 + $0xc4] sm:$0xf] }
  0x71   : > { %1215 = vrot.lane.b32.xlu1 %v2087_v11, %s2296_s24  ;;  %1213 = vrot.lane.b32.xlu0 %v2086_v12, %s2296_s24  ;;  %v2258_v11 = vld [vmem:[%s3004_s1 + $0x8] sm:$0xff]  }
  0x72   : > { %v2003_v12 = vld [vmem:[%s2338_s17 + $0x88] sm:$0xf]  ;;  %2193 = vmatprep.subr.bf16.mxu0 %v2258_v11  ;;  %2214 = vmatprep.subr.bf16.mxu1 %v2258_v11 }
  0x73   : > { %2194 = vmatpush3.bf16.msra.mxu0 %v2258_v11  ;;  %2217 = vmatpush3.bf16.msra.mxu1 %v2258_v11 }
  0x74   : > { %2195 = vmatprep.subr.bf16.mxu0 %v2259_v25  ;;  %2215 = vmatprep.subr.bf16.mxu1 %v2259_v25 }
  0x75   : > { %1231 = vrot.lane.b32.xlu1 %v2095_v21, %s2296_s24  ;;  %1229 = vrot.lane.b32.xlu0 %v2094_v22, %s2296_s24  ;;  %v1428_v21 = vrot.slane %v1426_v7, 5  ;;  %v407_v7 = vshll.u32 %v320_v58, 16 }
  0x77   : > { %v1429_v34 = vor.u32 %v1428_v21, %v1425_v20  ;;  %2196 = vmatpush3.bf16.msra.mxu0 %v2259_v25  ;;  %2218 = vmatpush3.bf16.msra.mxu1 %v2259_v25  ;;  %v333_v25 = vld [vmem:[%s2338_s17 + $0x54] sm:$0xf] }
  0x78   : > { %v508_v40 = vshrl.u32 %v333_v25, 16  ;;  %v511_v41 = vshll.u32 %v333_v25, 16  ;;  %v2020_v25 = vld [vmem:[%s2338_s17 + $0xfc] sm:$0xf] }
  0x79   : > { %1219 = vrot.lane.b32.xlu1 %v2089_v32, %s2296_s24  ;;  %1217 = vrot.lane.b32.xlu0 %v2088_v33, %s2296_s24  ;;  %v1334_v32 = vrot.slane %v1333_v17, 4  ;;  %v1439_v33 = vor.u32 %v1438_v19, %v2570_v16  ;;  %v1430_v50 = vrot.slane %v1429_v34, 4  ;;  %v415_v17 = vshll.u32 %v321_v3, 16  ;;  %v2004_v19 = vld [vmem:[%s2338_s17 + $0x90] sm:$0xf] }
  0x7a   : > { %v510_v56 = vrot.slane %v508_v40, 4  ;;  %v513_v57 = vrot.slane %v511_v41, 5  ;;  %v2035_v40 = vld [vmem:[%s2338_s17 + $0x160] sm:$0xf]  ;;  %v2034_v41 = vld [vmem:[%s2338_s17 + $0x15c] sm:$0xf] }
  0x7b   : > { %v1339_v48 = vsel %vm2367_vm2, %v1334_v32, %v2550_v62  ;;  %v1440_v49 = vrot.slane %v1439_v33, 4  ;;  %v484_v62 = vshrl.u32 %v330_v47, 16  ;;  %v1435_v2 = vsel %vm2367_vm2, %v1430_v50, %v2570_v16  ;;  %v323_v32 = vld [vmem:[%s2338_s17 + $0x2c] sm:$0x1] }
  0x7c   : > { %v412_v16 = vshrl.u32 %v321_v3, 16  ;;  %v427_v33 = vrot.slane %v425_v15, 4  ;;  %v431_v47 = vshll.u32 %v323_v32, 16 }
  0x7d   : > { %1235 = vrot.lane.b32.xlu1 %v2097_v35, %s2296_s24  ;;  %1233 = vrot.lane.b32.xlu0 %v2096_v36, %s2296_s24  ;;  %v397_v35 = vshll.u32 %v319_v24, 16  ;;  %v1445_v1 = vsel %vm2367_vm2, %v1440_v49, %v1444_v45  ;;  %v334_v24 = vld [vmem:[%s2338_s17 + $0x58] sm:$0xf] }
  0x7e   : > { %v414_v34 = vrot.slane %v412_v16, 4  ;;  %v2019_v16 = vld [vmem:[%s2338_s17 + $0xf4] sm:$0xf] }
  0x7f   : > { %v2600_v51 = vrot.slane %v397_v35, 5  ;;  %v417_v35 = vrot.slane %v415_v17, 5  ;;  %v2018_v17 = vld [vmem:[%s2338_s17 + $0xf0] sm:$0xf] }
  0x81   : > { %1496 = vrot.lane.b32.xlu1 %v1325_v53, %s2297_s27  ;;  %1494 = vrot.lane.b32.xlu0 %v1315_v54, %s2297_s27  ;;  %v403_v54 = vrot.slane %v401_v39, 4  ;;  %v521_v39 = vshrl.u32 %v334_v24, 16 }
  0x83   : > { %v264_v9 = vpop.permute.xlu1 %263  ;;  %v248_v10 = vpop.permute.xlu0 %247  ;;  %v404_v6 = vor.u32 %v403_v54, %v2600_v51  ;;  %v523_v55 = vrot.slane %v521_v39, 4  ;;  %v2065_v39 = vld [vmem:[%s2338_s17 + $0x124] sm:$0xf] }
  0x84   : > { %304 = vst.msk [vmem:[#allocation2 + $0x20] sm:$0xf] %vm295_vm4, %v264_v9  ;;  %296 = vst.msk [vmem:[#allocation2] sm:$0xf] %vm295_vm4, %v248_v10  ;;  %v332_v10 = vld [vmem:[%s2338_s17 + $0x50] sm:$0x1] }
  0x85   : > { %1512 = vrot.lane.b32.xlu1 %v1421_v60, %s2297_s27  ;;  %1510 = vrot.lane.b32.xlu0 %v1411_v61, %s2297_s27  ;;  %v393_v60 = vrot.slane %v391_v43, 5  ;;  %v497_v61 = vshrl.u32 %v331_v44, 16  ;;  %v405_v27 = vrot.slane %v404_v6, 4 }
  0x87   : > { %v266_v22 = vpop.permute.xlu1 %265  ;;  %v250_v23 = vpop.permute.xlu0 %249  ;;  %v394_v9 = vor.u32 %v393_v60, %v390_v59  ;;  %v499_v11 = vrot.slane %v497_v61, 4  ;;  %v433_v61 = vrot.slane %v431_v47, 5  ;;  %v2054_v47 = vld [vmem:[%s2338_s17 + $0xf8] sm:$0x1] }
  0x88   : > { %305 = vst.msk [vmem:[#allocation2 + $0x24] sm:$0xf] %vm295_vm4, %v266_v22  ;;  %297 = vst.msk [vmem:[#allocation2 + $0x4] sm:$0xf] %vm295_vm4, %v250_v23  ;;  %v409_v22 = vrot.slane %v407_v7, 5  ;;  %v503_v23 = vshll.u32 %v332_v10, 16 }
  0x89   : > { %257 = vrot.lane.b32.xlu1 %v2003_v12, %s2290_s18  ;;  %255 = vrot.lane.b32.xlu0 %v2002_v13, %s2290_s18  ;;  %v486_v12 = vrot.slane %v484_v62, 4  ;;  %v421_v13 = vshll.u32 %v322_v0, 16  ;;  %v395_v28 = vrot.slane %v394_v9, 4  ;;  %v500_v29 = vor.u32 %v499_v11, %v2619_v8 }
  0x8a   : > { %v410_v44 = vsel %vm2367_vm2, %v405_v27, %v409_v22  ;;  %v505_v45 = vrot.slane %v503_v23, 5 }
  0x8b   : > { %v254_v36 = vpop.permute.xlu1 %253  ;;  %v252_v37 = vpop.permute.xlu0 %251 }
  0x8c   : > { %299 = vst.msk [vmem:[#allocation2 + $0xc] sm:$0xf] %vm295_vm4, %v254_v36  ;;  %298 = vst.msk [vmem:[#allocation2 + $0x8] sm:$0xf] %vm295_vm4, %v252_v37  ;;  %v2012_v36 = vld [vmem:[%s2338_s17 + $0xc0] sm:$0xf] }
  0x8d   : > { %273 = vrot.lane.b32.xlu1 %v2011_v30, %s2290_s18  ;;  %271 = vrot.lane.b32.xlu0 %v2010_v31, %s2290_s18  ;;  %v2634_v30 = vrot.slane %v421_v13, 5  ;;  %v490_v31 = vor.u32 %v489_v14, %v486_v12  ;;  %v517_v37 = vshll.u32 %v334_v24, 16  ;;  %v2021_v24 = vld [vmem:[%s2338_s17 + $0x100] sm:$0xf] }
  0x8f   : > { %v270_v52 = vpop.permute.xlu1 %269  ;;  %v268_v53 = vpop.permute.xlu0 %267  ;;  %v491_v49 = vrot.slane %v490_v31, 4  ;;  %v428_v50 = vor.u32 %v427_v33, %v2634_v30  ;;  %v519_v54 = vrot.slane %v517_v37, 5  ;;  %v2028_v31 = vld [vmem:[%s2338_s17 + $0x12c] sm:$0xf] }
  0x90   : > { %307 = vst.msk [vmem:[#allocation2 + $0x2c] sm:$0xf] %vm295_vm4, %v270_v52  ;;  %306 = vst.msk [vmem:[#allocation2 + $0x28] sm:$0xf] %vm295_vm4, %v268_v53  ;;  %v418_v52 = vor.u32 %v417_v35, %v414_v34  ;;  %v335_v53 = vld [vmem:[%s2338_s17 + $0x5c] sm:$0x1] }
  0x91   : > { %1500 = vrot.lane.b32.xlu1 %v1349_v46, %s2297_s27  ;;  %1498 = vrot.lane.b32.xlu0 %v1339_v48, %s2297_s27  ;;  %v501_v46 = vrot.slane %v500_v29, 4  ;;  %v400_v48 = vsel %vm2367_vm2, %v395_v28, %v2600_v51  ;;  %v429_v60 = vrot.slane %v428_v50, 4  ;;  %v527_v62 = vshll.u32 %v335_v53, 16  ;;  %v2053_v28 = vld [vmem:[%s2338_s17 + $0xf4] sm:$0xf] }
  0x92   : > { %v496_v63 = vsel %vm2367_vm2, %v491_v49, %v2619_v8  ;;  %v419_v0 = vrot.slane %v418_v52, 4  ;;  %v2052_v29 = vld [vmem:[%s2338_s17 + $0xf0] sm:$0xf]  ;;  %v878_v34 = vshll.u32 %v2053_v28, 16  ;;  %v882_v35 = vshrl.u32 %v2053_v28, 16 }
  0x93   : > { %v534_v4 = vpop.permute.xlu1 %533  ;;  %v532_v5 = vpop.permute.xlu0 %531  ;;  %v506_v51 = vsel %vm2367_vm2, %v501_v46, %v505_v45  ;;  %v434_v6 = vsel %vm2367_vm2, %v429_v60, %v433_v61  ;;  %v872_v37 = vshll.u32 %v2052_v29, 16  ;;  %v974_v50 = vshll.u32 %v2065_v39, 16 }
  0x94   : > { %581 = vst.msk [vmem:[#allocation2 + $0x4] sm:$0xf] %vm579_vm6, %v534_v4  ;;  %580 = vst.msk [vmem:[#allocation2] sm:$0xf] %vm579_vm6, %v532_v5  ;;  %v529_v5 = vrot.slane %v527_v62, 5  ;;  %v424_v7 = vsel %vm2367_vm2, %v419_v0, %v2634_v30  ;;  %v2711_v46 = vrot.slane %v878_v34, 5 }
  0x95   : > { %1516 = vrot.lane.b32.xlu1 %v1445_v1, %s2297_s27  ;;  %1514 = vrot.lane.b32.xlu0 %v1435_v2, %s2297_s27  ;;  %v524_v1 = vor.u32 %v523_v55, %v519_v54  ;;  %v514_v2 = vor.u32 %v513_v57, %v510_v56  ;;  %v2029_v30 = vld [vmem:[%s2338_s17 + $0x130] sm:$0xf]  ;;  %v884_v45 = vrot.slane %v882_v35, 4  ;;  %v874_v49 = vrot.slane %v872_v37, 5  ;;  %v2056_v55 = vld [vmem:[%s2338_s17 + $0x100] sm:$0xf] }
  0x96   : > { %v978_v52 = vshrl.u32 %v2065_v39, 16  ;;  %v2043_v56 = vld [vmem:[%s2338_s17 + $0x190] sm:$0xf]  ;;  %v2042_v57 = vld [vmem:[%s2338_s17 + $0x18c] sm:$0xf]  ;;  %v888_v61 = vshll.u32 %v2054_v47, 16 }
  0x97   : > { %v550_v20 = vpop.permute.xlu1 %549  ;;  %v548_v21 = vpop.permute.xlu0 %547  ;;  %v525_v8 = vrot.slane %v524_v1, 4  ;;  %v515_v9 = vrot.slane %v514_v2, 4  ;;  %v885_v60 = vor.u32 %v884_v45, %v2711_v46  ;;  %v2726_v0 = vrot.slane %v974_v50, 5 }
  0x98   : > { %589 = vst.msk [vmem:[#allocation2 + $0x24] sm:$0xf] %vm579_vm6, %v550_v20  ;;  %588 = vst.msk [vmem:[#allocation2 + $0x20] sm:$0xf] %vm579_vm6, %v548_v21  ;;  %v2027_v20 = vld [vmem:[%s2338_s17 + $0x124] sm:$0xf] }
  0x99   : > { %261 = vrot.lane.b32.xlu1 %v2005_v18, %s2290_s18  ;;  %259 = vrot.lane.b32.xlu0 %v2004_v19, %s2290_s18  ;;  %v530_v12 = vsel %vm2367_vm2, %v525_v8, %v529_v5  ;;  %v520_v13 = vsel %vm2367_vm2, %v515_v9, %v519_v54  ;;  %v2026_v21 = vld [vmem:[%s2338_s17 + $0x120] sm:$0xf]  ;;  %v980_v1 = vrot.slane %v978_v52, 4  ;;  %v902_v2 = vshll.u32 %v2056_v55, 16  ;;  %v2036_v8 = vld [vmem:[%s2338_s17 + $0x168] sm:$0xf] }
  0x9b   : > { %v538_v42 = vpop.permute.xlu1 %537  ;;  %v536_v43 = vpop.permute.xlu0 %535 }
  0x9c   : > { %583 = vst.msk [vmem:[#allocation2 + $0xc] sm:$0xf] %vm579_vm6, %v538_v42  ;;  %582 = vst.msk [vmem:[#allocation2 + $0x8] sm:$0xf] %vm579_vm6, %v536_v43  ;;  %v2064_v42 = vld [vmem:[%s2338_s17 + $0x120] sm:$0xf] }
  0x9d   : > { %277 = vrot.lane.b32.xlu1 %v2013_v26, %s2290_s18  ;;  %275 = vrot.lane.b32.xlu0 %v2012_v36, %s2290_s18  ;;  %v869_v36 = vshrl.u32 %v2052_v29, 16  ;;  %v965_v53 = vshrl.u32 %v2064_v42, 16  ;;  %v968_v54 = vshll.u32 %v2064_v42, 16 }
  0x9f   : > { %v554_v58 = vpop.permute.xlu1 %553  ;;  %v552_v59 = vpop.permute.xlu0 %551  ;;  %v970_v5 = vrot.slane %v968_v54, 5 }
  0xa0   : > { %591 = vst.msk [vmem:[#allocation2 + $0x2c] sm:$0xf] %vm579_vm6, %v554_v58  ;;  %590 = vst.msk [vmem:[#allocation2 + $0x28] sm:$0xf] %vm579_vm6, %v552_v59  ;;  %v2055_v58 = vld [vmem:[%s2338_s17 + $0xfc] sm:$0xf] }
  0xa1   : > { %541 = vrot.lane.b32.xlu1 %v410_v44, %s2291_s19  ;;  %539 = vrot.lane.b32.xlu0 %v400_v48, %s2291_s19  ;;  %v871_v48 = vrot.slane %v869_v36, 4  ;;  %v896_v9 = vshll.u32 %v2055_v58, 16 }
  0xa3   : > { %v634_v3 = vpop.permute.xlu1 %633  ;;  %v632_v4 = vpop.permute.xlu0 %631  ;;  %v875_v62 = vor.u32 %v874_v49, %v871_v48  ;;  %v2069_v49 = vld [vmem:[%s2338_s17 + $0x134] sm:$0x1] }
  0xa4   : > { %681 = vst.msk [vmem:[#allocation2 + $0x4] sm:$0xf] %vm679_vm7, %v634_v3  ;;  %680 = vst.msk [vmem:[#allocation2] sm:$0xf] %vm679_vm7, %v632_v4  ;;  %v2037_v3 = vld [vmem:[%s2338_s17 + $0x16c] sm:$0xf] }
  0xa5   : > { %557 = vrot.lane.b32.xlu1 %v506_v51, %s2291_s19  ;;  %555 = vrot.lane.b32.xlu0 %v496_v63, %s2291_s19  ;;  %v2066_v63 = vld [vmem:[%s2338_s17 + $0x128] sm:$0x1]  ;;  %v967_v4 = vrot.slane %v965_v53, 4 }
  0xa7   : > { %v650_v10 = vpop.permute.xlu1 %649  ;;  %v648_v11 = vpop.permute.xlu0 %647 }
  0xa8   : > { %689 = vst.msk [vmem:[#allocation2 + $0x24] sm:$0xf] %vm679_vm7, %v650_v10  ;;  %688 = vst.msk [vmem:[#allocation2 + $0x20] sm:$0xf] %vm679_vm7, %v648_v11  ;;  %v2068_v10 = vld [vmem:[%s2338_s17 + $0x130] sm:$0xf] }
  0xa9   : > { %545 = vrot.lane.b32.xlu1 %v434_v6, %s2291_s19  ;;  %543 = vrot.lane.b32.xlu0 %v424_v7, %s2291_s19  ;;  %v906_v6 = vshrl.u32 %v2056_v55, 16  ;;  %v893_v7 = vshrl.u32 %v2055_v58, 16  ;;  %v1002_v28 = vshrl.u32 %v2068_v10, 16 }
  0xab   : > { %v638_v14 = vpop.permute.xlu1 %637  ;;  %v636_v15 = vpop.permute.xlu0 %635 }
  0xac   : > { %683 = vst.msk [vmem:[#allocation2 + $0xc] sm:$0xf] %vm679_vm7, %v638_v14  ;;  %682 = vst.msk [vmem:[#allocation2 + $0x8] sm:$0xf] %vm679_vm7, %v636_v15  ;;  %v984_v14 = vshll.u32 %v2066_v63, 16 }
  0xad   : > { %561 = vrot.lane.b32.xlu1 %v530_v12, %s2291_s19  ;;  %559 = vrot.lane.b32.xlu0 %v520_v13, %s2291_s19  ;;  %v890_v13 = vrot.slane %v888_v61, 5  ;;  %v2067_v15 = vld [vmem:[%s2338_s17 + $0x12c] sm:$0xf] }
  0xae   : > { %v989_v29 = vshrl.u32 %v2067_v15, 16  ;;  %v986_v35 = vrot.slane %v984_v14, 5  ;;  %v2077_v14 = vld [vmem:[%s2338_s17 + $0x34] sm:$0xf] }
  0xaf   : > { %v654_v18 = vpop.permute.xlu1 %653  ;;  %v652_v19 = vpop.permute.xlu0 %651 }
  0xb0   : > { %691 = vst.msk [vmem:[#allocation2 + $0x2c] sm:$0xf] %vm679_vm7, %v654_v18  ;;  %690 = vst.msk [vmem:[#allocation2 + $0x28] sm:$0xf] %vm679_vm7, %v652_v19  ;;  %v876_v18 = vrot.slane %v875_v62, 4  ;;  %v981_v19 = vor.u32 %v980_v1, %v2726_v0 }
  0xb1   : > { %641 = vrot.lane.b32.xlu1 %v2019_v16, %s2292_s20  ;;  %639 = vrot.lane.b32.xlu0 %v2018_v17, %s2292_s20  ;;  %v2045_v16 = vld [vmem:[%s2338_s17 + $0x19c] sm:$0xf]  ;;  %v886_v17 = vrot.slane %v885_v60, 4 }
  0xb2   : > { %v982_v34 = vrot.slane %v981_v19, 4  ;;  %v881_v37 = vsel %vm2367_vm2, %v876_v18, %v2711_v46  ;;  %v2109_v18 = vld [vmem:[%s2338_s17 + $0x28] sm:$0xf]  ;;  %v2108_v19 = vld [vmem:[%s2338_s17 + $0x24] sm:$0xf] }
  0xb3   : > { %v734_v22 = vpop.permute.xlu1 %733  ;;  %v732_v23 = vpop.permute.xlu0 %731 }
  0xb4   : > { %781 = vst.msk [vmem:[#allocation2 + $0x4] sm:$0xf] %vm779_vm8, %v734_v22  ;;  %780 = vst.msk [vmem:[#allocation2] sm:$0xf] %vm779_vm8, %v732_v23  ;;  %v2057_v22 = vld [vmem:[%s2338_s17 + $0x104] sm:$0x1]  ;;  %v987_v46 = vsel %vm2367_vm2, %v982_v34, %v986_v35 }
  0xb5   : > { %657 = vrot.lane.b32.xlu1 %v2027_v20, %s2292_s20  ;;  %655 = vrot.lane.b32.xlu0 %v2026_v21, %s2292_s20  ;;  %v2738_v20 = vrot.slane %v902_v2, 5  ;;  %v971_v21 = vor.u32 %v970_v5, %v967_v4  ;;  %v908_v23 = vrot.slane %v906_v6, 4  ;;  %v912_v36 = vshll.u32 %v2057_v22, 16  ;;  %v2075_v6 = vld [vmem:[%s2338_s17 + $0x28] sm:$0xf] }
  0xb7   : > { %v750_v26 = vpop.permute.xlu1 %749  ;;  %v748_v27 = vpop.permute.xlu0 %747  ;;  %v972_v39 = vrot.slane %v971_v21, 4  ;;  %v914_v53 = vrot.slane %v912_v36, 5  ;;  %v2084_v21 = vld [vmem:[%s2338_s17 + $0x60] sm:$0xf]  ;;  %v2110_v36 = vld [vmem:[%s2338_s17 + $0x2c] sm:$0x1] }
  0xb8   : > { %789 = vst.msk [vmem:[#allocation2 + $0x24] sm:$0xf] %vm779_vm8, %v750_v26  ;;  %788 = vst.msk [vmem:[#allocation2 + $0x20] sm:$0xf] %vm779_vm8, %v748_v27  ;;  %v2044_v26 = vld [vmem:[%s2338_s17 + $0x198] sm:$0xf] }
  0xb9   : > { %645 = vrot.lane.b32.xlu1 %v2021_v24, %s2292_s20  ;;  %643 = vrot.lane.b32.xlu0 %v2020_v25, %s2292_s20  ;;  %v895_v24 = vrot.slane %v893_v7, 4  ;;  %v998_v25 = vshll.u32 %v2068_v10, 16  ;;  %v898_v27 = vrot.slane %v896_v9, 5  ;;  %v977_v50 = vsel %vm2367_vm2, %v972_v39, %v2726_v0  ;;  %v2074_v7 = vld [vmem:[%s2338_s17 + $0x24] sm:$0xf] }
  0xba   : > { %v2083_v10 = vld [vmem:[%s2338_s17 + $0x58] sm:$0xf] }
  0xbb   : > { %v738_v32 = vpop.permute.xlu1 %737  ;;  %v736_v33 = vpop.permute.xlu0 %735  ;;  %v899_v42 = vor.u32 %v898_v27, %v895_v24  ;;  %v1360_v24 = vshll.u32 %v2109_v18, 16  ;;  %v1354_v27 = vshll.u32 %v2108_v19, 16 }
  0xbc   : > { %783 = vst.msk [vmem:[#allocation2 + $0xc] sm:$0xf] %vm779_vm8, %v738_v32  ;;  %782 = vst.msk [vmem:[#allocation2 + $0x8] sm:$0xf] %vm779_vm8, %v736_v33  ;;  %v891_v33 = vsel %vm2367_vm2, %v886_v17, %v890_v13 }
  0xbd   : > { %661 = vrot.lane.b32.xlu1 %v2029_v30, %s2292_s20  ;;  %659 = vrot.lane.b32.xlu0 %v2028_v31, %s2292_s20  ;;  %v992_v30 = vshll.u32 %v2067_v15, 16  ;;  %v900_v54 = vrot.slane %v899_v42, 4  ;;  %v2076_v15 = vld [vmem:[%s2338_s17 + $0x30] sm:$0xf]  ;;  %v2815_v34 = vrot.slane %v1360_v24, 5  ;;  %v1356_v39 = vrot.slane %v1354_v27, 5 }
  0xbf   : > { %v754_v43 = vpop.permute.xlu1 %753  ;;  %v752_v44 = vpop.permute.xlu0 %751  ;;  %v994_v45 = vrot.slane %v992_v30, 5  ;;  %v905_v60 = vsel %vm2367_vm2, %v900_v54, %v2738_v20  ;;  %v2090_v30 = vld [vmem:[%s2338_s17 + $0x90] sm:$0xf] }
  0xc0   : > { %791 = vst.msk [vmem:[#allocation2 + $0x2c] sm:$0xf] %vm779_vm8, %v754_v43  ;;  %790 = vst.msk [vmem:[#allocation2 + $0x28] sm:$0xf] %vm779_vm8, %v752_v44  ;;  %v1004_v43 = vrot.slane %v1002_v28, 4  ;;  %v991_v44 = vrot.slane %v989_v29, 4 }
  0xc1   : > { %741 = vrot.lane.b32.xlu1 %v2035_v40, %s2293_s21  ;;  %739 = vrot.lane.b32.xlu0 %v2034_v41, %s2293_s21  ;;  %v909_v40 = vor.u32 %v908_v23, %v2738_v20  ;;  %v1000_v41 = vrot.slane %v998_v25, 5  ;;  %v2085_v20 = vld [vmem:[%s2338_s17 + $0x64] sm:$0xf]  ;;  %v1364_v25 = vshrl.u32 %v2109_v18, 16  ;;  %v2121_v28 = vld [vmem:[%s2338_s17 + $0x58] sm:$0xf] }
  0xc2   : > { %v2091_v29 = vld [vmem:[%s2338_s17 + $0x94] sm:$0xf] }
  0xc3   : > { %v1015_v59 = vpop.permute.xlu1 %1014  ;;  %v1013_v51 = vpop.permute.xlu0 %1012  ;;  %v910_v52 = vrot.slane %v909_v40, 4  ;;  %v1005_v55 = vor.u32 %v1004_v43, %v1000_v41  ;;  %v1366_v35 = vrot.slane %v1364_v25, 4  ;;  %v1456_v40 = vshll.u32 %v2121_v28, 16 }
  0xc4   : > { %1062 = vst.msk [vmem:[#allocation2 + $0x4] sm:$0xf] %vm1060_vm9, %v1015_v59  ;;  %1061 = vst.msk [vmem:[#allocation2] sm:$0xf] %vm1060_vm9, %v1013_v51 }
  0xc5   : > { %757 = vrot.lane.b32.xlu1 %v2043_v56, %s2293_s21  ;;  %755 = vrot.lane.b32.xlu0 %v2042_v57, %s2293_s21  ;;  %v1008_v56 = vshll.u32 %v2069_v49, 16  ;;  %v995_v57 = vor.u32 %v994_v45, %v991_v44  ;;  %v915_v51 = vsel %vm2367_vm2, %v910_v52, %v914_v53  ;;  %v1006_v61 = vrot.slane %v1005_v55, 4  ;;  %v2112_v44 = vld [vmem:[%s2338_s17 + $0x34] sm:$0xf]  ;;  %v2099_v45 = vld [vmem:[%s2338_s17 + $0xc4] sm:$0xf] }
  0xc6   : > { %v1370_v52 = vshll.u32 %v2110_v36, 16  ;;  %v2093_v53 = vld [vmem:[%s2338_s17 + $0xa0] sm:$0xf]  ;;  %v2830_v55 = vrot.slane %v1456_v40, 5 }
  0xc7   : > { %v1031_v11 = vpop.permute.xlu1 %1030  ;;  %v1029_v12 = vpop.permute.xlu0 %1028  ;;  %v1010_v62 = vrot.slane %v1008_v56, 5  ;;  %v996_v63 = vrot.slane %v995_v57, 4  ;;  %v1384_v57 = vshll.u32 %v2112_v44, 16 }
  0xc8   : > { %1070 = vst.msk [vmem:[#allocation2 + $0x24] sm:$0xf] %vm1060_vm9, %v1031_v11  ;;  %1069 = vst.msk [vmem:[#allocation2 + $0x20] sm:$0xf] %vm1060_vm9, %v1029_v12  ;;  %v2082_v11 = vld [vmem:[%s2338_s17 + $0x54] sm:$0xf] }
  0xc9   : > { %745 = vrot.lane.b32.xlu1 %v2037_v3, %s2293_s21  ;;  %743 = vrot.lane.b32.xlu0 %v2036_v8, %s2293_s21  ;;  %v1011_v2 = vsel %vm2367_vm2, %v1006_v61, %v1010_v62  ;;  %v1001_v3 = vsel %vm2367_vm2, %v996_v63, %v1000_v41  ;;  %v1460_v41 = vshrl.u32 %v2121_v28, 16  ;;  %v2092_v62 = vld [vmem:[%s2338_s17 + $0x9c] sm:$0xf] }
  0xcb   : > { %v1019_v31 = vpop.permute.xlu1 %1018  ;;  %v1017_v32 = vpop.permute.xlu0 %1016  ;;  %v1462_v56 = vrot.slane %v1460_v41, 4 }
  0xcc   : > { %1064 = vst.msk [vmem:[#allocation2 + $0xc] sm:$0xf] %vm1060_vm9, %v1019_v31  ;;  %1063 = vst.msk [vmem:[#allocation2 + $0x8] sm:$0xf] %vm1060_vm9, %v1017_v32  ;;  %v2120_v31 = vld [vmem:[%s2338_s17 + $0x54] sm:$0xf] }
  0xcd   : > { %761 = vrot.lane.b32.xlu1 %v2045_v16, %s2293_s21  ;;  %759 = vrot.lane.b32.xlu0 %v2044_v26, %s2293_s21  ;;  %v1351_v26 = vshrl.u32 %v2108_v19, 16  ;;  %v1447_v42 = vshrl.u32 %v2120_v31, 16  ;;  %v1450_v43 = vshll.u32 %v2120_v31, 16 }
  0xcf   : > { %v1035_v47 = vpop.permute.xlu1 %1034  ;;  %v1033_v48 = vpop.permute.xlu0 %1032 }
  0xd0   : > { %1072 = vst.msk [vmem:[#allocation2 + $0x2c] sm:$0xf] %vm1060_vm9, %v1035_v47  ;;  %1071 = vst.msk [vmem:[#allocation2 + $0x28] sm:$0xf] %vm1060_vm9, %v1033_v48  ;;  %v2098_v47 = vld [vmem:[%s2338_s17 + $0xc0] sm:$0xf] }
  0xd1   : > { %1022 = vrot.lane.b32.xlu1 %v891_v33, %s2294_s22  ;;  %1020 = vrot.lane.b32.xlu0 %v881_v37, %s2294_s22  ;;  %v1353_v37 = vrot.slane %v1351_v26, 4  ;;  %v2111_v48 = vld [vmem:[%s2338_s17 + $0x30] sm:$0xf] }
  0xd2   : > { %v1375_v61 = vshrl.u32 %v2111_v48, 16  ;;  %v1378_v63 = vshll.u32 %v2111_v48, 16 }
  0xd3   : > { %v1116_v58 = vpop.permute.xlu1 %1115  ;;  %v1114_v59 = vpop.permute.xlu0 %1113  ;;  %v1357_v54 = vor.u32 %v1356_v39, %v1353_v37 }
  0xd4   : > { %1163 = vst.msk [vmem:[#allocation2 + $0x4] sm:$0xf] %vm1161_vm10, %v1116_v58  ;;  %1162 = vst.msk [vmem:[#allocation2] sm:$0xf] %vm1161_vm10, %v1114_v59  ;;  %v2122_v58 = vld [vmem:[%s2338_s17 + $0x5c] sm:$0x1] }
  0xd5   : > { %1038 = vrot.lane.b32.xlu1 %v987_v46, %s2294_s22  ;;  %1036 = vrot.lane.b32.xlu0 %v977_v50, %s2294_s22  ;;  %v1367_v50 = vor.u32 %v1366_v35, %v2815_v34  ;;  %v1449_v59 = vrot.slane %v1447_v42, 4 }
  0xd7   : > { %v1132_v0 = vpop.permute.xlu1 %1131  ;;  %v1130_v1 = vpop.permute.xlu0 %1129 }
  0xd8   : > { %1171 = vst.msk [vmem:[#allocation2 + $0x24] sm:$0xf] %vm1161_vm10, %v1132_v0  ;;  %1170 = vst.msk [vmem:[#allocation2 + $0x20] sm:$0xf] %vm1161_vm10, %v1130_v1  ;;  %v2124_v0 = vld [vmem:[%s2338_s17 + $0x64] sm:$0xf] }
  0xd9   : > { %1026 = vrot.lane.b32.xlu1 %v915_v51, %s2294_s22  ;;  %1024 = vrot.lane.b32.xlu0 %v905_v60, %s2294_s22  ;;  %v1452_v51 = vrot.slane %v1450_v43, 5  ;;  %v1388_v60 = vshrl.u32 %v2112_v44, 16  ;;  %v1484_v18 = vshrl.u32 %v2124_v0, 16 }
  0xdb   : > { %v1120_v4 = vpop.permute.xlu1 %1119  ;;  %v1118_v5 = vpop.permute.xlu0 %1117  ;;  %v1486_v35 = vrot.slane %v1484_v18, 4 }
  0xdc   : > { %1165 = vst.msk [vmem:[#allocation2 + $0xc] sm:$0xf] %vm1161_vm10, %v1120_v4  ;;  %1164 = vst.msk [vmem:[#allocation2 + $0x8] sm:$0xf] %vm1161_vm10, %v1118_v5  ;;  %v1372_v4 = vrot.slane %v1370_v52, 5 }
  0xdd   : > { %1042 = vrot.lane.b32.xlu1 %v1011_v2, %s2294_s22  ;;  %1040 = vrot.lane.b32.xlu0 %v1001_v3, %s2294_s22  ;;  %v1368_v3 = vrot.slane %v1367_v50, 4  ;;  %v2123_v5 = vld [vmem:[%s2338_s17 + $0x60] sm:$0xf] }
  0xde   : > { %v1471_v19 = vshrl.u32 %v2123_v5, 16 }
  0xdf   : > { %v1136_v8 = vpop.permute.xlu1 %1135  ;;  %v1134_v9 = vpop.permute.xlu0 %1133  ;;  %v1373_v24 = vsel %vm2367_vm2, %v1368_v3, %v1372_v4 }
  0xe0   : > { %1173 = vst.msk [vmem:[#allocation2 + $0x2c] sm:$0xf] %vm1161_vm10, %v1136_v8  ;;  %1172 = vst.msk [vmem:[#allocation2 + $0x28] sm:$0xf] %vm1161_vm10, %v1134_v9  ;;  %v1463_v8 = vor.u32 %v1462_v56, %v2830_v55  ;;  %v1466_v9 = vshll.u32 %v2122_v58, 16  ;;  %v1473_v36 = vrot.slane %v1471_v19, 4 }
  0xe1   : > { %1123 = vrot.lane.b32.xlu1 %v2075_v6, %s2295_s23  ;;  %1121 = vrot.lane.b32.xlu0 %v2074_v7, %s2295_s23  ;;  %v2101_v6 = vld [vmem:[%s2338_s17 + $0xd0] sm:$0xf]  ;;  %v1358_v7 = vrot.slane %v1357_v54, 4 }
  0xe2   : > { %v1464_v26 = vrot.slane %v1463_v8, 4  ;;  %v1468_v27 = vrot.slane %v1466_v9, 5 }
  0xe3   : > { %v1216_v12 = vpop.permute.xlu1 %1215  ;;  %v1214_v13 = vpop.permute.xlu0 %1213  ;;  %v1363_v25 = vsel %vm2367_vm2, %v1358_v7, %v2815_v34 }
  0xe4   : > { %1263 = vst.msk [vmem:[#allocation2 + $0x4] sm:$0xf] %vm1261_vm11, %v1216_v12  ;;  %1262 = vst.msk [vmem:[#allocation2] sm:$0xf] %vm1261_vm11, %v1214_v13  ;;  %v1453_v12 = vor.u32 %v1452_v51, %v1449_v59  ;;  %v1390_v13 = vrot.slane %v1388_v60, 4  ;;  %v1469_v41 = vsel %vm2367_vm2, %v1464_v26, %v1468_v27 }
  0xe5   : > { %1139 = vrot.lane.b32.xlu1 %v2083_v10, %s2295_s23  ;;  %1137 = vrot.lane.b32.xlu0 %v2082_v11, %s2295_s23  ;;  %v2842_v10 = vrot.slane %v1384_v57, 5  ;;  %v2100_v11 = vld [vmem:[%s2338_s17 + $0xcc] sm:$0xf] }
  0xe6   : > { %v1454_v28 = vrot.slane %v1453_v12, 4 }
  0xe7   : > { %v1232_v16 = vpop.permute.xlu1 %1231  ;;  %v1230_v17 = vpop.permute.xlu0 %1229 }
  0xe8   : > { %1271 = vst.msk [vmem:[#allocation2 + $0x24] sm:$0xf] %vm1261_vm11, %v1232_v16  ;;  %1270 = vst.msk [vmem:[#allocation2 + $0x20] sm:$0xf] %vm1261_vm11, %v1230_v17  ;;  %v2113_v16 = vld [vmem:[%s2338_s17 + $0x38] sm:$0x1] }
  0xe9   : > { %1127 = vrot.lane.b32.xlu1 %v2077_v14, %s2295_s23  ;;  %1125 = vrot.lane.b32.xlu0 %v2076_v15, %s2295_s23  ;;  %v1377_v14 = vrot.slane %v1375_v61, 4  ;;  %v1480_v15 = vshll.u32 %v2124_v0, 16  ;;  %v1380_v17 = vrot.slane %v1378_v63, 5 }
  0xeb   : > { %v1220_v22 = vpop.permute.xlu1 %1219  ;;  %v1218_v23 = vpop.permute.xlu0 %1217  ;;  %v1482_v31 = vrot.slane %v1480_v15, 5 }
  0xec   : > { %1265 = vst.msk [vmem:[#allocation2 + $0xc] sm:$0xf] %vm1261_vm11, %v1220_v22  ;;  %1264 = vst.msk [vmem:[#allocation2 + $0x8] sm:$0xf] %vm1261_vm11, %v1218_v23 }
  0xed   : > { %1143 = vrot.lane.b32.xlu1 %v2085_v20, %s2295_s23  ;;  %1141 = vrot.lane.b32.xlu0 %v2084_v21, %s2295_s23  ;;  %v1474_v20 = vshll.u32 %v2123_v5, 16  ;;  %v1487_v48 = vor.u32 %v1486_v35, %v1482_v31 }
  0xef   : > { %v1236_v32 = vpop.permute.xlu1 %1235  ;;  %v1234_v33 = vpop.permute.xlu0 %1233  ;;  %v1476_v37 = vrot.slane %v1474_v20, 5 }
  0xf0   : > { %1273 = vst.msk [vmem:[#allocation2 + $0x2c] sm:$0xf] %vm1261_vm11, %v1236_v32  ;;  %1272 = vst.msk [vmem:[#allocation2 + $0x28] sm:$0xf] %vm1261_vm11, %v1234_v33  ;;  %v1381_v32 = vor.u32 %v1380_v17, %v1377_v14  ;;  %v2125_v33 = vld [vmem:[%s2338_s17 + $0x68] sm:$0x1] }
  0xf1   : > { %1223 = vrot.lane.b32.xlu1 %v2091_v29, %s2296_s24  ;;  %1221 = vrot.lane.b32.xlu0 %v2090_v30, %s2296_s24  ;;  %v1391_v29 = vor.u32 %v1390_v13, %v2842_v10  ;;  %v1394_v30 = vshll.u32 %v2113_v16, 16  ;;  %v1490_v44 = vshll.u32 %v2125_v33, 16  ;;  %v2298_v33 = vmov 0.0|0.0  }
  0xf2   : > { %1864 = vst.msk [vmem:[%s2932_s7 + $0x4] sm:$0xf] %vm1862_vm14, %v2298_v33  ;;  %1866 = vst.msk [vmem:[%s2932_s7 + $0xc] sm:$0xf] %vm1862_vm14, %v2298_v33 }
  0xf3   : > { %v1497_v49 = vpop.permute.xlu1 %1496  ;;  %v1495_v46 = vpop.permute.xlu0 %1494  ;;  %v1392_v42 = vrot.slane %v1391_v29, 4  ;;  %v1396_v43 = vrot.slane %v1394_v30, 5  ;;  %v1492_v52 = vrot.slane %v1490_v44, 5  ;;  %1868 = vst.msk [vmem:[%s2932_s7 + $0x14] sm:$0xf] %vm1862_vm14, %v2298_v33 }
  0xf4   : > { %1544 = vst.msk [vmem:[#allocation2 + $0x4] sm:$0xf] %vm1542_vm12, %v1497_v49  ;;  %1543 = vst.msk [vmem:[#allocation2] sm:$0xf] %vm1542_vm12, %v1495_v46  ;;  %v1477_v49 = vor.u32 %v1476_v37, %v1473_v36 }
  0xf5   : > { %1239 = vrot.lane.b32.xlu1 %v2099_v45, %s2296_s24  ;;  %1237 = vrot.lane.b32.xlu0 %v2098_v47, %s2296_s24  ;;  %v1459_v45 = vsel %vm2367_vm2, %v1454_v28, %v2830_v55  ;;  %v1382_v47 = vrot.slane %v1381_v32, 4  ;;  %v1488_v55 = vrot.slane %v1487_v48, 4  ;;  %1870 = vst.msk [vmem:[%s2932_s7 + $0x1c] sm:$0xf] %vm1862_vm14, %v2298_v33  ;;  %1872 = vst.msk [vmem:[%s2932_s7 + $0x24] sm:$0xf] %vm1862_vm14, %v2298_v33 }
  0xf6   : > { %v1478_v56 = vrot.slane %v1477_v49, 4  ;;  %1874 = vst.msk [vmem:[%s2932_s7 + $0x2c] sm:$0xf] %vm1862_vm14, %v2298_v33  ;;  %1876 = vst.msk [vmem:[%s2932_s7 + $0x34] sm:$0xf] %vm1862_vm14, %v2298_v33 }
  0xf7   : > { %v1513_v1 = vpop.permute.xlu1 %1512  ;;  %v1511_v2 = vpop.permute.xlu0 %1510  ;;  %v1387_v54 = vsel %vm2367_vm2, %v1382_v47, %v2842_v10  ;;  %v1493_v59 = vsel %vm2367_vm2, %v1488_v55, %v1492_v52  ;;  %1878 = vst.msk [vmem:[%s2932_s7 + $0x3c] sm:$0xf] %vm1862_vm14, %v2298_v33 }
  0xf8   : > { %1552 = vst.msk [vmem:[#allocation2 + $0x24] sm:$0xf] %vm1542_vm12, %v1513_v1  ;;  %1551 = vst.msk [vmem:[#allocation2 + $0x20] sm:$0xf] %vm1542_vm12, %v1511_v2  ;;  %v1483_v51 = vsel %vm2367_vm2, %v1478_v56, %v1482_v31 }
  0xf9   : > { %1227 = vrot.lane.b32.xlu1 %v2093_v53, %s2296_s24  ;;  %1225 = vrot.lane.b32.xlu0 %v2092_v62, %s2296_s24  ;;  %v1397_v53 = vsel %vm2367_vm2, %v1392_v42, %v1396_v43 }
  0xfb   : > { %v258_v21 = vpop.permute.xlu1 %257  ;;  %v256_v22 = vpop.permute.xlu0 %255  ;;  %v2255_v23 = vld [vmem:[#allocation2] sm:$0xff]  }
  0xfc   : > { %301 = vst.msk [vmem:[#allocation2 + $0x14] sm:$0xf] %vm295_vm4, %v258_v21  ;;  %300 = vst.msk [vmem:[#allocation2 + $0x10] sm:$0xf] %vm295_vm4, %v256_v22  ;;  %2197 = vmatprep.mubr.msk.bf16.mxu0 %vm1635_vm13, %v2255_v23 }
  0xfd   : > { %1243 = vrot.lane.b32.xlu1 %v2101_v6, %s2296_s24  ;;  %1241 = vrot.lane.b32.xlu0 %v2100_v11, %s2296_s24 }
  0xff   : > { %v274_v39 = vpop.permute.xlu1 %273  ;;  %v272_v34 = vpop.permute.xlu0 %271  ;;  %v2257_v40 = vld [vmem:[#allocation2 + $0x20] sm:$0xff]  }
 0x100   : > { %309 = vst.msk [vmem:[#allocation2 + $0x34] sm:$0xf] %vm295_vm4, %v274_v39  ;;  %308 = vst.msk [vmem:[#allocation2 + $0x30] sm:$0xf] %vm295_vm4, %v272_v34  ;;  %2205 = vmatprep.mubr.msk.bf16.mxu1 %vm1635_vm13, %v2257_v40 }
 0x101   : > { %1504 = vrot.lane.b32.xlu1 %v1373_v24, %s2297_s27  ;;  %1502 = vrot.lane.b32.xlu0 %v1363_v25, %s2297_s27 }
 0x103   : > { %v1501_v46 = vpop.permute.xlu1 %1500  ;;  %v1499_v50 = vpop.permute.xlu0 %1498 }
 0x104   : > { %1546 = vst.msk [vmem:[#allocation2 + $0xc] sm:$0xf] %vm1542_vm12, %v1501_v46  ;;  %1545 = vst.msk [vmem:[#allocation2 + $0x8] sm:$0xf] %vm1542_vm12, %v1499_v50 }
 0x105   : > { %1520 = vrot.lane.b32.xlu1 %v1469_v41, %s2297_s27  ;;  %1518 = vrot.lane.b32.xlu0 %v1459_v45, %s2297_s27 }
 0x107   : > { %v1517_v57 = vpop.permute.xlu1 %1516  ;;  %v1515_v58 = vpop.permute.xlu0 %1514 }
 0x108   : > { %1554 = vst.msk [vmem:[#allocation2 + $0x2c] sm:$0xf] %vm1542_vm12, %v1517_v57  ;;  %1553 = vst.msk [vmem:[#allocation2 + $0x28] sm:$0xf] %vm1542_vm12, %v1515_v58 }
 0x109   : > { %1508 = vrot.lane.b32.xlu1 %v1397_v53, %s2297_s27  ;;  %1506 = vrot.lane.b32.xlu0 %v1387_v54, %s2297_s27 }
 0x10b   : > { %v262_v60 = vpop.permute.xlu1 %261  ;;  %v260_v61 = vpop.permute.xlu0 %259  ;;  %v2260_v62 = vld [vmem:[#allocation2 + $0x8] sm:$0xff]  }
 0x10c   : > { %303 = vst.msk [vmem:[#allocation2 + $0x1c] sm:$0xf] %vm295_vm4, %v262_v60  ;;  %302 = vst.msk [vmem:[#allocation2 + $0x18] sm:$0xf] %vm295_vm4, %v260_v61  ;;  %2198 = vmatmul.mubr.msk.bf16.vlgmr.msra.gmra.mxu0 %vm1635_vm13, %v2260_v62 }
 0x10d   : > { %1524 = vrot.lane.b32.xlu1 %v1493_v59, %s2297_s27  ;;  %1522 = vrot.lane.b32.xlu0 %v1483_v51, %s2297_s27 }
 0x10f   : > { %v278_v63 = vpop.permute.xlu1 %277  ;;  %v276_v0 = vpop.permute.xlu0 %275  ;;  %v2261_v1 = vld [vmem:[#allocation2 + $0x28] sm:$0xff]  }
 0x110   : > { %311 = vst.msk [vmem:[#allocation2 + $0x3c] sm:$0xf] %vm295_vm4, %v278_v63  ;;  %310 = vst.msk [vmem:[#allocation2 + $0x38] sm:$0xf] %vm295_vm4, %v276_v0  ;;  %2206 = vmatmul.mubr.msk.bf16.vlgmr.msra.gmra.mxu1 %vm1635_vm13, %v2261_v1 }
 0x113   : > { %v542_v38 = vpop.permute.xlu1 %541  ;;  %v540_v2 = vpop.permute.xlu0 %539 }
 0x114   : > { %585 = vst.msk [vmem:[#allocation2 + $0x14] sm:$0xf] %vm579_vm6, %v542_v38  ;;  %584 = vst.msk [vmem:[#allocation2 + $0x10] sm:$0xf] %vm579_vm6, %v540_v2 }
 0x117   : > { %v558_v3 = vpop.permute.xlu1 %557  ;;  %v556_v4 = vpop.permute.xlu0 %555 }
 0x118   : > { %593 = vst.msk [vmem:[#allocation2 + $0x34] sm:$0xf] %vm579_vm6, %v558_v3  ;;  %592 = vst.msk [vmem:[#allocation2 + $0x30] sm:$0xf] %vm579_vm6, %v556_v4 }
 0x11b   : > { %v546_v5 = vpop.permute.xlu1 %545  ;;  %v544_v6 = vpop.permute.xlu0 %543 }
 0x11c   : > { %587 = vst.msk [vmem:[#allocation2 + $0x1c] sm:$0xf] %vm579_vm6, %v546_v5  ;;  %586 = vst.msk [vmem:[#allocation2 + $0x18] sm:$0xf] %vm579_vm6, %v544_v6 }
 0x11f   : > { %v562_v7 = vpop.permute.xlu1 %561  ;;  %v560_v8 = vpop.permute.xlu0 %559 }
 0x120   : > { %595 = vst.msk [vmem:[#allocation2 + $0x3c] sm:$0xf] %vm579_vm6, %v562_v7  ;;  %594 = vst.msk [vmem:[#allocation2 + $0x38] sm:$0xf] %vm579_vm6, %v560_v8 }
 0x123   : > { %v642_v9 = vpop.permute.xlu1 %641  ;;  %v640_v10 = vpop.permute.xlu0 %639 }
 0x124   : > { %685 = vst.msk [vmem:[#allocation2 + $0x14] sm:$0xf] %vm679_vm7, %v642_v9  ;;  %684 = vst.msk [vmem:[#allocation2 + $0x10] sm:$0xf] %vm679_vm7, %v640_v10 }
 0x127   : > { %v658_v11 = vpop.permute.xlu1 %657  ;;  %v656_v12 = vpop.permute.xlu0 %655 }
 0x128   : > { %693 = vst.msk [vmem:[#allocation2 + $0x34] sm:$0xf] %vm679_vm7, %v658_v11  ;;  %692 = vst.msk [vmem:[#allocation2 + $0x30] sm:$0xf] %vm679_vm7, %v656_v12 }
 0x12b   : > { %v646_v13 = vpop.permute.xlu1 %645  ;;  %v644_v14 = vpop.permute.xlu0 %643 }
 0x12c   : > { %687 = vst.msk [vmem:[#allocation2 + $0x1c] sm:$0xf] %vm679_vm7, %v646_v13  ;;  %686 = vst.msk [vmem:[#allocation2 + $0x18] sm:$0xf] %vm679_vm7, %v644_v14 }
 0x12f   : > { %v662_v15 = vpop.permute.xlu1 %661  ;;  %v660_v16 = vpop.permute.xlu0 %659 }
 0x130   : > { %695 = vst.msk [vmem:[#allocation2 + $0x3c] sm:$0xf] %vm679_vm7, %v662_v15  ;;  %694 = vst.msk [vmem:[#allocation2 + $0x38] sm:$0xf] %vm679_vm7, %v660_v16 }
 0x133   : > { %v742_v17 = vpop.permute.xlu1 %741  ;;  %v740_v18 = vpop.permute.xlu0 %739 }
 0x134   : > { %785 = vst.msk [vmem:[#allocation2 + $0x14] sm:$0xf] %vm779_vm8, %v742_v17  ;;  %784 = vst.msk [vmem:[#allocation2 + $0x10] sm:$0xf] %vm779_vm8, %v740_v18 }
 0x137   : > { %v758_v19 = vpop.permute.xlu1 %757  ;;  %v756_v20 = vpop.permute.xlu0 %755 }
 0x138   : > { %793 = vst.msk [vmem:[#allocation2 + $0x34] sm:$0xf] %vm779_vm8, %v758_v19  ;;  %792 = vst.msk [vmem:[#allocation2 + $0x30] sm:$0xf] %vm779_vm8, %v756_v20 }
 0x13b   : > { %v746_v21 = vpop.permute.xlu1 %745  ;;  %v744_v22 = vpop.permute.xlu0 %743 }
 0x13c   : > { %787 = vst.msk [vmem:[#allocation2 + $0x1c] sm:$0xf] %vm779_vm8, %v746_v21  ;;  %786 = vst.msk [vmem:[#allocation2 + $0x18] sm:$0xf] %vm779_vm8, %v744_v22 }
 0x13f   : > { %v762_v23 = vpop.permute.xlu1 %761  ;;  %v760_v24 = vpop.permute.xlu0 %759 }
 0x140   : > { %795 = vst.msk [vmem:[#allocation2 + $0x3c] sm:$0xf] %vm779_vm8, %v762_v23  ;;  %794 = vst.msk [vmem:[#allocation2 + $0x38] sm:$0xf] %vm779_vm8, %v760_v24 }
 0x143   : > { %v1023_v25 = vpop.permute.xlu1 %1022  ;;  %v1021_v26 = vpop.permute.xlu0 %1020 }
 0x144   : > { %1066 = vst.msk [vmem:[#allocation2 + $0x14] sm:$0xf] %vm1060_vm9, %v1023_v25  ;;  %1065 = vst.msk [vmem:[#allocation2 + $0x10] sm:$0xf] %vm1060_vm9, %v1021_v26 }
 0x147   : > { %v1039_v27 = vpop.permute.xlu1 %1038  ;;  %v1037_v28 = vpop.permute.xlu0 %1036 }
 0x148   : > { %1074 = vst.msk [vmem:[#allocation2 + $0x34] sm:$0xf] %vm1060_vm9, %v1039_v27  ;;  %1073 = vst.msk [vmem:[#allocation2 + $0x30] sm:$0xf] %vm1060_vm9, %v1037_v28 }
 0x14b   : > { %v1027_v29 = vpop.permute.xlu1 %1026  ;;  %v1025_v30 = vpop.permute.xlu0 %1024 }
 0x14c   : > { %1068 = vst.msk [vmem:[#allocation2 + $0x1c] sm:$0xf] %vm1060_vm9, %v1027_v29  ;;  %1067 = vst.msk [vmem:[#allocation2 + $0x18] sm:$0xf] %vm1060_vm9, %v1025_v30 }
 0x14f   : > { %v1043_v31 = vpop.permute.xlu1 %1042  ;;  %v1041_v32 = vpop.permute.xlu0 %1040 }
 0x150   : > { %1076 = vst.msk [vmem:[#allocation2 + $0x3c] sm:$0xf] %vm1060_vm9, %v1043_v31  ;;  %1075 = vst.msk [vmem:[#allocation2 + $0x38] sm:$0xf] %vm1060_vm9, %v1041_v32 }
 0x153   : > { %v1124_v35 = vpop.permute.xlu1 %1123  ;;  %v1122_v36 = vpop.permute.xlu0 %1121 }
 0x154   : > { %1167 = vst.msk [vmem:[#allocation2 + $0x14] sm:$0xf] %vm1161_vm10, %v1124_v35  ;;  %1166 = vst.msk [vmem:[#allocation2 + $0x10] sm:$0xf] %vm1161_vm10, %v1122_v36 }
 0x157   : > { %v1140_v37 = vpop.permute.xlu1 %1139  ;;  %v1138_v39 = vpop.permute.xlu0 %1137 }
 0x158   : > { %1175 = vst.msk [vmem:[#allocation2 + $0x34] sm:$0xf] %vm1161_vm10, %v1140_v37  ;;  %1174 = vst.msk [vmem:[#allocation2 + $0x30] sm:$0xf] %vm1161_vm10, %v1138_v39 }
 0x15b   : > { %v1128_v34 = vpop.permute.xlu1 %1127  ;;  %v1126_v40 = vpop.permute.xlu0 %1125 }
 0x15c   : > { %1169 = vst.msk [vmem:[#allocation2 + $0x1c] sm:$0xf] %vm1161_vm10, %v1128_v34  ;;  %1168 = vst.msk [vmem:[#allocation2 + $0x18] sm:$0xf] %vm1161_vm10, %v1126_v40 }
 0x15f   : > { %v1144_v41 = vpop.permute.xlu1 %1143  ;;  %v1142_v42 = vpop.permute.xlu0 %1141 }
 0x160   : > { %1177 = vst.msk [vmem:[#allocation2 + $0x3c] sm:$0xf] %vm1161_vm10, %v1144_v41  ;;  %1176 = vst.msk [vmem:[#allocation2 + $0x38] sm:$0xf] %vm1161_vm10, %v1142_v42 }
 0x163   : > { %v1224_v43 = vpop.permute.xlu1 %1223  ;;  %v1222_v44 = vpop.permute.xlu0 %1221 }
 0x164   : > { %1267 = vst.msk [vmem:[#allocation2 + $0x14] sm:$0xf] %vm1261_vm11, %v1224_v43  ;;  %1266 = vst.msk [vmem:[#allocation2 + $0x10] sm:$0xf] %vm1261_vm11, %v1222_v44 }
 0x167   : > { %v1240_v45 = vpop.permute.xlu1 %1239  ;;  %v1238_v47 = vpop.permute.xlu0 %1237 }
 0x168   : > { %1275 = vst.msk [vmem:[#allocation2 + $0x34] sm:$0xf] %vm1261_vm11, %v1240_v45  ;;  %1274 = vst.msk [vmem:[#allocation2 + $0x30] sm:$0xf] %vm1261_vm11, %v1238_v47 }
 0x16b   : > { %v1228_v48 = vpop.permute.xlu1 %1227  ;;  %v1226_v49 = vpop.permute.xlu0 %1225 }
 0x16c   : > { %1269 = vst.msk [vmem:[#allocation2 + $0x1c] sm:$0xf] %vm1261_vm11, %v1228_v48  ;;  %1268 = vst.msk [vmem:[#allocation2 + $0x18] sm:$0xf] %vm1261_vm11, %v1226_v49 }
 0x16f   : > { %v1244_v46 = vpop.permute.xlu1 %1243  ;;  %v1242_v50 = vpop.permute.xlu0 %1241 }
 0x170   : > { %1277 = vst.msk [vmem:[#allocation2 + $0x3c] sm:$0xf] %vm1261_vm11, %v1244_v46  ;;  %1276 = vst.msk [vmem:[#allocation2 + $0x38] sm:$0xf] %vm1261_vm11, %v1242_v50 }
 0x173   : > { %v1505_v52 = vpop.permute.xlu1 %1504  ;;  %v1503_v53 = vpop.permute.xlu0 %1502 }
 0x174   : > { %1548 = vst.msk [vmem:[#allocation2 + $0x14] sm:$0xf] %vm1542_vm12, %v1505_v52  ;;  %1547 = vst.msk [vmem:[#allocation2 + $0x10] sm:$0xf] %vm1542_vm12, %v1503_v53 }
 0x177   : > { %v1521_v54 = vpop.permute.xlu1 %1520  ;;  %v1519_v55 = vpop.permute.xlu0 %1518 }
 0x178   : > { %1556 = vst.msk [vmem:[#allocation2 + $0x34] sm:$0xf] %vm1542_vm12, %v1521_v54  ;;  %1555 = vst.msk [vmem:[#allocation2 + $0x30] sm:$0xf] %vm1542_vm12, %v1519_v55 }
 0x17b   : > { %v1509_v56 = vpop.permute.xlu1 %1508  ;;  %v1507_v57 = vpop.permute.xlu0 %1506  ;;  %v2262_v58 = vld [vmem:[#allocation2 + $0x10] sm:$0xff]  }
 0x17c   : > { %1550 = vst.msk [vmem:[#allocation2 + $0x1c] sm:$0xf] %vm1542_vm12, %v1509_v56  ;;  %1549 = vst.msk [vmem:[#allocation2 + $0x18] sm:$0xf] %vm1542_vm12, %v1507_v57  ;;  %2201 = vmatprep.mubr.msk.bf16.mxu0 %vm1635_vm13, %v2262_v58 }
 0x17f   : > { %v1525_v59 = vpop.permute.xlu1 %1524  ;;  %v1523_v51 = vpop.permute.xlu0 %1522  ;;  %v2263_v60 = vld [vmem:[#allocation2 + $0x30] sm:$0xff]  }
 0x180   : > { %1558 = vst.msk [vmem:[#allocation2 + $0x3c] sm:$0xf] %vm1542_vm12, %v1525_v59  ;;  %1557 = vst.msk [vmem:[#allocation2 + $0x38] sm:$0xf] %vm1542_vm12, %v1523_v51  ;;  %2209 = vmatprep.mubr.msk.bf16.mxu1 %vm1635_vm13, %v2263_v60 }
 0x183   : > { %v2264_v61 = vld [vmem:[#allocation2 + $0x18] sm:$0xff]  }
 0x184   : > { %2202 = vmatmul.mubr.msk.bf16.gmra.mxu0 %vm1635_vm13, %v2264_v61 }
 0x187   : > { %v2265_v62 = vld [vmem:[#allocation2 + $0x38] sm:$0xff]  }
 0x188   : > { %2210 = vmatmul.mubr.msk.bf16.gmra.mxu1 %vm1635_vm13, %v2265_v62 }
 0x1cc   : > { %v2199_v63 = vpop.f32.mrf.mxu0 }
 0x1cd   : > { %v1763_v0 = vmax.f32 %v2199_v63, 0.0 }
 0x1ce   : > { %v1698_v1 = vpop.f32.mrf.mxu0 }
 0x1cf   : > { %v2166_v38 = vpack.c.bf16 %v1763_v0, %v1763_v0  ;;  %v1761_v2 = vmax.f32 %v1698_v1, 0.0 }
 0x1d0   : > { %v2207_v3 = vpop.f32.mrf.mxu1  ;;  %v2200_v4 = vpop.f32.mrf.mxu0 }
 0x1d1   : > { %v1771_v5 = vmax.f32 %v2207_v3, 0.0  ;;  %1865 = vst.msk [vmem:[%s2932_s7 + $0x8] sm:$0xf] %vm1862_vm14, %v2166_v38  ;;  %v2164_v6 = vpack.c.bf16 %v1761_v2, %v1761_v2 }
 0x1d2   : > { %v1730_v7 = vpop.f32.mrf.mxu1  ;;  %v1701_v9 = vpop.f32.mrf.mxu0 }
 0x1d3   : > { %v2174_v8 = vpack.c.bf16 %v1771_v5, %v1771_v5  ;;  %v1769_v10 = vmax.f32 %v1730_v7, 0.0  ;;  %1863 = vst.msk [vmem:[%s2932_s7] sm:$0xf] %vm1862_vm14, %v2164_v6 }
 0x1d4   : > { %v2208_v11 = vpop.f32.mrf.mxu1 }
 0x1d5   : > { %1873 = vst.msk [vmem:[%s2932_s7 + $0x28] sm:$0xf] %vm1862_vm14, %v2174_v8  ;;  %v2172_v12 = vpack.c.bf16 %v1769_v10, %v1769_v10 }
 0x1d6   : > { %v1733_v13 = vpop.f32.mrf.mxu1 }
 0x1d7   : > { %1871 = vst.msk [vmem:[%s2932_s7 + $0x20] sm:$0xf] %vm1862_vm14, %v2172_v12 }
 0x244   : > { %v2203_v14 = vpop.f32.mrf.mxu0 }
 0x245   : > { %v1767_v15 = vmax.f32 %v2203_v14, 0.0 }
 0x246   : > { %v1714_v16 = vpop.f32.mrf.mxu0 }
 0x247   : > { %v2170_v17 = vpack.c.bf16 %v1767_v15, %v1767_v15  ;;  %v1765_v18 = vmax.f32 %v1714_v16, 0.0 }
 0x248   : > { %v2204_v19 = vpop.f32.mrf.mxu0  ;;  %v2211_v20 = vpop.f32.mrf.mxu1 }
 0x249   : > { %1869 = vst.msk [vmem:[%s2932_s7 + $0x18] sm:$0xf] %vm1862_vm14, %v2170_v17  ;;  %v2168_v21 = vpack.c.bf16 %v1765_v18, %v1765_v18  ;;  %v1775_v22 = vmax.f32 %v2211_v20, 0.0 }
 0x24a   : > { %v1717_v23 = vpop.f32.mrf.mxu0  ;;  %v1746_v24 = vpop.f32.mrf.mxu1 }
 0x24b   : > { %1867 = vst.msk [vmem:[%s2932_s7 + $0x10] sm:$0xf] %vm1862_vm14, %v2168_v21  ;;  %v2178_v25 = vpack.c.bf16 %v1775_v22, %v1775_v22  ;;  %v1773_v26 = vmax.f32 %v1746_v24, 0.0 }
 0x24c   : > { %v2212_v27 = vpop.f32.mrf.mxu1 }
 0x24d   : > { %1877 = vst.msk [vmem:[%s2932_s7 + $0x38] sm:$0xf] %vm1862_vm14, %v2178_v25  ;;  %v2176_v28 = vpack.c.bf16 %v1773_v26, %v1773_v26 }
 0x24e   : > { %v1749_v29 = vpop.f32.mrf.mxu1 }
 0x24f   : > { %1875 = vst.msk [vmem:[%s2932_s7 + $0x30] sm:$0xf] %vm1862_vm14, %v2176_v28 }
 0x250 PF: > { %s12_s11 = sadd.s32 1, %s2288_s11   ;;  %s3008_s9 = smov %s2284_s10 }
 0x251   : > { %p9_p6 = scmp.ge.s32.totalorder %s12_s11, 4   ;;  %s3009_s10 = smov %s3011_s12 }
 0x253   :  { %11 = sbr.rel (!%p9_p6) target bundleno = 2 (0x2), region = 64 }

// kernel: basic_block_forward.3
= control target key start
LH: loop header
LB: loop body
LE: loop exit
PB: predicated region body
PF: predicated region fallthrough
CT: control target
= control target key end

     0   :  { %s3212_s15 = smov 0   ;;  %s3214_s16 = smov 0   ;;  %s4208_s0 = inlined_call_operand.vmem [shape: bf16[2,10,18,8], index: 0, kind: input, shape index: {}]   ;;  %s4209_s1 = inlined_call_operand.vmem [shape: bf16[72,8], index: 1, kind: input, shape index: {}]   ;;  %s4210_s2 = inlined_call_operand.vmem [shape: bf16[8,9,17,4], index: 2, kind: input, shape index: {}]   ;;  %s4211_s3 = inlined_call_operand.vmem [shape: bf16[4,8], index: 3, kind: input, shape index: {}]   ;;  %s4212_s4 = inlined_call_operand.vmem [shape: f32[2,8,16,8], index: 4, kind: output, shape index: {}]  }
   0x1   :  { %s3216_s17 = smov 0   ;;  %s3218_s18 = smov 0  }
   0x2   :  { %s3220_s19 = smov 0  }
   0x3 LB: > { %s26_s20 = sadd.s32 1, %s3164_s18  ;;  %s2719_s21 = sshll.u32 %s3164_s18, 2  ;;  %s3168_s19 = sphi %s3220_s19, %s14_s19   ;;  %s3164_s18 = sphi %s3218_s18, %s4222_s18   ;;  %s3160_s17 = sphi %s3216_s17, %s4221_s17   ;;  %s3156_s16 = sphi %s3214_s16, %s4220_s16   ;;  %s3152_s15 = sphi %s3212_s15, %s4219_s15  }
   0x4   : > { %p28_p0 = scmp.ge.s32.totalorder %s26_s20, 2  ;;  %p93_p1 = scmp.ne.s32.totalorder %s3156_s16, %s3152_s15 }
   0x5   : > { %s78_s22 = sadd.s32 3, %s2719_s21  ;;  %p94_p2 = scmp.eq.s32.totalorder %s3168_s19, 0 }
   0x6   : > { %s4224_s20 = smov (%p28_p0, %s26_s20), 0  ;;  %s86_s26 = sadd.s32 1, %s3156_s16 }
   0x7   : > { %s2720_s23 = sshll.u32 %s4224_s20, 2  ;;  %p95_p3 = por %p94_p2, %p93_p1 }
   0x8   : > { %s80_s24 = sadd.s32 3, %s2720_s23  ;;  %p2722_p5 = scmp.ge.s32.totalorder %s3168_s19, 2 }
   0x9   : > { %s81_s25 = ssub.s32 %s78_s22, %s80_s24 }
   0xa   : > { %p84_p4 = scmp.eq.s32.totalorder %s81_s25, 0  ;;  %174 = sbr.rel (%p2722_p5) target bundleno = 38 (0x26), region = 24 }
   0xc   : > { %s3247_s27 = scalar_select %p84_p4, %s3156_s16, %s86_s26  }
   0xf   : > { %185 = sbr.rel (!%p95_p3) target bundleno = 38 (0x26), region = 32  ;;  %s187_s28 = sand.u32 (%p95_p3), 1, %s3156_s16  }
  0x10   : > { %s2726_s29 = smul.u32 (%p95_p3), 432, %s3164_s18  ;;  %s2723_s30 = sshll.u32 (%p95_p3), %s187_s28, 6 }
  0x11   : > { %s3258_s9 = scalar_lea.vmem (%p95_p3), [#allocation3], %s2723_s30   ;;  %s3264_s11 = smov (%p95_p3), 0  }
  0x12   : > { %s3255_s7 = scalar_lea.vmem (%p95_p3), %s4210_s2, %s2726_s29 }
  0x13   : > { %s2570_s8 = scalar_lea.vmem (%p95_p3), %s3255_s7, 324  }
  0x14   : > { %s4213_s10 = smov %s2570_s8 }
  0x15 LB: >> { %v223_v0 = vld [vmem:[%s3172_s10] sm:$0xf]  ;;  %v225_v1 = vld [vmem:[%s3172_s10 + $0xc] sm:$0xf]  ;;  %v227_v2 = vld [vmem:[%s3172_s10 + $0x18] sm:$0xf]  ;;  %s3176_s11 = sphi %s3264_s11, %s217_s11   ;;  %s3172_s10 = sphi %s4213_s10, %s4214_s10  }
  0x16   : >> { %224 = vst [vmem:[%s3258_s9] sm:$0xf] %v223_v0  ;;  %226 = vst [vmem:[%s3258_s9 + $0x8] sm:$0xf] %v225_v1  ;;  %v229_v3 = vld [vmem:[%s3172_s10 + $0x24] sm:$0xf]  ;;  %s217_s11 = sadd.s32 1, %s3176_s11  }
  0x17   : >> { %228 = vst [vmem:[%s3258_s9 + $0x10] sm:$0xf] %v227_v2  ;;  %v231_v4 = vld [vmem:[%s3172_s10 + $0x30] sm:$0xf]  ;;  %v233_v5 = vld [vmem:[%s3172_s10 + $0x3c] sm:$0xf] }
  0x18   : >> { %230 = vst [vmem:[%s3258_s9 + $0x18] sm:$0xf] %v229_v3  ;;  %232 = vst [vmem:[%s3258_s9 + $0x20] sm:$0xf] %v231_v4  ;;  %v235_v6 = vld [vmem:[%s3172_s10 + $0x48] sm:$0xf] }
  0x19   : >> { %234 = vst [vmem:[%s3258_s9 + $0x28] sm:$0xf] %v233_v5  ;;  %v237_v7 = vld [vmem:[%s3172_s10 + $0x54] sm:$0xf]  ;;  %v239_v8 = vld [vmem:[%s3172_s10 + $0x4] sm:$0xf] }
  0x1a   : >> { %236 = vst [vmem:[%s3258_s9 + $0x30] sm:$0xf] %v235_v6  ;;  %238 = vst [vmem:[%s3258_s9 + $0x38] sm:$0xf] %v237_v7  ;;  %v241_v9 = vld [vmem:[%s3172_s10 + $0x10] sm:$0xf] }
  0x1b   : >> { %240 = vst [vmem:[%s3258_s9 + $0x4] sm:$0xf] %v239_v8  ;;  %v243_v10 = vld [vmem:[%s3172_s10 + $0x1c] sm:$0xf]  ;;  %v245_v11 = vld [vmem:[%s3172_s10 + $0x28] sm:$0xf] }
  0x1c   : >> { %242 = vst [vmem:[%s3258_s9 + $0xc] sm:$0xf] %v241_v9  ;;  %244 = vst [vmem:[%s3258_s9 + $0x14] sm:$0xf] %v243_v10  ;;  %v247_v12 = vld [vmem:[%s3172_s10 + $0x34] sm:$0xf] }
  0x1d   : >> { %246 = vst [vmem:[%s3258_s9 + $0x1c] sm:$0xf] %v245_v11  ;;  %v249_v13 = vld [vmem:[%s3172_s10 + $0x40] sm:$0xf]  ;;  %v251_v14 = vld [vmem:[%s3172_s10 + $0x4c] sm:$0xf] }
  0x1e   : >> { %248 = vst [vmem:[%s3258_s9 + $0x24] sm:$0xf] %v247_v12  ;;  %250 = vst [vmem:[%s3258_s9 + $0x2c] sm:$0xf] %v249_v13  ;;  %v253_v15 = vld [vmem:[%s3172_s10 + $0x58] sm:$0xf]  ;;  %s4214_s10 = smov %s2570_s8 }
  0x1f   : >> { %252 = vst [vmem:[%s3258_s9 + $0x34] sm:$0xf] %v251_v14  ;;  %254 = vst [vmem:[%s3258_s9 + $0x3c] sm:$0xf] %v253_v15  ;;  %p216_p6 = scmp.ge.s32.totalorder %s217_s11, 1 }
  0x21   : > { %219 = sbr.rel (!%p216_p6) target bundleno = 21 (0x15), region = 153 }
  0x26 PF: > { %p2735_p7 = scmp.ge.s32.totalorder %s3168_s19, 1  ;;  %p411_p8 = scmp.lt.s32.totalorder %s3168_s19, 3 }
  0x28   : > { %p412_p9 = pnand %p2735_p7, %p411_p8 }
  0x29   : > { %p453_p10 = scmp.lt.s32.totalorder (!%p412_p9), %s3160_s17, 1  ;;  %s3178_s22 = smov (!%p412_p9), 24  }
  0x2a   : > { %415 = sbr.rel (%p412_p9) target bundleno = 630 (0x276), region = 94  ;;  %s3179_s23 = smov (!%p412_p9), 16  }
  0x2b   : > { %s3180_s24 = smov (!%p412_p9), 8   ;;  %s3181_s25 = smov (!%p412_p9), 32  }
  0x2c   : > { %s3182_s26 = smov (!%p412_p9), 40   ;;  %s3183_s28 = smov (!%p412_p9), 48  }
  0x2d   : > { %s3184_s29 = smov (!%p412_p9), 56   ;;  %s3185_s30 = smov (!%p412_p9), 64  }
  0x2e   : > { %s418_s5 = sand.u32 (!%p412_p9), 1, %s3152_s15  }
  0x2f   : > { %s4226_s17 = smov (!%p453_p10, %s3160_s17), 1  ;;  %vm847_vm0 = vcmask 1042432   ;;  %vm848_vm1 = vcmask 1046532   ;;  %vm539_vm3 = vsmask.f32 3328  ;;  %vm498_vm6 = vcmask 60416  }
  0x30   : > { %s3011_s12 = smul.u32 120, %s4226_s17  ;;  %vm3323_vm2 = vmor %vm847_vm0, %vm848_vm1  ;;  %vm540_vm4 = vsmask.f32 7440  ;;  %s3536_s9 = sshll.u32 %s418_s5, 6  ;;  %vm2373_vm7 = vcmask 1043456   ;;  %vm2180_vm8 = vcmask 1041408  }
  0x31   : > { %vm3357_vm5 = vmor %vm539_vm3, %vm540_vm4  ;;  %s3573_s14 = scalar_lea.vmem [#allocation3], %s3536_s9  ;;  %vm2155_vm9 = vcmask 31744   ;;  %vm782_vm10 = vcmask 126016   ;;  %vm954_vm11 = vcmask 191616   ;;  %vm1055_vm12 = vcmask 257216  }
  0x32   : > { %s3321_s21 = scalar_lea.vmem %s4208_s0, %s3011_s12  ;;  %vm1336_vm13 = vcmask 322816   ;;  %vm1505_vm14 = vcmask 388416   ;;  %vm1606_vm15 = vcmask 454016   ;;  %vm1887_vm0 = vcmask 519616  }
  0x33   : > { %v2753_v17 = vld [vmem:[%s3321_s21 + $0x28] sm:$0xf]  ;;  %v805_v18 = vld [vmem:[%s3321_s21 + $0x18] sm:$0xe]  ;;  %v806_v19 = vld [vmem:[%s3321_s21 + $0x1c] sm:$0xf] }
  0x34   : > { %1017 = vrot.lane.b32.xlu1 %v2753_v17, %s3178_s22  ;;  %v2742_v20 = vrot.slane %v805_v18, 9  ;;  %v866_v21 = vrot.slane %v806_v19, 5  ;;  %v807_v22 = vld [vmem:[%s3321_s21 + $0x20] sm:$0x1]  ;;  %v808_v23 = vld [vmem:[%s3321_s21 + $0x24] sm:$0xe] }
  0x35   : > { %v869_v24 = vrot.slane %v807_v22, 5  ;;  %v809_v25 = vld [vmem:[%s3321_s21 + $0x28] sm:$0xf]  ;;  %v2743_v26 = vrot.slane %v808_v23, 9  ;;  %v810_v27 = vld [vmem:[%s3321_s21 + $0x2c] sm:$0x1] }
  0x36   : > { %v867_v28 = vsel %vm3323_vm2, %v2742_v20, %v866_v21  ;;  %v868_v29 = vrot.slane %v866_v21, 4  ;;  %v873_v30 = vrot.slane %v809_v25, 5  ;;  %v876_v31 = vrot.slane %v810_v27, 5  ;;  %v524_v32 = vld [vmem:[%s3321_s21 + $0x24] sm:$0xf] }
  0x37   : > { %914 = vrot.lane.b32.xlu0 %v867_v28, %s3179_s23  ;;  %v525_v33 = vld [vmem:[%s3321_s21 + $0x28] sm:$0xf]  ;;  %v521_v34 = vld [vmem:[%s3321_s21 + $0x18] sm:$0xf]  ;;  %v615_v38 = vshrl.u32 %v524_v32, 16  ;;  %v618_v40 = vshll.u32 %v524_v32, 16 }
  0x38   : > { %v870_v35 = vsel %vm3323_vm2, %v868_v29, %v869_v24  ;;  %v874_v36 = vsel %vm3323_vm2, %v2743_v26, %v873_v30  ;;  %v875_v37 = vrot.slane %v873_v30, 4  ;;  %v522_v39 = vld [vmem:[%s3321_s21 + $0x1c] sm:$0xf]  ;;  %v624_v41 = vshll.u32 %v525_v33, 16  ;;  %v526_v44 = vld [vmem:[%s3321_s21 + $0x2c] sm:$0x1] }
  0x39   : > { %916 = vrot.lane.b32.xlu1 %v870_v35, %s3179_s23  ;;  %v628_v42 = vshrl.u32 %v525_v33, 16  ;;  %v591_v43 = vshrl.u32 %v521_v34, 16  ;;  %v617_v46 = vrot.slane %v615_v38, 4  ;;  %v594_v47 = vshll.u32 %v521_v34, 16  ;;  %v523_v49 = vld [vmem:[%s3321_s21 + $0x20] sm:$0x1] }
  0x3a   : > { %v877_v45 = vsel %vm3323_vm2, %v875_v37, %v876_v31  ;;  %v600_v48 = vshll.u32 %v522_v39, 16  ;;  %v2752_v50 = vld [vmem:[%s3321_s21 + $0x24] sm:$0xf]  ;;  %v620_v51 = vrot.slane %v618_v40, 5  ;;  %v626_v52 = vrot.slane %v624_v41, 5 }
  0x3b   : > { %918 = vrot.lane.b32.xlu0 %v874_v36, %s3179_s23  ;;  %v593_v53 = vrot.slane %v591_v43, 4  ;;  %v604_v54 = vshrl.u32 %v522_v39, 16  ;;  %v596_v55 = vrot.slane %v594_v47, 5  ;;  %v630_v57 = vrot.slane %v628_v42, 4  ;;  %v2771_v59 = vld [vmem:[%s3321_s21 + $0x28] sm:$0xf] }
  0x3c   : > { %v602_v56 = vrot.slane %v600_v48, 5  ;;  %v634_v58 = vshll.u32 %v526_v44, 16  ;;  %v621_v60 = vor.u32 %v620_v51, %v617_v46  ;;  %v610_v62 = vshll.u32 %v523_v49, 16  ;;  %v2770_v5 = vld [vmem:[%s3321_s21 + $0x24] sm:$0xf] }
  0x3d   : > { %920 = vrot.lane.b32.xlu1 %v877_v45, %s3179_s23  ;;  %v606_v61 = vrot.slane %v604_v54, 4  ;;  %v1154_v63 = vshll.u32 %v2771_v59, 16  ;;  %v597_v1 = vor.u32 %v596_v55, %v593_v53  ;;  %v631_v2 = vor.u32 %v630_v57, %v626_v52  ;;  %v2772_v8 = vld [vmem:[%s3321_s21 + $0x2c] sm:$0x1]  ;;  %v2774_v14 = vld [vmem:[%s3321_s21 + $0x34] sm:$0xf] }
  0x3e   : > { %v636_v3 = vrot.slane %v634_v58, 5  ;;  %v1158_v4 = vshrl.u32 %v2771_v59, 16  ;;  %v622_v6 = vrot.slane %v621_v60, 4  ;;  %v612_v12 = vrot.slane %v610_v62, 5  ;;  %v2773_v20 = vld [vmem:[%s3321_s21 + $0x30] sm:$0xf] }
  0x3f   : > { %1015 = vrot.lane.b32.xlu0 %v2752_v50, %s3178_s22  ;;  %v607_v7 = vor.u32 %v606_v61, %v602_v56  ;;  %v1156_v9 = vrot.slane %v1154_v63, 5  ;;  %v598_v10 = vrot.slane %v597_v1, 4  ;;  %v632_v11 = vrot.slane %v631_v2, 4  ;;  %v2775_v29 = vld [vmem:[%s3321_s21 + $0x38] sm:$0x1] }
  0x40   : > { %v1160_v13 = vrot.slane %v1158_v4, 4  ;;  %v627_v15 = vsel %vm3357_vm5, %v622_v6, %v626_v52  ;;  %v1145_v18 = vshrl.u32 %v2770_v5, 16  ;;  %v1148_v19 = vshll.u32 %v2770_v5, 16  ;;  %v2755_v37 = vld [vmem:[%s3321_s21 + $0x34] sm:$0xf] }
  0x41   : > { %v608_v17 = vrot.slane %v607_v7, 4  ;;  %746 = vrot.lane.b32.xlu1 %v627_v15, %s3180_s24  ;;  %v603_v21 = vsel %vm3357_vm5, %v598_v10, %v602_v56  ;;  %v637_v22 = vsel %vm3357_vm5, %v632_v11, %v636_v3  ;;  %v1164_v23 = vshll.u32 %v2772_v8, 16  ;;  %v2754_v42 = vld [vmem:[%s3321_s21 + $0x30] sm:$0xf]  ;;  %v2795_v45 = vld [vmem:[%s3321_s21 + $0x28] sm:$0xf] }
  0x42   : > { %v1161_v24 = vor.u32 %v1160_v13, %v1156_v9  ;;  %v1147_v25 = vrot.slane %v1145_v18, 4  ;;  %v1150_v26 = vrot.slane %v1148_v19, 5  ;;  %v1178_v27 = vshll.u32 %v2774_v14, 16  ;;  %v2798_v51 = vld [vmem:[%s3321_s21 + $0x34] sm:$0xf] }
  0x43   : > { %742 = vrot.lane.b32.xlu0 %v603_v21, %s3180_s24  ;;  %v613_v28 = vsel %vm3357_vm5, %v608_v17, %v612_v12  ;;  %v1182_v30 = vshrl.u32 %v2774_v14, 16  ;;  %v1169_v31 = vshrl.u32 %v2773_v20, 16  ;;  %v1172_v34 = vshll.u32 %v2773_v20, 16  ;;  %v2796_v54 = vld [vmem:[%s3321_s21 + $0x2c] sm:$0x1] }
  0x44   : > { %v1151_v32 = vor.u32 %v1150_v26, %v1147_v25  ;;  %v1180_v33 = vrot.slane %v1178_v27, 5  ;;  %v1162_v38 = vrot.slane %v1161_v24, 4  ;;  %v1166_v39 = vrot.slane %v1164_v23, 5  ;;  %v2794_v55 = vld [vmem:[%s3321_s21 + $0x24] sm:$0xe] }
  0x45   : > { %748 = vrot.lane.b32.xlu1 %v637_v22, %s3180_s24  ;;  %v1184_v35 = vrot.slane %v1182_v30, 4  ;;  %v1171_v36 = vrot.slane %v1169_v31, 4  ;;  %v1188_v40 = vshll.u32 %v2775_v29, 16  ;;  %v1174_v41 = vrot.slane %v1172_v34, 5  ;;  %v2799_v60 = vld [vmem:[%s3321_s21 + $0x38] sm:$0x1] }
  0x46   : > { %v1152_v43 = vrot.slane %v1151_v32, 4  ;;  %v1167_v47 = vsel %vm3357_vm5, %v1162_v38, %v1166_v39  ;;  %v1417_v50 = vrot.slane %v2795_v45, 5  ;;  %v1424_v56 = vrot.slane %v2798_v51, 5  ;;  %v2797_v61 = vld [vmem:[%s3321_s21 + $0x30] sm:$0xe] }
  0x47   : > { %744 = vrot.lane.b32.xlu0 %v613_v28, %s3180_s24  ;;  %v1185_v44 = vor.u32 %v1184_v35, %v1180_v33  ;;  %v1175_v46 = vor.u32 %v1174_v41, %v1171_v36  ;;  %v1190_v49 = vrot.slane %v1188_v40, 5  ;;  %v1420_v59 = vrot.slane %v2796_v54, 5  ;;  %v2843_v1 = vld [vmem:[%s3321_s21 + $0x34] sm:$0xf]  ;;  %v2842_v2 = vld [vmem:[%s3321_s21 + $0x30] sm:$0xf] }
  0x48   : > { %v1157_v52 = vsel %vm3357_vm5, %v1152_v43, %v1156_v9  ;;  %v1419_v58 = vrot.slane %v1417_v50, 4  ;;  %v2814_v63 = vrot.slane %v2794_v55, 9  ;;  %v1426_v3 = vrot.slane %v1424_v56, 4  ;;  %v2846_v12 = vld [vmem:[%s3321_s21 + $0x40] sm:$0xf] }
  0x49   : > { %1021 = vrot.lane.b32.xlu1 %v2755_v37, %s3178_s22  ;;  %v1186_v48 = vrot.slane %v1185_v44, 4  ;;  %v1176_v53 = vrot.slane %v1175_v46, 4  ;;  %v1427_v4 = vrot.slane %v2799_v60, 5  ;;  %v2815_v5 = vrot.slane %v2797_v61, 9  ;;  %v2845_v13 = vld [vmem:[%s3321_s21 + $0x3c] sm:$0xf] }
  0x4a   : > { %v1421_v6 = vsel %vm3323_vm2, %v1419_v58, %v1420_v59  ;;  %v1705_v7 = vshll.u32 %v2843_v1, 16  ;;  %v1709_v8 = vshrl.u32 %v2843_v1, 16  ;;  %v1418_v9 = vsel %vm3323_vm2, %v2814_v63, %v1417_v50  ;;  %v2844_v17 = vld [vmem:[%s3321_s21 + $0x38] sm:$0x1]  ;;  %v2825_v27 = vld [vmem:[%s3321_s21 + $0x34] sm:$0xf] }
  0x4b   : > { %1019 = vrot.lane.b32.xlu0 %v2754_v42, %s3178_s22  ;;  %v1191_v57 = vsel %vm3357_vm5, %v1186_v48, %v1190_v49  ;;  %v1181_v62 = vsel %vm3357_vm5, %v1176_v53, %v1180_v33  ;;  %v1696_v10 = vshrl.u32 %v2842_v2, 16  ;;  %v1699_v11 = vshll.u32 %v2842_v2, 16  ;;  %v2847_v29 = vld [vmem:[%s3321_s21 + $0x44] sm:$0x1]  ;;  %v2824_v32 = vld [vmem:[%s3321_s21 + $0x30] sm:$0xf] }
  0x4c   : > { %v1428_v14 = vsel %vm3323_vm2, %v1426_v3, %v1427_v4  ;;  %v1425_v15 = vsel %vm3323_vm2, %v2815_v5, %v1424_v56  ;;  %v1707_v18 = vrot.slane %v1705_v7, 5  ;;  %v1711_v19 = vrot.slane %v1709_v8, 4  ;;  %v528_v36 = vld [vmem:[%s3321_s21 + $0x34] sm:$0xf]  ;;  %v527_v37 = vld [vmem:[%s3321_s21 + $0x30] sm:$0xf] }
  0x4d   : > { %1298 = vrot.lane.b32.xlu1 %v1167_v47, %s3181_s25  ;;  %v1729_v20 = vshll.u32 %v2846_v12, 16  ;;  %v1733_v21 = vshrl.u32 %v2846_v12, 16  ;;  %v1698_v22 = vrot.slane %v1696_v10, 4  ;;  %v1701_v23 = vrot.slane %v1699_v11, 5  ;;  %v2827_v38 = vld [vmem:[%s3321_s21 + $0x40] sm:$0xf] }
  0x4e   : > { %v1720_v24 = vshrl.u32 %v2845_v13, 16  ;;  %v1723_v25 = vshll.u32 %v2845_v13, 16  ;;  %v1715_v26 = vshll.u32 %v2844_v17, 16  ;;  %v1712_v28 = vor.u32 %v1711_v19, %v1707_v18  ;;  %v2867_v43 = vld [vmem:[%s3321_s21 + $0x34] sm:$0xf] }
  0x4f   : > { %1296 = vrot.lane.b32.xlu0 %v1157_v52, %s3181_s25  ;;  %v1731_v30 = vrot.slane %v1729_v20, 5  ;;  %v1735_v31 = vrot.slane %v1733_v21, 4  ;;  %v1702_v33 = vor.u32 %v1701_v23, %v1698_v22  ;;  %v1739_v40 = vshll.u32 %v2847_v29, 16  ;;  %v2826_v46 = vld [vmem:[%s3321_s21 + $0x3c] sm:$0xf] }
  0x50   : > { %v1722_v34 = vrot.slane %v1720_v24, 4  ;;  %v1725_v35 = vrot.slane %v1723_v25, 5  ;;  %v1717_v39 = vrot.slane %v1715_v26, 5  ;;  %v1713_v41 = vrot.slane %v1712_v28, 4  ;;  %v2868_v52 = vld [vmem:[%s3321_s21 + $0x38] sm:$0x1] }
  0x51   : > { %1302 = vrot.lane.b32.xlu1 %v1191_v57, %s3181_s25  ;;  %v1736_v42 = vor.u32 %v1735_v31, %v1731_v30  ;;  %v648_v44 = vshll.u32 %v528_v36, 16  ;;  %v652_v45 = vshrl.u32 %v528_v36, 16  ;;  %v1703_v47 = vrot.slane %v1702_v33, 4  ;;  %v2866_v54 = vld [vmem:[%s3321_s21 + $0x30] sm:$0xe] }
  0x52   : > { %v1726_v48 = vor.u32 %v1725_v35, %v1722_v34  ;;  %v639_v49 = vshrl.u32 %v527_v37, 16  ;;  %v642_v50 = vshll.u32 %v527_v37, 16  ;;  %v1741_v51 = vrot.slane %v1739_v40, 5  ;;  %v529_v57 = vld [vmem:[%s3321_s21 + $0x38] sm:$0x1] }
  0x53   : > { %1300 = vrot.lane.b32.xlu0 %v1181_v62, %s3181_s25  ;;  %v1968_v53 = vrot.slane %v2867_v43, 5  ;;  %v1718_v55 = vsel %vm3357_vm5, %v1713_v41, %v1717_v39  ;;  %v1737_v56 = vrot.slane %v1736_v42, 4  ;;  %v650_v58 = vrot.slane %v648_v44, 5  ;;  %v531_v1 = vld [vmem:[%s3321_s21 + $0x40] sm:$0xf] }
  0x54   : > { %v654_v59 = vrot.slane %v652_v45, 4  ;;  %v1708_v60 = vsel %vm3357_vm5, %v1703_v47, %v1707_v18  ;;  %v1727_v61 = vrot.slane %v1726_v48, 4  ;;  %v641_v62 = vrot.slane %v639_v49, 4  ;;  %v530_v2 = vld [vmem:[%s3321_s21 + $0x3c] sm:$0xf] }
  0x55   : > { %1467 = vrot.lane.b32.xlu1 %v1421_v6, %s3182_s26  ;;  %v644_v63 = vrot.slane %v642_v50, 5  ;;  %v1970_v3 = vrot.slane %v1968_v53, 4  ;;  %v1971_v4 = vrot.slane %v2868_v52, 5  ;;  %v2886_v5 = vrot.slane %v2866_v54, 9  ;;  %v2870_v13 = vld [vmem:[%s3321_s21 + $0x40] sm:$0xf] }
  0x56   : > { %v658_v6 = vshll.u32 %v529_v57, 16  ;;  %v1742_v7 = vsel %vm3357_vm5, %v1737_v56, %v1741_v51  ;;  %v655_v8 = vor.u32 %v654_v59, %v650_v58  ;;  %v676_v10 = vshrl.u32 %v531_v1, 16  ;;  %v2871_v20 = vld [vmem:[%s3321_s21 + $0x44] sm:$0x1]  ;;  %v2869_v29 = vld [vmem:[%s3321_s21 + $0x3c] sm:$0xe] }
  0x57   : > { %1465 = vrot.lane.b32.xlu0 %v1418_v9, %s3182_s26  ;;  %v672_v9 = vshll.u32 %v531_v1, 16  ;;  %v1732_v11 = vsel %vm3357_vm5, %v1727_v61, %v1731_v30  ;;  %v645_v12 = vor.u32 %v644_v63, %v641_v62  ;;  %v1972_v17 = vsel %vm3323_vm2, %v1970_v3, %v1971_v4  ;;  %v532_v26 = vld [vmem:[%s3321_s21 + $0x44] sm:$0x1]  ;;  %v815_v39 = vld [vmem:[%s3321_s21 + $0x40] sm:$0xf] }
  0x58   : > { %v660_v18 = vrot.slane %v658_v6, 5  ;;  %v656_v19 = vrot.slane %v655_v8, 4  ;;  %v1975_v21 = vrot.slane %v2870_v13, 5  ;;  %v678_v23 = vrot.slane %v676_v10, 4  ;;  %v488_v44 = vld [vmem:[%s3321_s21 + $0x24] sm:$0xf] }
  0x59   : > { %1471 = vrot.lane.b32.xlu1 %v1428_v14, %s3182_s26  ;;  %v663_v14 = vshrl.u32 %v530_v2, 16  ;;  %v674_v22 = vrot.slane %v672_v9, 5  ;;  %v1969_v24 = vsel %vm3323_vm2, %v2886_v5, %v1968_v53  ;;  %v646_v25 = vrot.slane %v645_v12, 4  ;;  %v813_v47 = vld [vmem:[%s3321_s21 + $0x38] sm:$0x1] }
  0x5a   : > { %v1978_v30 = vrot.slane %v2871_v20, 5  ;;  %v661_v31 = vsel %vm3357_vm5, %v656_v19, %v660_v18  ;;  %v682_v34 = vshll.u32 %v532_v26, 16  ;;  %v2887_v36 = vrot.slane %v2869_v29, 9  ;;  %505 = vst.msk [vmem:[#allocation2 + $0x18] sm:$0xf] %vm498_vm6, %v488_v44 }
  0x5b   : > { %1469 = vrot.lane.b32.xlu0 %v1425_v15, %s3182_s26  ;;  %v666_v15 = vshll.u32 %v530_v2, 16  ;;  %v679_v33 = vor.u32 %v678_v23, %v674_v22  ;;  %v651_v35 = vsel %vm3357_vm5, %v646_v25, %v650_v58  ;;  %v811_v48 = vld [vmem:[%s3321_s21 + $0x30] sm:$0xe]  ;;  %v816_v49 = vld [vmem:[%s3321_s21 + $0x44] sm:$0x1]  ;;  %v887_v50 = vrot.slane %v815_v39, 5 }
  0x5c   : > { %v684_v42 = vrot.slane %v682_v34, 5  ;;  %v1976_v45 = vsel %vm3323_vm2, %v2887_v36, %v1975_v21  ;;  %v486_v51 = vld [vmem:[%s3321_s21 + $0x18] sm:$0xf]  ;;  %v883_v54 = vrot.slane %v813_v47, 5  ;;  %v489_v56 = vld [vmem:[%s3321_s21 + $0x28] sm:$0xf] }
  0x5d   : > { %1568 = vrot.lane.b32.xlu1 %v2825_v27, %s3183_s28  ;;  %v665_v27 = vrot.slane %v663_v14, 4  ;;  %v668_v28 = vrot.slane %v666_v15, 5  ;;  %v680_v41 = vrot.slane %v679_v33, 4  ;;  %503 = vst.msk [vmem:[#allocation2 + $0x10] sm:$0xf] %vm498_vm6, %v486_v51  ;;  %v2744_v58 = vrot.slane %v811_v48, 9 }
  0x5e   : > { %v2777_v59 = vld [vmem:[%s3321_s21 + $0x40] sm:$0xf]  ;;  %506 = vst.msk [vmem:[#allocation2 + $0x1c] sm:$0xf] %vm498_vm6, %v489_v56  ;;  %v889_v61 = vrot.slane %v887_v50, 4  ;;  %v890_v62 = vrot.slane %v816_v49, 5 }
  0x5f   : > { %1566 = vrot.lane.b32.xlu0 %v2824_v32, %s3183_s28  ;;  %v1977_v32 = vrot.slane %v1975_v21, 4  ;;  %v669_v37 = vor.u32 %v668_v28, %v665_v27  ;;  %v685_v52 = vsel %vm3357_vm5, %v680_v41, %v684_v42  ;;  %v1202_v2 = vshll.u32 %v2777_v59, 16  ;;  %v487_v4 = vld [vmem:[%s3321_s21 + $0x1c] sm:$0xf]  ;;  %v2780_v8 = vld [vmem:[%s3321_s21 + $0x4c] sm:$0xf] }
  0x60   : > { %v1206_v3 = vshrl.u32 %v2777_v59, 16  ;;  %504 = vst.msk [vmem:[#allocation2 + $0x14] sm:$0xf] %vm498_vm6, %v487_v4  ;;  %v2779_v9 = vld [vmem:[%s3321_s21 + $0x48] sm:$0xf]  ;;  %v891_v10 = vsel %vm3323_vm2, %v889_v61, %v890_v62  ;;  %v1226_v14 = vshll.u32 %v2780_v8, 16 }
  0x61   : > { %1572 = vrot.lane.b32.xlu1 %v2827_v38, %s3183_s28  ;;  %v812_v38 = vld [vmem:[%s3321_s21 + $0x34] sm:$0xf]  ;;  %v1979_v40 = vsel %vm3323_vm2, %v1977_v32, %v1978_v30  ;;  %v1204_v12 = vrot.slane %v1202_v2, 5  ;;  %v1230_v15 = vshrl.u32 %v2780_v8, 16  ;;  %v1217_v20 = vshrl.u32 %v2779_v9, 16  ;;  %v3529_v51 = vld [vmem:[%s4209_s1 + $0x18] sm:$0xff]  }
  0x62   : > { %v880_v43 = vrot.slane %v812_v38, 5  ;;  %v1208_v13 = vrot.slane %v1206_v3, 4  ;;  %v1220_v21 = vshll.u32 %v2779_v9, 16  ;;  %v1228_v25 = vrot.slane %v1226_v14, 5  ;;  %v2756_v27 = vld [vmem:[%s3321_s21 + $0x3c] sm:$0xf] }
  0x63   : > { %1570 = vrot.lane.b32.xlu0 %v2826_v46, %s3183_s28  ;;  %v670_v46 = vrot.slane %v669_v37, 4  ;;  %v1232_v26 = vrot.slane %v1230_v15, 4  ;;  %v2781_v29 = vld [vmem:[%s3321_s21 + $0x50] sm:$0x1]  ;;  %v1219_v30 = vrot.slane %v1217_v20, 4  ;;  %v3096_v15 = vld [vmem:[%s3573_s14] sm:$0xff]  }
  0x64   : > { %v882_v53 = vrot.slane %v880_v43, 4  ;;  %v881_v5 = vsel %vm3323_vm2, %v2744_v58, %v880_v43  ;;  %v1209_v23 = vor.u32 %v1208_v13, %v1204_v12  ;;  %v2759_v32 = vld [vmem:[%s3321_s21 + $0x4c] sm:$0xf]  ;;  %v1236_v36 = vshll.u32 %v2781_v29, 16  ;;  %v2801_v37 = vld [vmem:[%s3321_s21 + $0x40] sm:$0xf]  ;;  %2956 = vmatprep.mubr.msk.bf16.mxu0 %vm2155_vm9, %v3096_v15 }
  0x65   : > { %1849 = vrot.lane.b32.xlu1 %v1718_v55, %s3184_s29  ;;  %v814_v55 = vld [vmem:[%s3321_s21 + $0x3c] sm:$0xe]  ;;  %v675_v57 = vsel %vm3357_vm5, %v670_v46, %v674_v22  ;;  %v2757_v22 = vld [vmem:[%s3321_s21 + $0x40] sm:$0xf]  ;;  %v2758_v38 = vld [vmem:[%s3321_s21 + $0x48] sm:$0xf] }
  0x66   : > { %v2745_v63 = vrot.slane %v814_v55, 9  ;;  %v884_v1 = vsel %vm3323_vm2, %v882_v53, %v883_v54  ;;  %v1210_v33 = vrot.slane %v1209_v23, 4  ;;  %v2802_v41 = vld [vmem:[%s3321_s21 + $0x44] sm:$0x1]  ;;  %v1431_v42 = vrot.slane %v2801_v37, 5  ;;  %v3097_v20 = vld [vmem:[%s3573_s14 + $0x8] sm:$0xff]  }
  0x67   : > { %1847 = vrot.lane.b32.xlu0 %v1708_v60, %s3184_s29  ;;  %v2776_v60 = vld [vmem:[%s3321_s21 + $0x3c] sm:$0xf]  ;;  %v3523_v48 = vld [vmem:[%s3321_s21 + $0x4c] sm:$0xf]  ;;  %v1434_v49 = vrot.slane %v2802_v41, 5  ;;  %v3609_v37 = vld [vmem:[%s4209_s1] sm:$0xff]  }
  0x68   : > { %v1193_v6 = vshrl.u32 %v2776_v60, 16  ;;  %v2849_v53 = vld [vmem:[%s3321_s21 + $0x4c] sm:$0xf]  ;;  %v3093_v54 = vld [vmem:[%s4209_s1 + $0x20] ss:$0 sps:$4 sm:$0xff]   ;;  %vm2056_vm1 = vcmask 585216  }
  0x69   : > { %1853 = vrot.lane.b32.xlu1 %v1742_v7, %s3184_s29  ;;  %v1196_v7 = vshll.u32 %v2776_v60, 16  ;;  %v2805_v56 = vld [vmem:[%s3321_s21 + $0x50] sm:$0x1]  ;;  %v2848_v58 = vld [vmem:[%s3321_s21 + $0x48] sm:$0xf]  ;;  %3010 = vmatprep.subr.msk.bf16.mxu1 %vm2373_vm7, %v3093_v54  ;;  %v3548_v61 = vsel %vm2373_vm7, %v3093_v54, 0 }
  0x6a   : > { %v1195_v18 = vrot.slane %v1193_v6, 4  ;;  %v491_v62 = vld [vmem:[%s3321_s21 + $0x34] sm:$0xf]  ;;  %3003 = vmatpush3.bf16.msra.mxu1 %v3548_v61  ;;  %v490_v2 = vld [vmem:[%s3321_s21 + $0x30] sm:$0xf]  ;;  %v1441_v3 = vrot.slane %v2805_v56, 5 }
  0x6b   : > { %1851 = vrot.lane.b32.xlu0 %v1732_v11, %s3184_s29  ;;  %v888_v11 = vsel %vm3323_vm2, %v2745_v63, %v887_v50  ;;  %v1198_v19 = vrot.slane %v1196_v7, 5  ;;  %v2800_v50 = vld [vmem:[%s3321_s21 + $0x3c] sm:$0xe]  ;;  %v2803_v63 = vld [vmem:[%s3321_s21 + $0x48] sm:$0xe]  ;;  %v1757_v4 = vshrl.u32 %v2849_v53, 16  ;;  %2999 = vmatprep.subr.bf16.mxu1 %v3529_v51 }
  0x6c   : > { %v2816_v60 = vrot.slane %v2800_v50, 9  ;;  %508 = vst.msk [vmem:[#allocation2 + $0x24] sm:$0xf] %vm498_vm6, %v491_v62  ;;  %507 = vst.msk [vmem:[#allocation2 + $0x20] sm:$0xf] %vm498_vm6, %v490_v2  ;;  %v3561_v6 = vld [vmem:[%s4209_s1 + $0x10] sm:$0xff]  }
  0x6d   : > { %2018 = vrot.lane.b32.xlu1 %v1972_v17, %s3185_s30  ;;  %v2778_v17 = vld [vmem:[%s3321_s21 + $0x44] sm:$0x1]  ;;  %v1199_v28 = vor.u32 %v1198_v19, %v1195_v18  ;;  %v1747_v9 = vshll.u32 %v2848_v58, 16  ;;  %v2817_v13 = vrot.slane %v2803_v63, 9  ;;  %v2851_v19 = vld [vmem:[%s3321_s21 + $0x54] sm:$0xf] }
  0x6e   : > { %3004 = vmatpush3.bf16.msra.mxu1 %v3529_v51  ;;  %v533_v63 = vld [vmem:[%s3321_s21 + $0x48] sm:$0xf]  ;;  %vm2348_vm3 = vcmask 588800   ;;  %v3186_v16 = vmov 0.0  }
  0x6f   : > { %2016 = vrot.lane.b32.xlu0 %v1969_v24, %s3185_s30  ;;  %v1212_v24 = vshll.u32 %v2778_v17, 16  ;;  %v1200_v39 = vrot.slane %v1199_v28, 4  ;;  %v2850_v17 = vld [vmem:[%s3321_s21 + $0x50] sm:$0x1]  ;;  %3000 = vmatprep.subr.bf16.mxu1 %v3561_v6 }
  0x70   : > { %v3101_v28 = vld [vmem:[%s3573_s14 + $0x10] sm:$0xff]  }
  0x71   : > { %752 = vrot.lane.b32.xlu1 %v661_v31, %s3180_s24  ;;  %v1222_v31 = vrot.slane %v1220_v21, 5  ;;  %v1214_v34 = vrot.slane %v1212_v24, 5  ;;  %v1205_v46 = vsel %vm3357_vm5, %v1200_v39, %v1204_v12  ;;  %v1432_v12 = vsel %vm3323_vm2, %v2816_v60, %v1431_v42  ;;  %v3587_v24 = vld [vmem:[%s4209_s1 + $0x8] sm:$0xff]  }
  0x72   : > { %v1759_v21 = vrot.slane %v1757_v4, 4  ;;  %3005 = vmatpush3.bf16.msra.mxu1 %v3561_v6 }
  0x73   : > { %750 = vrot.lane.b32.xlu0 %v651_v35, %s3180_s24  ;;  %v1233_v35 = vor.u32 %v1232_v26, %v1228_v25  ;;  %v1215_v43 = vsel %vm3357_vm5, %v1210_v33, %v1214_v34  ;;  %v1749_v26 = vrot.slane %v1747_v9, 5  ;;  %v493_v33 = vld [vmem:[%s3321_s21 + $0x40] sm:$0xf]  ;;  %v1763_v34 = vshll.u32 %v2850_v17, 16  ;;  %3001 = vmatprep.subr.bf16.mxu1 %v3587_v24 }
  0x74   : > { %510 = vst.msk [vmem:[#allocation2 + $0x2c] sm:$0xf] %vm498_vm6, %v493_v33 }
  0x75   : > { %2022 = vrot.lane.b32.xlu1 %v1979_v40, %s3185_s30  ;;  %v1223_v40 = vor.u32 %v1222_v31, %v1219_v30  ;;  %v1234_v44 = vrot.slane %v1233_v35, 4  ;;  %v1768_v30 = vshrl.u32 %v2851_v19, 16  ;;  %v1771_v31 = vshll.u32 %v2851_v19, 16  ;;  %v516_v35 = vld [vmem:[%s3321_s21 + $0x4] sm:$0xf] }
  0x76   : > { %v556_v50 = vshrl.u32 %v516_v35, 16  ;;  %3006 = vmatpush3.bf16.msra.mxu1 %v3587_v24  ;;  %v2872_v19 = vld [vmem:[%s3321_s21 + $0x48] sm:$0xe] }
  0x77   : > { %2020 = vrot.lane.b32.xlu0 %v1976_v45, %s3185_s30  ;;  %v1238_v45 = vrot.slane %v1236_v36, 5  ;;  %v1224_v47 = vrot.slane %v1223_v40, 4  ;;  %v492_v36 = vld [vmem:[%s3321_s21 + $0x3c] sm:$0xf]  ;;  %3002 = vmatprep.subr.bf16.mxu1 %v3609_v37  ;;  %v2888_v33 = vrot.slane %v2872_v19, 9 }
  0x78   : > { %509 = vst.msk [vmem:[#allocation2 + $0x28] sm:$0xf] %vm498_vm6, %v492_v36  ;;  %v558_v4 = vrot.slane %v556_v50, 4  ;;  %v537_v50 = vld [vmem:[%s3321_s21 + $0x58] sm:$0xf] }
  0x79   : > { %756 = vrot.lane.b32.xlu1 %v685_v52, %s3180_s24  ;;  %v1433_v52 = vrot.slane %v1431_v42, 4  ;;  %v1239_v55 = vsel %vm3357_vm5, %v1234_v44, %v1238_v45  ;;  %v1229_v59 = vsel %vm3357_vm5, %v1224_v47, %v1228_v25  ;;  %v2828_v44 = vld [vmem:[%s3321_s21 + $0x48] sm:$0xf]  ;;  %v1770_v45 = vrot.slane %v1768_v30, 4  ;;  %v2831_v47 = vld [vmem:[%s3321_s21 + $0x58] sm:$0xf] }
  0x7a   : > { %3007 = vmatpush3.bf16.msra.mxu1 %v3609_v37 }
  0x7b   : > { %754 = vrot.lane.b32.xlu0 %v675_v57, %s3180_s24  ;;  %v1438_v57 = vrot.slane %v3523_v48, 5  ;;  %v1435_v7 = vsel %vm3323_vm2, %v1433_v52, %v1434_v49  ;;  %v552_v49 = vshll.u32 %v516_v35, 16  ;;  %v3102_v52 = vld [vmem:[%s3573_s14 + $0x18] sm:$0xff]  }
  0x7d   : > { %924 = vrot.lane.b32.xlu1 %v884_v1, %s3179_s23  ;;  %v1753_v1 = vshll.u32 %v2849_v53, 16  ;;  %v1440_v8 = vrot.slane %v1438_v57, 4  ;;  %v1439_v29 = vsel %vm3323_vm2, %v2817_v13, %v1438_v57  ;;  %v2830_v53 = vld [vmem:[%s3321_s21 + $0x54] sm:$0xf]  ;;  %v687_v13 = vshrl.u32 %v533_v63, 16 }
  0x7f   : > { %922 = vrot.lane.b32.xlu0 %v881_v5, %s3179_s23  ;;  %v1744_v5 = vshrl.u32 %v2848_v58, 16  ;;  %v3577_v18 = vrot.slane %v1753_v1, 5  ;;  %v1442_v25 = vsel %vm3323_vm2, %v1440_v8, %v1441_v3  ;;  %v3637_v3 = vrot.slane %v552_v49, 5 }
  0x81   : > { %928 = vrot.lane.b32.xlu1 %v891_v10, %s3179_s23  ;;  %v2852_v10 = vld [vmem:[%s3321_s21 + $0x58] sm:$0xf]  ;;  %v1760_v39 = vor.u32 %v1759_v21, %v3577_v18 }
  0x82   : > { %v1777_v23 = vshll.u32 %v2852_v10, 16 }
  0x83   : > { %926 = vrot.lane.b32.xlu0 %v888_v11, %s3179_s23  ;;  %v2114_v11 = vld [vmem:[%s4211_s3] sm:$0x3]  ;;  %v1761_v58 = vrot.slane %v1760_v39, 4  ;;  %v518_v39 = vld [vmem:[%s3321_s21 + $0xc] sm:$0xf] }
  0x84   : > { %3008 = vmatprep.subr.msk.bf16.mxu0 %vm2180_vm8, %v2114_v11  ;;  %v2182_v14 = vsel %vm2180_vm8, %v2114_v11, 0  ;;  %v3614_v41 = vrot.slane %v1777_v23, 5  ;;  %v570_v49 = vshll.u32 %v518_v39, 16 }
  0x85   : > { %1025 = vrot.lane.b32.xlu1 %v2757_v22, %s3178_s22  ;;  %2955 = vmatpush3.bf16.msra.mxu0 %v2182_v14  ;;  %v1746_v22 = vrot.slane %v1744_v5, 4  ;;  %v517_v5 = vld [vmem:[%s3321_s21 + $0x8] sm:$0x1]  ;;  %v690_v14 = vshll.u32 %v533_v63, 16 }
  0x86   : > { %3009 = vmatprep.subr.msk.bf16.mxu0 %vm2373_vm7, %v3093_v54  ;;  %v1765_v54 = vrot.slane %v1763_v34, 5  ;;  %v562_v21 = vshll.u32 %v517_v5, 16 }
  0x87   : > { %1023 = vrot.lane.b32.xlu0 %v2756_v27, %s3178_s22  ;;  %v1781_v27 = vshrl.u32 %v2852_v10, 16  ;;  %v1750_v40 = vor.u32 %v1749_v26, %v1746_v22  ;;  %v535_v26 = vld [vmem:[%s3321_s21 + $0x50] sm:$0x1]  ;;  %v692_v30 = vrot.slane %v690_v14, 5 }
  0x88   : > { %2957 = vmatmul.mubr.msk.bf16.vlgmr.msra.gmra.mxu0 %vm2155_vm9, %v3097_v20  ;;  %v559_v20 = vor.u32 %v558_v4, %v3637_v3  ;;  %v564_v36 = vrot.slane %v562_v21, 5  ;;  %v520_v4 = vld [vmem:[%s3321_s21 + $0x14] sm:$0x1] }
  0x89   : > { %1029 = vrot.lane.b32.xlu1 %v2759_v32, %s3178_s22  ;;  %v2853_v32 = vld [vmem:[%s3321_s21 + $0x5c] sm:$0x1]  ;;  %v1783_v42 = vrot.slane %v1781_v27, 4  ;;  %2960 = vmatprep.mubr.msk.bf16.mxu0 %vm2155_vm9, %v3101_v28  ;;  %v586_v14 = vshll.u32 %v520_v4, 16 }
  0x8a   : > { %2973 = vmatpush3.bf16.msra.mxu0 %v3548_v61  ;;  %v1787_v48 = vshll.u32 %v2853_v32, 16  ;;  %v534_v61 = vld [vmem:[%s3321_s21 + $0x4c] sm:$0xf]  ;;  %v560_v35 = vrot.slane %v559_v20, 4 }
  0x8b   : > { %1027 = vrot.lane.b32.xlu0 %v2758_v38, %s3178_s22  ;;  %v2829_v38 = vld [vmem:[%s3321_s21 + $0x4c] sm:$0xf]  ;;  %2974 = vmatprep.subr.bf16.mxu0 %v3529_v51  ;;  %v1784_v60 = vor.u32 %v1783_v42, %v3614_v41  ;;  %v696_v9 = vshll.u32 %v534_v61, 16  ;;  %v700_v10 = vshrl.u32 %v534_v61, 16 }
  0x8c   : > { %v1789_v1 = vrot.slane %v1787_v48, 5  ;;  %v567_v48 = vshrl.u32 %v518_v39, 16  ;;  %v3731_v39 = vld [vmem:[%s3321_s21 + $0x4] sm:$0xf] }
  0x8d   : > { %1306 = vrot.lane.b32.xlu1 %v1215_v43, %s3181_s25  ;;  %v515_v43 = vld [vmem:[%s3321_s21] sm:$0xf]  ;;  %v1785_v11 = vrot.slane %v1784_v60, 4  ;;  %v3659_v27 = vrot.slane %v696_v9, 5 }
  0x8e   : > { %v543_v56 = vshrl.u32 %v515_v43, 16  ;;  %v546_v57 = vshll.u32 %v515_v43, 16  ;;  %2975 = vmatpush3.bf16.msra.mxu0 %v3529_v51  ;;  %v1766_v51 = vsel %vm3357_vm5, %v1761_v58, %v1765_v54  ;;  %v2877_v58 = vld [vmem:[%s3321_s21 + $0x5c] sm:$0x1]  ;;  %v569_v5 = vrot.slane %v567_v48, 4  ;;  %v3106_v48 = vld [vmem:[%s3573_s14 + $0x28] sm:$0xff]  }
  0x8f   : > { %1304 = vrot.lane.b32.xlu0 %v1205_v46, %s3181_s25  ;;  %v1773_v46 = vrot.slane %v1771_v31, 5  ;;  %2976 = vmatprep.subr.bf16.mxu0 %v3561_v6  ;;  %v519_v31 = vld [vmem:[%s3321_s21 + $0x10] sm:$0xf] }
  0x90   : > { %2961 = vmatmul.mubr.msk.bf16.gmra.mxu0 %vm2155_vm9, %v3102_v52  ;;  %v548_v8 = vrot.slane %v546_v57, 5 }
  0x91   : > { %1310 = vrot.lane.b32.xlu1 %v1239_v55, %s3181_s25  ;;  %v3628_v55 = vld [vmem:[%s3321_s21 + $0x4c] sm:$0xf]  ;;  %v1774_v62 = vor.u32 %v1773_v46, %v1770_v45  ;;  %v3681_v45 = vld [vmem:[%s3321_s21 + $0x58] sm:$0xf]  ;;  %v580_v46 = vshrl.u32 %v519_v31, 16 }
  0x92   : > { %v1982_v2 = vrot.slane %v3628_v55, 5  ;;  %2977 = vmatpush3.bf16.msra.mxu0 %v3561_v6  ;;  %v1790_v6 = vsel %vm3357_vm5, %v1785_v11, %v1789_v1  ;;  %v536_v55 = vld [vmem:[%s3321_s21 + $0x54] sm:$0xf]  ;;  %v720_v1 = vshll.u32 %v537_v50, 16  ;;  %v1992_v11 = vrot.slane %v2877_v58, 5 }
  0x93   : > { %1308 = vrot.lane.b32.xlu0 %v1229_v59, %s3181_s25  ;;  %v1751_v59 = vrot.slane %v1750_v40, 4  ;;  %v1775_v17 = vrot.slane %v1774_v62, 4  ;;  %2978 = vmatprep.subr.bf16.mxu0 %v3587_v24  ;;  %v2875_v62 = vld [vmem:[%s3321_s21 + $0x54] sm:$0xe]  ;;  %v582_v63 = vrot.slane %v580_v46, 4  ;;  %v714_v9 = vshll.u32 %v536_v55, 16 }
  0x94   : > { %v1984_v28 = vrot.slane %v1982_v2, 4  ;;  %v852_v46 = vrot.slane %v3731_v39, 5 }
  0x95   : > { %1475 = vrot.lane.b32.xlu1 %v1435_v7, %s3182_s26  ;;  %v545_v7 = vrot.slane %v543_v56, 4  ;;  %v1756_v15 = vsel %vm3357_vm5, %v1751_v59, %v3577_v18  ;;  %v702_v18 = vrot.slane %v700_v10, 4  ;;  %v1780_v32 = vsel %vm3357_vm5, %v1775_v17, %v3614_v41 }
  0x96   : > { %2979 = vmatpush3.bf16.msra.mxu0 %v3587_v24  ;;  %v576_v41 = vshll.u32 %v519_v31, 16  ;;  %v1989_v59 = vrot.slane %v3681_v45, 5 }
  0x97   : > { %1473 = vrot.lane.b32.xlu0 %v1432_v12, %s3182_s26  ;;  %v2874_v12 = vld [vmem:[%s3321_s21 + $0x50] sm:$0x1]  ;;  %2980 = vmatprep.subr.bf16.mxu0 %v3609_v37  ;;  %v703_v42 = vor.u32 %v702_v18, %v3659_v27 }
  0x98   : > { %v1985_v23 = vrot.slane %v2874_v12, 5  ;;  %v3696_v60 = vrot.slane %v576_v41, 5  ;;  %v2889_v12 = vrot.slane %v2875_v62, 9  ;;  %v494_v41 = vld [vmem:[%s3321_s21 + $0x48] sm:$0xf] }
  0x99   : > { %1479 = vrot.lane.b32.xlu1 %v1442_v25, %s3182_s26  ;;  %v549_v25 = vor.u32 %v548_v8, %v545_v7  ;;  %v704_v57 = vrot.slane %v703_v42, 4  ;;  %v572_v7 = vrot.slane %v570_v49, 5  ;;  %v711_v8 = vshrl.u32 %v536_v55, 16  ;;  %v495_v42 = vld [vmem:[%s3321_s21 + $0x4c] sm:$0xf] }
  0x9a   : > { %v1986_v24 = vsel %vm3323_vm2, %v1984_v28, %v1985_v23  ;;  %2981 = vmatpush3.bf16.msra.mxu0 %v3609_v37  ;;  %v538_v23 = vld [vmem:[%s3321_s21 + $0x5c] sm:$0x1]  ;;  %v483_v28 = vld [vmem:[%s3321_s21 + $0x4] sm:$0xf]  ;;  %512 = vst.msk [vmem:[#allocation2 + $0x34] sm:$0xf] %vm498_vm6, %v495_v42 }
  0x9b   : > { %1477 = vrot.lane.b32.xlu0 %v1439_v29, %s3182_s26  ;;  %v689_v29 = vrot.slane %v687_v13, 4  ;;  %v550_v40 = vrot.slane %v549_v25, 4  ;;  %v583_v13 = vor.u32 %v582_v63, %v3696_v60  ;;  %v573_v21 = vor.u32 %v572_v7, %v569_v5  ;;  %500 = vst.msk [vmem:[#allocation2 + $0x4] sm:$0xf] %vm498_vm6, %v483_v28  ;;  %511 = vst.msk [vmem:[#allocation2 + $0x30] sm:$0xf] %vm498_vm6, %v494_v41 }
  0x9c   : > { %v713_v25 = vrot.slane %v711_v8, 4  ;;  %v484_v63 = vld [vmem:[%s3321_s21 + $0xc] sm:$0xf]  ;;  %v804_v7 = vld [vmem:[%s3321_s21 + $0x14] sm:$0x1] }
  0x9d   : > { %1576 = vrot.lane.b32.xlu1 %v2829_v38, %s3183_s28  ;;  %v706_v38 = vshll.u32 %v535_v26, 16  ;;  %v555_v56 = vsel %vm3357_vm5, %v550_v40, %v3637_v3  ;;  %v716_v26 = vrot.slane %v714_v9, 5  ;;  %501 = vst.msk [vmem:[#allocation2 + $0x8] sm:$0xf] %vm498_vm6, %v484_v63  ;;  %v821_v9 = vld [vmem:[%s3321_s21 + $0x58] sm:$0xf] }
  0x9e   : > { %v820_v28 = vld [vmem:[%s3321_s21 + $0x54] sm:$0xe] }
  0x9f   : > { %1574 = vrot.lane.b32.xlu0 %v2828_v44, %s3183_s28  ;;  %v693_v44 = vor.u32 %v692_v30, %v689_v29  ;;  %v708_v54 = vrot.slane %v706_v38, 5  ;;  %v584_v29 = vrot.slane %v583_v13, 4  ;;  %v588_v30 = vrot.slane %v586_v14, 5 }
  0xa0   : > { %v717_v38 = vor.u32 %v716_v26, %v713_v25 }
  0xa1   : > { %1580 = vrot.lane.b32.xlu1 %v2831_v47, %s3183_s28  ;;  %v1983_v47 = vsel %vm3323_vm2, %v2888_v33, %v1982_v2  ;;  %v694_v61 = vrot.slane %v693_v44, 4  ;;  %v724_v2 = vshrl.u32 %v537_v50, 16  ;;  %v709_v10 = vsel %vm3357_vm5, %v704_v57, %v708_v54  ;;  %v3105_v33 = vld [vmem:[%s3573_s14 + $0x20] sm:$0xff]  }
  0xa2   : > { %2964 = vmatprep.mubr.msk.bf16.mxu0 %vm2155_vm9, %v3105_v33  ;;  %v718_v50 = vrot.slane %v717_v38, 4  ;;  %v799_v54 = vld [vmem:[%s3321_s21] sm:$0xe]  ;;  %v854_v57 = vrot.slane %v852_v46, 4  ;;  %v2747_v33 = vrot.slane %v820_v28, 9 }
  0xa3   : > { %1578 = vrot.lane.b32.xlu0 %v2830_v53, %s3183_s28  ;;  %v565_v53 = vsel %vm3357_vm5, %v560_v35, %v564_v36  ;;  %v726_v17 = vrot.slane %v724_v2, 4  ;;  %v699_v20 = vsel %vm3357_vm5, %v694_v61, %v3659_v27  ;;  %v482_v27 = vld [vmem:[%s3321_s21] sm:$0xf]  ;;  %v1990_v36 = vsel %vm3323_vm2, %v2889_v12, %v1989_v59  ;;  %2965 = vmatmul.mubr.msk.bf16.gmra.mxu0 %vm2155_vm9, %v3106_v48  ;;  %v817_v2 = vld [vmem:[%s3321_s21 + $0x48] sm:$0xe] }
  0xa4   : > { %499 = vst.msk [vmem:[#allocation2] sm:$0xf] %vm498_vm6, %v482_v27  ;;  %v2740_v62 = vrot.slane %v799_v54, 9  ;;  %v2746_v14 = vrot.slane %v817_v2, 9  ;;  %v2782_v48 = vld [vmem:[%s3321_s21 + $0x54] sm:$0xf] }
  0xa5   : > { %1857 = vrot.lane.b32.xlu1 %v1766_v51, %s3184_s29  ;;  %v1991_v51 = vrot.slane %v1989_v59, 4  ;;  %v803_v59 = vld [vmem:[%s3321_s21 + $0x10] sm:$0xf] }
  0xa6   : > { %v3655_v22 = vpop.permute.xlu1 %1017  ;;  %v859_v8 = vrot.slane %v803_v59, 5  ;;  %v853_v13 = vsel %vm3323_vm2, %v2740_v62, %v852_v46  ;;  %v2749_v46 = vld [vmem:[%s3321_s21 + $0x10] sm:$0xf]  ;;  %v1244_v59 = vshll.u32 %v2782_v48, 16  ;;  %v2768_v62 = vld [vmem:[%s3321_s21 + $0x1c] sm:$0xf] }
  0xa7   : > { %1855 = vrot.lane.b32.xlu0 %v1756_v15, %s3184_s29  ;;  %v3706_v15 = vrot.slane %v720_v1, 5 }
  0xa9   : > { %v3669_v34 = vpop.permute.xlu0 %914  ;;  %1861 = vrot.lane.b32.xlu1 %v1790_v6, %s3184_s29  ;;  %v1993_v6 = vsel %vm3323_vm2, %v1991_v51, %v1992_v11  ;;  %v727_v31 = vor.u32 %v726_v17, %v3706_v15  ;;  %v723_v61 = vsel %vm3357_vm5, %v718_v50, %v3706_v15  ;;  %v802_v51 = vld [vmem:[%s3321_s21 + $0xc] sm:$0xe]  ;;  %v496_v11 = vld [vmem:[%s3321_s21 + $0x54] sm:$0xf] }
  0xaa   : > { %513 = vst.msk [vmem:[#allocation2 + $0x38] sm:$0xf] %vm498_vm6, %v496_v11  ;;  %v2741_v26 = vrot.slane %v802_v51, 9  ;;  %v2751_v51 = vld [vmem:[%s3321_s21 + $0x1c] sm:$0xf]  ;;  %v1130_v11 = vshll.u32 %v2768_v62, 16 }
  0xab   : > { %v3675_v43 = vpop.permute.xlu1 %916  ;;  %1859 = vrot.lane.b32.xlu0 %v1780_v32, %s3184_s29  ;;  %v730_v32 = vshll.u32 %v538_v23, 16  ;;  %v728_v44 = vrot.slane %v727_v31, 4 }
  0xad   : > { %v919_v52 = vpop.permute.xlu0 %918  ;;  %2026 = vrot.lane.b32.xlu1 %v1986_v24, %s3185_s30  ;;  %v589_v24 = vsel %vm3357_vm5, %v584_v29, %v588_v30  ;;  %v732_v45 = vrot.slane %v730_v32, 5  ;;  %v860_v32 = vsel %vm3323_vm2, %v2741_v26, %v859_v8  ;;  %v2763_v26 = vld [vmem:[%s3321_s21 + $0x64] sm:$0xf] }
  0xaf   : > { %v921_v37 = vpop.permute.xlu1 %920  ;;  %2024 = vrot.lane.b32.xlu0 %v1983_v47, %s3185_s30  ;;  %v818_v47 = vld [vmem:[%s3321_s21 + $0x4c] sm:$0xf] }
  0xb0   : > { %v894_v55 = vrot.slane %v818_v47, 5  ;;  %v2783_v47 = vld [vmem:[%s3321_s21 + $0x58] sm:$0xf] }
  0xb1   : > { %v1016_v3 = vpop.permute.xlu0 %1015  ;;  %736 = vrot.lane.b32.xlu1 %v565_v53, %s3180_s24 }
  0xb2   : > { %v896_v4 = vrot.slane %v894_v55, 4  ;;  %v895_v25 = vsel %vm3323_vm2, %v2746_v14, %v894_v55  ;;  %v2766_v55 = vld [vmem:[%s3321_s21 + $0x14] sm:$0x1]  ;;  %v2750_v14 = vld [vmem:[%s3321_s21 + $0x18] sm:$0xf] }
  0xb3   : > { %734 = vrot.lane.b32.xlu0 %v555_v56, %s3180_s24  ;;  %v747_v19 = vpop.permute.xlu1 %746  ;;  %v733_v56 = vsel %vm3357_vm5, %v728_v44, %v732_v45  ;;  %v1116_v2 = vshll.u32 %v2766_v55, 16 }
  0xb4   : > { %789 = vst.msk [vmem:[#allocation2 + $0x18] sm:$0xf] %vm782_vm10, %v747_v19  ;;  %v861_v19 = vrot.slane %v859_v8, 4 }
  0xb5   : > { %v743_v18 = vpop.permute.xlu0 %742  ;;  %961 = vst.msk [vmem:[#allocation2 + $0x18] sm:$0xf] %vm954_vm11, %v919_v52  ;;  %760 = vrot.lane.b32.xlu1 %v709_v10, %s3180_s24  ;;  %v801_v52 = vld [vmem:[%s3321_s21 + $0x8] sm:$0x1] }
  0xb6   : > { %787 = vst.msk [vmem:[#allocation2 + $0x10] sm:$0xf] %vm782_vm10, %v743_v18  ;;  %v855_v58 = vrot.slane %v801_v52, 5  ;;  %v822_v18 = vld [vmem:[%s3321_s21 + $0x5c] sm:$0x1] }
  0xb7   : > { %959 = vst.msk [vmem:[#allocation2 + $0x10] sm:$0xf] %vm954_vm11, %v3669_v34  ;;  %758 = vrot.lane.b32.xlu0 %v699_v20, %s3180_s24  ;;  %v749_v35 = vpop.permute.xlu1 %748  ;;  %v574_v34 = vrot.slane %v573_v21, 4  ;;  %v862_v20 = vrot.slane %v804_v7, 5  ;;  %v901_v21 = vrot.slane %v821_v9, 5  ;;  %v904_v30 = vrot.slane %v822_v18, 5 }
  0xb8   : > { %1060 = vst.msk [vmem:[#allocation2 + $0x10] sm:$0xf] %vm1055_vm12, %v1016_v3  ;;  %v497_v3 = vld [vmem:[%s3321_s21 + $0x58] sm:$0xf]  ;;  %v856_v10 = vsel %vm3323_vm2, %v854_v57, %v855_v58  ;;  %v1254_v57 = vshrl.u32 %v2783_v47, 16  ;;  %v1241_v58 = vshrl.u32 %v2782_v48, 16 }
  0xb9   : > { %790 = vst.msk [vmem:[#allocation2 + $0x1c] sm:$0xf] %vm782_vm10, %v749_v35  ;;  %v745_v40 = vpop.permute.xlu0 %744  ;;  %2030 = vrot.lane.b32.xlu1 %v1993_v6, %s3185_s30  ;;  %v863_v27 = vsel %vm3323_vm2, %v861_v19, %v862_v20  ;;  %v903_v29 = vrot.slane %v901_v21, 4  ;;  %v2784_v7 = vld [vmem:[%s3321_s21 + $0x5c] sm:$0x1] }
  0xba   : > { %962 = vst.msk [vmem:[#allocation2 + $0x1c] sm:$0xf] %vm954_vm11, %v921_v37  ;;  %v1256_v9 = vrot.slane %v1254_v57, 4  ;;  %v2786_v19 = vld [vmem:[%s3321_s21 + $0x64] sm:$0xf] }
  0xbb   : > { %788 = vst.msk [vmem:[#allocation2 + $0x14] sm:$0xf] %vm782_vm10, %v745_v40  ;;  %2028 = vrot.lane.b32.xlu0 %v1990_v36, %s3185_s30  ;;  %v1022_v49 = vpop.permute.xlu1 %1021  ;;  %v2765_v36 = vld [vmem:[%s3321_s21 + $0x10] sm:$0xf]  ;;  %v905_v38 = vsel %vm3323_vm2, %v903_v29, %v904_v30  ;;  %v902_v40 = vsel %vm3323_vm2, %v2747_v33, %v901_v21  ;;  %v1118_v21 = vrot.slane %v1116_v2, 5  ;;  %v3855_v30 = vrot.slane %v1130_v11, 5 }
  0xbc   : > { %960 = vst.msk [vmem:[#allocation2 + $0x14] sm:$0xf] %vm954_vm11, %v3675_v43  ;;  %v579_v43 = vsel %vm3357_vm5, %v574_v34, %v3696_v60  ;;  %v485_v60 = vld [vmem:[%s3321_s21 + $0x10] sm:$0xf]  ;;  %v2764_v34 = vld [vmem:[%s3321_s21 + $0xc] sm:$0xf] }
  0xbd   : > { %1061 = vst.msk [vmem:[#allocation2 + $0x14] sm:$0xf] %vm1055_vm12, %v3655_v22  ;;  %1063 = vst.msk [vmem:[#allocation2 + $0x1c] sm:$0xf] %vm1055_vm12, %v1022_v49  ;;  %v1020_v53 = vpop.permute.xlu0 %1019  ;;  %740 = vrot.lane.b32.xlu1 %v589_v24, %s3180_s24  ;;  %v819_v22 = vld [vmem:[%s3321_s21 + $0x50] sm:$0x1] }
  0xbe   : > { %1062 = vst.msk [vmem:[#allocation2 + $0x18] sm:$0xf] %vm1055_vm12, %v1020_v53  ;;  %v897_v5 = vrot.slane %v819_v22, 5  ;;  %v1106_v41 = vshll.u32 %v2765_v36, 16  ;;  %v1110_v24 = vshrl.u32 %v2765_v36, 16  ;;  %v1097_v44 = vshrl.u32 %v2764_v34, 16 }
  0xbf   : > { %738 = vrot.lane.b32.xlu0 %v579_v43, %s3180_s24  ;;  %v1299_v37 = vpop.permute.xlu1 %1298  ;;  %502 = vst.msk [vmem:[#allocation2 + $0xc] sm:$0xf] %vm498_vm6, %v485_v60  ;;  %514 = vst.msk [vmem:[#allocation2 + $0x3c] sm:$0xf] %vm498_vm6, %v497_v3  ;;  %v1100_v45 = vshll.u32 %v2764_v34, 16  ;;  %v1243_v3 = vrot.slane %v1241_v58, 4 }
  0xc0   : > { %1342 = vst.msk [vmem:[#allocation2 + $0x14] sm:$0xf] %vm1336_vm13, %v1299_v37  ;;  %v898_v17 = vsel %vm3323_vm2, %v896_v4, %v897_v5  ;;  %v2748_v43 = vld [vmem:[%s3321_s21 + $0xc] sm:$0xf]  ;;  %v3826_v52 = vrot.slane %v1106_v41, 5  ;;  %v1112_v53 = vrot.slane %v1110_v24, 4 }
  0xc1   : > { %v1297_v1 = vpop.permute.xlu0 %1296  ;;  %764 = vrot.lane.b32.xlu1 %v733_v56, %s3180_s24  ;;  %v1099_v54 = vrot.slane %v1097_v44, 4  ;;  %v1102_v22 = vrot.slane %v1100_v45, 5  ;;  %v1250_v56 = vshll.u32 %v2783_v47, 16  ;;  %v2761_v60 = vld [vmem:[%s3321_s21 + $0x58] sm:$0xf]  ;;  %v1278_v33 = vshrl.u32 %v2786_v19, 16 }
  0xc2   : > { %1341 = vst.msk [vmem:[#allocation2 + $0x10] sm:$0xf] %vm1336_vm13, %v1297_v1  ;;  %v1113_v1 = vor.u32 %v1112_v53, %v3826_v52  ;;  %v2767_v5 = vld [vmem:[%s3321_s21 + $0x18] sm:$0xf]  ;;  %v2762_v29 = vld [vmem:[%s3321_s21 + $0x60] sm:$0xf] }
  0xc3   : > { %762 = vrot.lane.b32.xlu0 %v723_v61, %s3180_s24  ;;  %v1303_v12 = vpop.permute.xlu1 %1302  ;;  %v2760_v61 = vld [vmem:[%s3321_s21 + $0x54] sm:$0xf]  ;;  %v1103_v4 = vor.u32 %v1102_v22, %v1099_v54  ;;  %v3841_v8 = vrot.slane %v1250_v56, 5  ;;  %v2769_v36 = vld [vmem:[%s3321_s21 + $0x20] sm:$0x1] }
  0xc4   : > { %1344 = vst.msk [vmem:[#allocation2 + $0x1c] sm:$0xf] %vm1336_vm13, %v1303_v12  ;;  %v1134_v12 = vshrl.u32 %v2768_v62, 16  ;;  %v1114_v18 = vrot.slane %v1113_v1, 4  ;;  %v1140_v47 = vshll.u32 %v2769_v36, 16 }
  0xc5   : > { %v1301_v15 = vpop.permute.xlu0 %1300  ;;  %908 = vrot.lane.b32.xlu1 %v856_v10, %s3179_s23  ;;  %v1246_v10 = vrot.slane %v1244_v59, 5  ;;  %v1257_v28 = vor.u32 %v1256_v9, %v3841_v8  ;;  %v2787_v54 = vld [vmem:[%s3321_s21 + $0x68] sm:$0x1]  ;;  %v2789_v1 = vld [vmem:[%s3321_s21 + $0x10] sm:$0xf] }
  0xc6   : > { %1343 = vst.msk [vmem:[#allocation2 + $0x18] sm:$0xf] %vm1336_vm13, %v1301_v15  ;;  %v1121_v15 = vshrl.u32 %v2767_v5, 16  ;;  %v1119_v41 = vsel %vm3357_vm5, %v1114_v18, %v1118_v21  ;;  %v1142_v58 = vrot.slane %v1140_v47, 5  ;;  %v2790_v9 = vld [vmem:[%s3321_s21 + $0x14] sm:$0x1] }
  0xc7   : > { %906 = vrot.lane.b32.xlu0 %v853_v13, %s3179_s23  ;;  %v1468_v23 = vpop.permute.xlu1 %1467  ;;  %v1258_v44 = vrot.slane %v1257_v28, 4  ;;  %v2792_v18 = vld [vmem:[%s3321_s21 + $0x1c] sm:$0xf] }
  0xc8   : > { %1511 = vst.msk [vmem:[#allocation2 + $0x14] sm:$0xf] %vm1505_vm14, %v1468_v23  ;;  %v1260_v23 = vshll.u32 %v2784_v7, 16  ;;  %v1123_v34 = vrot.slane %v1121_v15, 4  ;;  %v1406_v15 = vrot.slane %v2790_v9, 5 }
  0xc9   : > { %v1466_v6 = vpop.permute.xlu0 %1465  ;;  %932 = vrot.lane.b32.xlu1 %v898_v17, %s3179_s23  ;;  %v1124_v17 = vshll.u32 %v2767_v5, 16  ;;  %v2854_v9 = vld [vmem:[%s3321_s21 + $0x60] sm:$0xf] }
  0xca   : > { %1510 = vst.msk [vmem:[#allocation2 + $0x10] sm:$0xf] %vm1505_vm14, %v1466_v6  ;;  %v1104_v6 = vrot.slane %v1103_v4, 4  ;;  %v1262_v45 = vrot.slane %v1260_v23, 5 }
  0xcb   : > { %930 = vrot.lane.b32.xlu0 %v895_v25, %s3179_s23  ;;  %v1472_v31 = vpop.permute.xlu1 %1471  ;;  %v2785_v25 = vld [vmem:[%s3321_s21 + $0x60] sm:$0xf] }
  0xcc   : > { %1513 = vst.msk [vmem:[#allocation2 + $0x1c] sm:$0xf] %vm1505_vm14, %v1472_v31  ;;  %v1136_v31 = vrot.slane %v1134_v12, 4  ;;  %v1109_v24 = vsel %vm3357_vm5, %v1104_v6, %v3826_v52  ;;  %v1263_v52 = vsel %vm3357_vm5, %v1258_v44, %v1262_v45  ;;  %v2788_v12 = vld [vmem:[%s3321_s21 + $0xc] sm:$0xe] }
  0xcd   : > { %v1470_v35 = vpop.permute.xlu0 %1469  ;;  %912 = vrot.lane.b32.xlu1 %v863_v27, %s3179_s23  ;;  %v1247_v27 = vor.u32 %v1246_v10, %v1243_v3  ;;  %v1403_v3 = vrot.slane %v2789_v1, 5 }
  0xce   : > { %1512 = vst.msk [vmem:[#allocation2 + $0x18] sm:$0xf] %vm1505_vm14, %v1470_v35 }
  0xcf   : > { %910 = vrot.lane.b32.xlu0 %v860_v32, %s3179_s23  ;;  %v1569_v39 = vpop.permute.xlu1 %1568  ;;  %v1274_v32 = vshll.u32 %v2786_v19, 16  ;;  %v1405_v19 = vrot.slane %v1403_v3, 4 }
  0xd0   : > { %1612 = vst.msk [vmem:[#allocation2 + $0x14] sm:$0xf] %vm1606_vm15, %v1569_v39  ;;  %v1265_v39 = vshrl.u32 %v2785_v25, 16 }
  0xd1   : > { %v1567_v42 = vpop.permute.xlu0 %1566  ;;  %936 = vrot.lane.b32.xlu1 %v905_v38, %s3179_s23  ;;  %v1126_v38 = vrot.slane %v1124_v17, 5  ;;  %v1276_v48 = vrot.slane %v1274_v32, 5  ;;  %v1410_v32 = vrot.slane %v2792_v18, 5 }
  0xd2   : > { %1611 = vst.msk [vmem:[#allocation2 + $0x10] sm:$0xf] %vm1606_vm15, %v1567_v42  ;;  %v1267_v22 = vrot.slane %v1265_v39, 4 }
  0xd3   : > { %934 = vrot.lane.b32.xlu0 %v902_v40, %s3179_s23  ;;  %v1573_v49 = vpop.permute.xlu1 %1572  ;;  %v1268_v40 = vshll.u32 %v2785_v25, 16  ;;  %v1127_v53 = vor.u32 %v1126_v38, %v1123_v34  ;;  %v2793_v34 = vld [vmem:[%s3321_s21 + $0x20] sm:$0x1]  ;;  %v2810_v38 = vld [vmem:[%s3321_s21 + $0x64] sm:$0xf] }
  0xd4   : > { %1614 = vst.msk [vmem:[#allocation2 + $0x1c] sm:$0xf] %vm1606_vm15, %v1573_v49  ;;  %v1280_v49 = vrot.slane %v1278_v33, 4  ;;  %v1452_v44 = vrot.slane %v2810_v38, 5 }
  0xd5   : > { %v1571_v50 = vpop.permute.xlu0 %1570  ;;  %1009 = vrot.lane.b32.xlu1 %v2749_v46, %s3178_s22  ;;  %v1137_v46 = vor.u32 %v1136_v31, %v3855_v30  ;;  %v1270_v55 = vrot.slane %v1268_v40, 5  ;;  %v1128_v62 = vrot.slane %v1127_v53, 4  ;;  %v2791_v40 = vld [vmem:[%s3321_s21 + $0x18] sm:$0xe] }
  0xd6   : > { %1613 = vst.msk [vmem:[#allocation2 + $0x18] sm:$0xf] %vm1606_vm15, %v1571_v50  ;;  %v1248_v50 = vrot.slane %v1247_v27, 4  ;;  %v1281_v59 = vor.u32 %v1280_v49, %v1276_v48  ;;  %v2806_v27 = vld [vmem:[%s3321_s21 + $0x54] sm:$0xe]  ;;  %v2813_v47 = vrot.slane %v2791_v40, 9 }
  0xd7   : > { %1007 = vrot.lane.b32.xlu0 %v2748_v43, %s3178_s22  ;;  %v1850_v37 = vpop.permute.xlu1 %1849  ;;  %v1138_v57 = vrot.slane %v1137_v46, 4  ;;  %v2818_v36 = vrot.slane %v2806_v27, 9  ;;  %v1454_v53 = vrot.slane %v1452_v44, 4 }
  0xd8   : > { %1893 = vst.msk [vmem:[#allocation2 + $0x14] sm:$0xf] %vm1887_vm0, %v1850_v37  ;;  %v1282_v7 = vrot.slane %v1281_v59, 4  ;;  %v2836_v59 = vld [vmem:[%s3321_s21 + $0x18] sm:$0xf] }
  0xd9   : > { %v1848_v63 = vpop.permute.xlu0 %1847  ;;  %1033 = vrot.lane.b32.xlu1 %v2761_v60, %s3178_s22  ;;  %v1284_v60 = vshll.u32 %v2787_v54, 16  ;;  %v1143_v5 = vsel %vm3357_vm5, %v1138_v57, %v1142_v58  ;;  %v2837_v58 = vld [vmem:[%s3321_s21 + $0x1c] sm:$0xf]  ;;  %v1648_v1 = vshrl.u32 %v2836_v59, 16 }
  0xda   : > { %1892 = vst.msk [vmem:[#allocation2 + $0x10] sm:$0xf] %vm1887_vm0, %v1848_v63  ;;  %v1271_v63 = vor.u32 %v1270_v55, %v1267_v22  ;;  %v1411_v55 = vsel %vm3323_vm2, %v2813_v47, %v1410_v32  ;;  %v2835_v47 = vld [vmem:[%s3321_s21 + $0x70] sm:$0xf] }
  0xdb   : > { %1031 = vrot.lane.b32.xlu0 %v2760_v61, %s3178_s22  ;;  %v1854_v13 = vpop.permute.xlu1 %1853  ;;  %v1253_v61 = vsel %vm3357_vm5, %v1248_v50, %v3841_v8  ;;  %v1286_v8 = vrot.slane %v1284_v60, 5 }
  0xdc   : > { %1895 = vst.msk [vmem:[#allocation2 + $0x1c] sm:$0xf] %vm1887_vm0, %v1854_v13  ;;  %v1272_v11 = vrot.slane %v1271_v63, 4  ;;  %v2807_v13 = vld [vmem:[%s3321_s21 + $0x58] sm:$0xf]  ;;  %v1661_v63 = vshrl.u32 %v2837_v58, 16 }
  0xdd   : > { %v1852_v20 = vpop.permute.xlu0 %1851  ;;  %1013 = vrot.lane.b32.xlu1 %v2751_v51, %s3178_s22  ;;  %v1133_v51 = vsel %vm3357_vm5, %v1128_v62, %v3855_v30  ;;  %v1287_v17 = vsel %vm3357_vm5, %v1282_v7, %v1286_v8  ;;  %v1445_v21 = vrot.slane %v2807_v13, 5  ;;  %v1657_v62 = vshll.u32 %v2837_v58, 16  ;;  %v2820_v8 = vld [vmem:[%s3321_s21 + $0x18] sm:$0xf] }
  0xde   : > { %1894 = vst.msk [vmem:[#allocation2 + $0x18] sm:$0xf] %vm1887_vm0, %v1852_v20  ;;  %v2812_v20 = vrot.slane %v2788_v12, 9  ;;  %v1277_v25 = vsel %vm3357_vm5, %v1272_v11, %v1276_v48  ;;  %v2811_v48 = vld [vmem:[%s3321_s21 + $0x68] sm:$0x1]  ;;  %v1663_v13 = vrot.slane %v1661_v63, 4 }
  0xdf   : > { %1011 = vrot.lane.b32.xlu0 %v2750_v14, %s3178_s22  ;;  %v2019_v35 = vpop.permute.xlu1 %2018  ;;  %v1447_v30 = vrot.slane %v1445_v21, 4  ;;  %v1446_v46 = vsel %vm3323_vm2, %v2818_v36, %v1445_v21  ;;  %v1455_v54 = vrot.slane %v2811_v48, 5  ;;  %v2838_v11 = vld [vmem:[%s3321_s21 + $0x20] sm:$0x1]  ;;  %v3955_v12 = vrot.slane %v1657_v62, 5 }
  0xe0   : > { %2062 = vst.msk [vmem:[#allocation2 + $0x14] sm:$0xf] %vm2056_vm1, %v2019_v35  ;;  %v1404_v35 = vsel %vm3323_vm2, %v2812_v20, %v1403_v3  ;;  %v1795_v20 = vshll.u32 %v2854_v9, 16  ;;  %v2840_v21 = vld [vmem:[%s3321_s21 + $0x28] sm:$0xf]  ;;  %v1667_v18 = vshll.u32 %v2838_v11, 16 }
  0xe1   : > { %v2017_v42 = vpop.permute.xlu0 %2016  ;;  %1037 = vrot.lane.b32.xlu1 %v2763_v26, %s3178_s22  ;;  %v2808_v26 = vld [vmem:[%s3321_s21 + $0x5c] sm:$0x1]  ;;  %v1456_v57 = vsel %vm3323_vm2, %v1454_v53, %v1455_v54  ;;  %v1664_v27 = vor.u32 %v1663_v13, %v3955_v12  ;;  %v2841_v54 = vld [vmem:[%s3321_s21 + $0x2c] sm:$0x1] }
  0xe2   : > { %2061 = vst.msk [vmem:[#allocation2 + $0x10] sm:$0xf] %vm2056_vm1, %v2017_v42  ;;  %v1448_v31 = vrot.slane %v2808_v26, 5  ;;  %v1797_v36 = vrot.slane %v1795_v20, 5 }
  0xe3   : > { %1035 = vrot.lane.b32.xlu0 %v2762_v29, %s3178_s22  ;;  %v753_v43 = vpop.permute.xlu1 %752  ;;  %v1407_v29 = vsel %vm3323_vm2, %v1405_v19, %v1406_v15  ;;  %v1792_v19 = vshrl.u32 %v2854_v9, 16  ;;  %v1665_v48 = vrot.slane %v1664_v27, 4 }
  0xe4   : > { %792 = vst.msk [vmem:[#allocation2 + $0x24] sm:$0xf] %vm782_vm10, %v753_v43  ;;  %v1449_v42 = vsel %vm3323_vm2, %v1447_v30, %v1448_v31  ;;  %v2809_v43 = vld [vmem:[%s3321_s21 + $0x60] sm:$0xe]  ;;  %v2856_v30 = vld [vmem:[%s3321_s21 + $0x68] sm:$0x1] }
  0xe5   : > { %v751_v56 = vpop.permute.xlu0 %750  ;;  %1290 = vrot.lane.b32.xlu1 %v1119_v41, %s3181_s25  ;;  %v1412_v41 = vrot.slane %v1410_v32, 4  ;;  %v1681_v32 = vshll.u32 %v2840_v21, 16 }
  0xe6   : > { %791 = vst.msk [vmem:[#allocation2 + $0x20] sm:$0xf] %vm782_vm10, %v751_v56  ;;  %v2819_v56 = vrot.slane %v2809_v43, 9 }
  0xe7   : > { %1288 = vrot.lane.b32.xlu0 %v1109_v24, %s3181_s25  ;;  %v2023_v37 = vpop.permute.xlu1 %2022  ;;  %v1413_v24 = vrot.slane %v2793_v34, 5  ;;  %v1685_v34 = vshrl.u32 %v2840_v21, 16 }
  0xe8   : > { %2064 = vst.msk [vmem:[#allocation2 + $0x1c] sm:$0xf] %vm2056_vm1, %v2023_v37  ;;  %v1453_v37 = vsel %vm3323_vm2, %v2819_v56, %v1452_v44  ;;  %v1669_v44 = vrot.slane %v1667_v18, 5  ;;  %v2861_v18 = vld [vmem:[%s3321_s21 + $0x1c] sm:$0xf] }
  0xe9   : > { %v2021_v2 = vpop.permute.xlu0 %2020  ;;  %v3099_v4 = vld [vmem:[#allocation2 + $0x10] sm:$0xff]   ;;  %1314 = vrot.lane.b32.xlu1 %v1263_v52, %s3181_s25  ;;  %v1414_v50 = vsel %vm3323_vm2, %v1412_v41, %v1413_v24 }
  0xea   : > { %2063 = vst.msk [vmem:[#allocation2 + $0x18] sm:$0xf] %vm2056_vm1, %v2021_v2  ;;  %2986 = vmatprep.mubr.msk.bf16.mxu1 %vm2348_vm3, %v3099_v4  ;;  %v1651_v2 = vshll.u32 %v2836_v59, 16  ;;  %v2855_v4 = vld [vmem:[%s3321_s21 + $0x64] sm:$0xf]  ;;  %v1670_v62 = vsel %vm3357_vm5, %v1665_v48, %v1669_v44 }
  0xeb   : > { %1312 = vrot.lane.b32.xlu0 %v1253_v61, %s3181_s25  ;;  %v757_v10 = vpop.permute.xlu1 %756  ;;  %v2858_v41 = vld [vmem:[%s3321_s21 + $0x70] sm:$0xf]  ;;  %v2864_v48 = vld [vmem:[%s3321_s21 + $0x28] sm:$0xf] }
  0xec   : > { %794 = vst.msk [vmem:[#allocation2 + $0x2c] sm:$0xf] %vm782_vm10, %v757_v10  ;;  %v1801_v10 = vshll.u32 %v2855_v4, 16  ;;  %v1653_v15 = vrot.slane %v1651_v2, 5  ;;  %v1829_v56 = vshrl.u32 %v2858_v41, 16  ;;  %v1691_v2 = vshll.u32 %v2841_v54, 16 }
  0xed   : > { %v755_v14 = vpop.permute.xlu0 %754  ;;  %1294 = vrot.lane.b32.xlu1 %v1143_v5, %s3181_s25  ;;  %v2821_v5 = vld [vmem:[%s3321_s21 + $0x1c] sm:$0xf] }
  0xee   : > { %793 = vst.msk [vmem:[#allocation2 + $0x28] sm:$0xf] %vm782_vm10, %v755_v14  ;;  %v1650_v14 = vrot.slane %v1648_v1, 4 }
  0xef   : > { %1292 = vrot.lane.b32.xlu0 %v1133_v51, %s3181_s25  ;;  %v925_v23 = vpop.permute.xlu1 %924  ;;  %v1805_v51 = vshrl.u32 %v2855_v4, 16 }
  0xf0   : > { %964 = vst.msk [vmem:[#allocation2 + $0x24] sm:$0xf] %vm954_vm11, %v925_v23 }
  0xf1   : > { %v923_v6 = vpop.permute.xlu0 %922  ;;  %v3103_v28 = vld [vmem:[#allocation2 + $0x18] sm:$0xff]   ;;  %1318 = vrot.lane.b32.xlu1 %v1287_v17, %s3181_s25  ;;  %v2833_v17 = vld [vmem:[%s3321_s21 + $0x64] sm:$0xf]  ;;  %v1807_v31 = vrot.slane %v1805_v51, 4  ;;  %v2859_v51 = vld [vmem:[%s3321_s21 + $0x74] sm:$0x1] }
  0xf2   : > { %963 = vst.msk [vmem:[#allocation2 + $0x20] sm:$0xf] %vm954_vm11, %v923_v6  ;;  %2987 = vmatmul.mubr.msk.bf16.vlgmr.msra.gmra.mxu1 %vm2348_vm3, %v3103_v28  ;;  %v3962_v6 = vrot.slane %v1801_v10, 5  ;;  %v2839_v28 = vld [vmem:[%s3321_s21 + $0x24] sm:$0xf]  ;;  %v1835_v20 = vshll.u32 %v2859_v51, 16 }
  0xf3   : > { %1316 = vrot.lane.b32.xlu0 %v1277_v25, %s3181_s25  ;;  %v929_v33 = vpop.permute.xlu1 %928  ;;  %v2832_v25 = vld [vmem:[%s3321_s21 + $0x60] sm:$0xf]  ;;  %v1672_v40 = vshrl.u32 %v2839_v28, 16 }
  0xf4   : > { %966 = vst.msk [vmem:[#allocation2 + $0x2c] sm:$0xf] %vm954_vm11, %v929_v33  ;;  %v2823_v33 = vld [vmem:[%s3321_s21 + $0x28] sm:$0xf]  ;;  %v1808_v43 = vor.u32 %v1807_v31, %v3962_v6 }
  0xf5   : > { %v927_v39 = vpop.permute.xlu0 %926  ;;  %1459 = vrot.lane.b32.xlu1 %v1407_v29, %s3182_s26  ;;  %v1654_v29 = vor.u32 %v1653_v15, %v1650_v14  ;;  %v1674_v58 = vrot.slane %v1672_v40, 4 }
  0xf6   : > { %965 = vst.msk [vmem:[#allocation2 + $0x28] sm:$0xf] %vm954_vm11, %v927_v39  ;;  %v2822_v39 = vld [vmem:[%s3321_s21 + $0x24] sm:$0xf]  ;;  %v1809_v63 = vrot.slane %v1808_v43, 4 }
  0xf7   : > { %1457 = vrot.lane.b32.xlu0 %v1404_v35, %s3182_s26  ;;  %v1026_v45 = vpop.permute.xlu1 %1025  ;;  %v1794_v35 = vrot.slane %v1792_v19, 4 }
  0xf8   : > { %1065 = vst.msk [vmem:[#allocation2 + $0x24] sm:$0xf] %vm1055_vm12, %v1026_v45  ;;  %v1811_v45 = vshll.u32 %v2856_v30, 16  ;;  %v1954_v30 = vrot.slane %v2861_v18, 5 }
  0xf9   : > { %v1024_v49 = vpop.permute.xlu0 %1023  ;;  %1483 = vrot.lane.b32.xlu1 %v1449_v42, %s3182_s26  ;;  %v1675_v42 = vshll.u32 %v2839_v28, 16  ;;  %v1798_v53 = vor.u32 %v1797_v36, %v1794_v35  ;;  %v2862_v35 = vld [vmem:[%s3321_s21 + $0x20] sm:$0x1]  ;;  %v2879_v36 = vld [vmem:[%s3321_s21 + $0x64] sm:$0xf] }
  0xfa   : > { %1064 = vst.msk [vmem:[#allocation2 + $0x20] sm:$0xf] %vm1055_vm12, %v1024_v49  ;;  %v1655_v49 = vrot.slane %v1654_v29, 4  ;;  %v1813_v1 = vrot.slane %v1811_v45, 5  ;;  %v1956_v40 = vrot.slane %v1954_v30, 4 }
  0xfb   : > { %1481 = vrot.lane.b32.xlu0 %v1446_v46, %s3182_s26  ;;  %v1030_v22 = vpop.permute.xlu1 %1029  ;;  %v2857_v46 = vld [vmem:[%s3321_s21 + $0x6c] sm:$0xf]  ;;  %v1677_v59 = vrot.slane %v1675_v42, 5  ;;  %v1957_v42 = vrot.slane %v2862_v35, 5 }
  0xfc   : > { %1067 = vst.msk [vmem:[#allocation2 + $0x2c] sm:$0xf] %vm1055_vm12, %v1030_v22  ;;  %v1687_v22 = vrot.slane %v1685_v34, 4  ;;  %v1660_v4 = vsel %vm3357_vm5, %v1655_v49, %v3955_v12  ;;  %v1814_v12 = vsel %vm3357_vm5, %v1809_v63, %v1813_v1  ;;  %v3109_v49 = vld [vmem:[%s3573_s14 + $0x38] sm:$0xff]  }
  0xfd   : > { %v1028_v52 = vpop.permute.xlu0 %1027  ;;  %1463 = vrot.lane.b32.xlu1 %v1414_v50, %s3182_s26  ;;  %v3979_v50 = vrot.slane %v1681_v32, 5  ;;  %v1678_v10 = vor.u32 %v1677_v59, %v1674_v58  ;;  %v1958_v0 = vsel %vm3323_vm2, %v1956_v40, %v1957_v42  ;;  %v2882_v58 = vld [vmem:[%s3321_s21 + $0x70] sm:$0xf] }
  0xfe   : > { %1066 = vst.msk [vmem:[#allocation2 + $0x28] sm:$0xf] %vm1055_vm12, %v1028_v52  ;;  %v2003_v63 = vrot.slane %v2882_v58, 5 }
  0xff   : > { %1461 = vrot.lane.b32.xlu0 %v1411_v55, %s3182_s26  ;;  %v1307_v60 = vpop.permute.xlu1 %1306  ;;  %v1825_v55 = vshll.u32 %v2858_v41, 16  ;;  %v1996_v41 = vrot.slane %v2879_v36, 5 }
 0x100   : > { %1346 = vst.msk [vmem:[#allocation2 + $0x24] sm:$0xf] %vm1336_vm13, %v1307_v60  ;;  %v1816_v60 = vshrl.u32 %v2857_v46, 16 }
 0x101   : > { %v1305_v61 = vpop.permute.xlu0 %1304  ;;  %1487 = vrot.lane.b32.xlu1 %v1456_v57, %s3182_s26  ;;  %v2834_v57 = vld [vmem:[%s3321_s21 + $0x6c] sm:$0xf] }
 0x102   : > { %1345 = vst.msk [vmem:[#allocation2 + $0x20] sm:$0xf] %vm1336_vm13, %v1305_v61  ;;  %v1818_v11 = vrot.slane %v1816_v60, 4  ;;  %v2863_v60 = vld [vmem:[%s3321_s21 + $0x24] sm:$0xe] }
 0x103   : > { %1485 = vrot.lane.b32.xlu0 %v1453_v37, %s3182_s26  ;;  %v1311_v7 = vpop.permute.xlu1 %1310  ;;  %v1819_v37 = vshll.u32 %v2857_v46, 16 }
 0x104   : > { %1348 = vst.msk [vmem:[#allocation2 + $0x2c] sm:$0xf] %vm1336_vm13, %v1311_v7  ;;  %v1827_v7 = vrot.slane %v1825_v55, 5 }
 0x105   : > { %v1309_v3 = vpop.permute.xlu0 %1308  ;;  %1560 = vrot.lane.b32.xlu1 %v2821_v5, %s3183_s28  ;;  %v1688_v5 = vor.u32 %v1687_v22, %v3979_v50  ;;  %v1821_v13 = vrot.slane %v1819_v37, 5  ;;  %v1961_v22 = vrot.slane %v2864_v48, 5 }
 0x106   : > { %1347 = vst.msk [vmem:[#allocation2 + $0x28] sm:$0xf] %vm1336_vm13, %v1309_v3  ;;  %v1799_v3 = vrot.slane %v1798_v53, 4  ;;  %v1998_v53 = vrot.slane %v1996_v41, 4 }
 0x107   : > { %1558 = vrot.lane.b32.xlu0 %v2820_v8, %s3183_s28  ;;  %v1476_v23 = vpop.permute.xlu1 %1475  ;;  %v1831_v8 = vrot.slane %v1829_v56, 4  ;;  %v1689_v15 = vrot.slane %v1688_v5, 4  ;;  %v2883_v5 = vld [vmem:[%s3321_s21 + $0x74] sm:$0x1] }
 0x108   : > { %1515 = vst.msk [vmem:[#allocation2 + $0x24] sm:$0xf] %vm1505_vm14, %v1476_v23  ;;  %v1804_v23 = vsel %vm3357_vm5, %v1799_v3, %v3962_v6  ;;  %v1837_v6 = vrot.slane %v1835_v20, 5  ;;  %v2006_v51 = vrot.slane %v2883_v5, 5 }
 0x109   : > { %v1474_v26 = vpop.permute.xlu0 %1473  ;;  %1584 = vrot.lane.b32.xlu1 %v2833_v17, %s3183_s28  ;;  %v1693_v17 = vrot.slane %v1691_v2, 5  ;;  %v1832_v19 = vor.u32 %v1831_v8, %v1827_v7 }
 0x10a   : > { %1514 = vst.msk [vmem:[#allocation2 + $0x20] sm:$0xf] %vm1505_vm14, %v1474_v26  ;;  %v1822_v26 = vor.u32 %v1821_v13, %v1818_v11 }
 0x10b   : > { %1582 = vrot.lane.b32.xlu0 %v2832_v25, %s3183_s28  ;;  %v1480_v38 = vpop.permute.xlu1 %1479  ;;  %v1679_v25 = vrot.slane %v1678_v10, 4  ;;  %v1694_v27 = vsel %vm3357_vm5, %v1689_v15, %v1693_v17  ;;  %v1833_v29 = vrot.slane %v1832_v19, 4  ;;  %v2005_v10 = vrot.slane %v2003_v63, 4 }
 0x10c   : > { %1517 = vst.msk [vmem:[#allocation2 + $0x2c] sm:$0xf] %vm1505_vm14, %v1480_v38  ;;  %v2860_v38 = vld [vmem:[%s3321_s21 + $0x18] sm:$0xe] }
 0x10d   : > { %v1478_v24 = vpop.permute.xlu0 %1477  ;;  %1564 = vrot.lane.b32.xlu1 %v2823_v33, %s3183_s28  ;;  %v1684_v32 = vsel %vm3357_vm5, %v1679_v25, %v3979_v50  ;;  %v1823_v33 = vrot.slane %v1822_v26, 4  ;;  %v2884_v46 = vrot.slane %v2860_v38, 9  ;;  %v2878_v50 = vld [vmem:[%s3321_s21 + $0x60] sm:$0xe]  ;;  %v2007_v15 = vsel %vm3323_vm2, %v2005_v10, %v2006_v51 }
 0x10e   : > { %1516 = vst.msk [vmem:[#allocation2 + $0x28] sm:$0xf] %vm1505_vm14, %v1478_v24  ;;  %v3108_v24 = vld [vmem:[%s3573_s14 + $0x30] sm:$0xff]  }
 0x10f   : > { %1562 = vrot.lane.b32.xlu0 %v2822_v39, %s3183_s28  ;;  %v1577_v52 = vpop.permute.xlu1 %1576  ;;  %v1838_v39 = vsel %vm3357_vm5, %v1833_v29, %v1837_v6  ;;  %v1828_v45 = vsel %vm3357_vm5, %v1823_v33, %v1827_v7  ;;  %2968 = vmatprep.mubr.msk.bf16.mxu0 %vm2155_vm9, %v3108_v24  ;;  %v1955_v56 = vsel %vm3323_vm2, %v2884_v46, %v1954_v30 }
 0x110   : > { %1616 = vst.msk [vmem:[#allocation2 + $0x24] sm:$0xf] %vm1606_vm15, %v1577_v52  ;;  %2969 = vmatmul.mubr.msk.bf16.gmra.mxu0 %vm2155_vm9, %v3109_v49  ;;  %v2890_v52 = vrot.slane %v2878_v50, 9 }
 0x111   : > { %v1575_v61 = vpop.permute.xlu0 %1574  ;;  %1588 = vrot.lane.b32.xlu1 %v2835_v47, %s3183_s28  ;;  %v2880_v47 = vld [vmem:[%s3321_s21 + $0x68] sm:$0x1] }
 0x112   : > { %1615 = vst.msk [vmem:[#allocation2 + $0x20] sm:$0xf] %vm1606_vm15, %v1575_v61  ;;  %v1999_v54 = vrot.slane %v2880_v47, 5  ;;  %v1963_v61 = vrot.slane %v1961_v22, 4  ;;  %v1997_v2 = vsel %vm3323_vm2, %v2890_v52, %v1996_v41 }
 0x113   : > { %1586 = vrot.lane.b32.xlu0 %v2834_v57, %s3183_s28  ;;  %v1581_v9 = vpop.permute.xlu1 %1580  ;;  %v2865_v57 = vld [vmem:[%s3321_s21 + $0x2c] sm:$0x1] }
 0x114   : > { %1618 = vst.msk [vmem:[#allocation2 + $0x2c] sm:$0xf] %vm1606_vm15, %v1581_v9  ;;  %v2000_v37 = vsel %vm3323_vm2, %v1998_v53, %v1999_v54  ;;  %v2881_v9 = vld [vmem:[%s3321_s21 + $0x6c] sm:$0xe]  ;;  %s2931_s21 = sshll.u32 %s4226_s17, 7 }
 0x115   : > { %v1579_v14 = vpop.permute.xlu0 %1578  ;;  %1841 = vrot.lane.b32.xlu1 %v1670_v62, %s3184_s29  ;;  %v1964_v62 = vrot.slane %v2865_v57, 5  ;;  %s4080_s24 = scalar_lea.vmem %s4212_s4, %s2931_s21 }
 0x116   : > { %1617 = vst.msk [vmem:[#allocation2 + $0x28] sm:$0xf] %vm1606_vm15, %v1579_v14  ;;  %v2891_v14 = vrot.slane %v2881_v9, 9 }
 0x117   : > { %1839 = vrot.lane.b32.xlu0 %v1660_v4, %s3184_s29  ;;  %v1858_v21 = vpop.permute.xlu1 %1857  ;;  %v2885_v4 = vrot.slane %v2863_v60, 9  ;;  %v1965_v3 = vsel %vm3323_vm2, %v1963_v61, %v1964_v62 }
 0x118   : > { %1897 = vst.msk [vmem:[#allocation2 + $0x24] sm:$0xf] %vm1887_vm0, %v1858_v21  ;;  %v2004_v19 = vsel %vm3323_vm2, %v2891_v14, %v2003_v63 }
 0x119   : > { %v1856_v28 = vpop.permute.xlu0 %1855  ;;  %1865 = vrot.lane.b32.xlu1 %v1814_v12, %s3184_s29  ;;  %v1962_v13 = vsel %vm3323_vm2, %v2885_v4, %v1961_v22  ;;  %vm2511_vm2 = vcmask 64512  }
 0x11a   : > { %1896 = vst.msk [vmem:[#allocation2 + $0x20] sm:$0xf] %vm1887_vm0, %v1856_v28 }
 0x11b   : > { %1863 = vrot.lane.b32.xlu0 %v1804_v23, %s3184_s29  ;;  %v1862_v31 = vpop.permute.xlu1 %1861  ;;  %2513 = vst.msk [vmem:[%s4080_s24 + $0x8] sm:$0xff] %vm2511_vm2, %v3186_v16  ;;  %2515 = vst.msk [vmem:[%s4080_s24 + $0x18] sm:$0xff] %vm2511_vm2, %v3186_v16 }
 0x11c   : > { %1899 = vst.msk [vmem:[#allocation2 + $0x2c] sm:$0xf] %vm1887_vm0, %v1862_v31 }
 0x11d   : > { %v1860_v34 = vpop.permute.xlu0 %1859  ;;  %1845 = vrot.lane.b32.xlu1 %v1694_v27, %s3184_s29  ;;  %2517 = vst.msk [vmem:[%s4080_s24 + $0x28] sm:$0xff] %vm2511_vm2, %v3186_v16  ;;  %2519 = vst.msk [vmem:[%s4080_s24 + $0x38] sm:$0xff] %vm2511_vm2, %v3186_v16 }
 0x11e   : > { %1898 = vst.msk [vmem:[#allocation2 + $0x28] sm:$0xf] %vm1887_vm0, %v1860_v34 }
 0x11f   : > { %1843 = vrot.lane.b32.xlu0 %v1684_v32, %s3184_s29  ;;  %v2027_v44 = vpop.permute.xlu1 %2026  ;;  %2521 = vst.msk [vmem:[%s4080_s24 + $0x48] sm:$0xff] %vm2511_vm2, %v3186_v16  ;;  %2523 = vst.msk [vmem:[%s4080_s24 + $0x58] sm:$0xff] %vm2511_vm2, %v3186_v16 }
 0x120   : > { %2066 = vst.msk [vmem:[#allocation2 + $0x24] sm:$0xf] %vm2056_vm1, %v2027_v44 }
 0x121   : > { %v2025_v43 = vpop.permute.xlu0 %2024  ;;  %1869 = vrot.lane.b32.xlu1 %v1838_v39, %s3184_s29  ;;  %2525 = vst.msk [vmem:[%s4080_s24 + $0x68] sm:$0xff] %vm2511_vm2, %v3186_v16  ;;  %2527 = vst.msk [vmem:[%s4080_s24 + $0x78] sm:$0xff] %vm2511_vm2, %v3186_v16 }
 0x122   : > { %2065 = vst.msk [vmem:[#allocation2 + $0x20] sm:$0xf] %vm2056_vm1, %v2025_v43 }
 0x123   : > { %1867 = vrot.lane.b32.xlu0 %v1828_v45, %s3184_s29  ;;  %v737_v55 = vpop.permute.xlu1 %736 }
 0x124   : > { %784 = vst.msk [vmem:[#allocation2 + $0x4] sm:$0xf] %vm782_vm10, %v737_v55 }
 0x125   : > { %v735_v59 = vpop.permute.xlu0 %734  ;;  %2010 = vrot.lane.b32.xlu1 %v1958_v0, %s3185_s30 }
 0x126   : > { %783 = vst.msk [vmem:[#allocation2] sm:$0xf] %vm782_vm10, %v735_v59 }
 0x127   : > { %2008 = vrot.lane.b32.xlu0 %v1955_v56, %s3185_s30  ;;  %v761_v1 = vpop.permute.xlu1 %760 }
 0x128   : > { %796 = vst.msk [vmem:[#allocation2 + $0x34] sm:$0xf] %vm782_vm10, %v761_v1 }
 0x129   : > { %v759_v7 = vpop.permute.xlu0 %758  ;;  %v3104_v8 = vld [vmem:[#allocation2 + $0x20] sm:$0xff]   ;;  %2034 = vrot.lane.b32.xlu1 %v2000_v37, %s3185_s30 }
 0x12a   : > { %795 = vst.msk [vmem:[#allocation2 + $0x30] sm:$0xf] %vm782_vm10, %v759_v7  ;;  %2990 = vmatprep.mubr.msk.bf16.mxu1 %vm2348_vm3, %v3104_v8 }
 0x12b   : > { %2032 = vrot.lane.b32.xlu0 %v1997_v2, %s3185_s30  ;;  %v2031_v11 = vpop.permute.xlu1 %2030 }
 0x12c   : > { %2068 = vst.msk [vmem:[#allocation2 + $0x2c] sm:$0xf] %vm2056_vm1, %v2031_v11 }
 0x12d   : > { %v2029_v12 = vpop.permute.xlu0 %2028  ;;  %2014 = vrot.lane.b32.xlu1 %v1965_v3, %s3185_s30 }
 0x12e   : > { %2067 = vst.msk [vmem:[#allocation2 + $0x28] sm:$0xf] %vm2056_vm1, %v2029_v12 }
 0x12f   : > { %2012 = vrot.lane.b32.xlu0 %v1962_v13, %s3185_s30  ;;  %v741_v17 = vpop.permute.xlu1 %740 }
 0x130   : > { %786 = vst.msk [vmem:[#allocation2 + $0xc] sm:$0xf] %vm782_vm10, %v741_v17 }
 0x131   : > { %v739_v20 = vpop.permute.xlu0 %738  ;;  %2038 = vrot.lane.b32.xlu1 %v2007_v15, %s3185_s30 }
 0x132   : > { %785 = vst.msk [vmem:[#allocation2 + $0x8] sm:$0xf] %vm782_vm10, %v739_v20 }
 0x133   : > { %2036 = vrot.lane.b32.xlu0 %v2004_v19, %s3185_s30  ;;  %v765_v21 = vpop.permute.xlu1 %764 }
 0x134   : > { %798 = vst.msk [vmem:[#allocation2 + $0x3c] sm:$0xf] %vm782_vm10, %v765_v21 }
 0x135   : > { %v763_v23 = vpop.permute.xlu0 %762  ;;  %v3107_v25 = vld [vmem:[#allocation2 + $0x28] sm:$0xff]  }
 0x136   : > { %797 = vst.msk [vmem:[#allocation2 + $0x38] sm:$0xf] %vm782_vm10, %v763_v23  ;;  %2991 = vmatmul.mubr.msk.bf16.gmra.mxu1 %vm2348_vm3, %v3107_v25 }
 0x137   : > { %v909_v26 = vpop.permute.xlu1 %908 }
 0x138   : > { %956 = vst.msk [vmem:[#allocation2 + $0x4] sm:$0xf] %vm954_vm11, %v909_v26 }
 0x139   : > { %v907_v18 = vpop.permute.xlu0 %906 }
 0x13a   : > { %955 = vst.msk [vmem:[#allocation2] sm:$0xf] %vm954_vm11, %v907_v18 }
 0x13b   : > { %v933_v28 = vpop.permute.xlu1 %932 }
 0x13c   : > { %968 = vst.msk [vmem:[#allocation2 + $0x34] sm:$0xf] %vm954_vm11, %v933_v28 }
 0x13d   : > { %v931_v27 = vpop.permute.xlu0 %930 }
 0x13e   : > { %967 = vst.msk [vmem:[#allocation2 + $0x30] sm:$0xf] %vm954_vm11, %v931_v27 }
 0x13f   : > { %v913_v29 = vpop.permute.xlu1 %912 }
 0x140   : > { %958 = vst.msk [vmem:[#allocation2 + $0xc] sm:$0xf] %vm954_vm11, %v913_v29 }
 0x141   : > { %v911_v6 = vpop.permute.xlu0 %910 }
 0x142   : > { %957 = vst.msk [vmem:[#allocation2 + $0x8] sm:$0xf] %vm954_vm11, %v911_v6 }
 0x143   : > { %v937_v30 = vpop.permute.xlu1 %936 }
 0x144   : > { %970 = vst.msk [vmem:[#allocation2 + $0x3c] sm:$0xf] %vm954_vm11, %v937_v30 }
 0x145   : > { %v935_v31 = vpop.permute.xlu0 %934 }
 0x146   : > { %969 = vst.msk [vmem:[#allocation2 + $0x38] sm:$0xf] %vm954_vm11, %v935_v31 }
 0x147   : > { %v1010_v32 = vpop.permute.xlu1 %1009 }
 0x148   : > { %1057 = vst.msk [vmem:[#allocation2 + $0x4] sm:$0xf] %vm1055_vm12, %v1010_v32  ;;  %v4116_v24 = vpop.f32.mrf.mxu0 }
 0x149   : > { %v1008_v33 = vpop.permute.xlu0 %1007 }
 0x14a   : > { %1056 = vst.msk [vmem:[#allocation2] sm:$0xf] %vm1055_vm12, %v1008_v33  ;;  %v4119_v44 = vpop.f32.mrf.mxu0 }
 0x14b   : > { %v1034_v35 = vpop.permute.xlu1 %1033 }
 0x14c   : > { %1069 = vst.msk [vmem:[#allocation2 + $0x34] sm:$0xf] %vm1055_vm12, %v1034_v35  ;;  %v2959_v47 = vpop.f32.mrf.mxu0 }
 0x14d   : > { %v1032_v36 = vpop.permute.xlu0 %1031 }
 0x14e   : > { %1068 = vst.msk [vmem:[#allocation2 + $0x30] sm:$0xf] %vm1055_vm12, %v1032_v36  ;;  %v2221_v48 = vpop.f32.mrf.mxu0 }
 0x14f   : > { %v1014_v34 = vpop.permute.xlu1 %1013 }
 0x150   : > { %1059 = vst.msk [vmem:[#allocation2 + $0xc] sm:$0xf] %vm1055_vm12, %v1014_v34  ;;  %v4124_v50 = vpop.f32.mrf.mxu0 }
 0x151   : > { %v1012_v38 = vpop.permute.xlu0 %1011 }
 0x152   : > { %1058 = vst.msk [vmem:[#allocation2 + $0x8] sm:$0xf] %vm1055_vm12, %v1012_v38  ;;  %v4127_v0 = vpop.f32.mrf.mxu0 }
 0x153   : > { %v1038_v39 = vpop.permute.xlu1 %1037 }
 0x154   : > { %1071 = vst.msk [vmem:[#allocation2 + $0x3c] sm:$0xf] %vm1055_vm12, %v1038_v39  ;;  %v2963_v22 = vpop.f32.mrf.mxu0 }
 0x155   : > { %v1036_v40 = vpop.permute.xlu0 %1035 }
 0x156   : > { %1070 = vst.msk [vmem:[#allocation2 + $0x38] sm:$0xf] %vm1055_vm12, %v1036_v40  ;;  %v2237_v55 = vpop.f32.mrf.mxu0 }
 0x157   : > { %v1291_v42 = vpop.permute.xlu1 %1290 }
 0x158   : > { %1338 = vst.msk [vmem:[#allocation2 + $0x4] sm:$0xf] %vm1336_vm13, %v1291_v42 }
 0x159   : > { %v1289_v41 = vpop.permute.xlu0 %1288 }
 0x15a   : > { %1337 = vst.msk [vmem:[#allocation2] sm:$0xf] %vm1336_vm13, %v1289_v41 }
 0x15b   : > { %v1315_v45 = vpop.permute.xlu1 %1314 }
 0x15c   : > { %1350 = vst.msk [vmem:[#allocation2 + $0x34] sm:$0xf] %vm1336_vm13, %v1315_v45 }
 0x15d   : > { %v1313_v46 = vpop.permute.xlu0 %1312 }
 0x15e   : > { %1349 = vst.msk [vmem:[#allocation2 + $0x30] sm:$0xf] %vm1336_vm13, %v1313_v46 }
 0x15f   : > { %v1295_v49 = vpop.permute.xlu1 %1294 }
 0x160   : > { %1340 = vst.msk [vmem:[#allocation2 + $0xc] sm:$0xf] %vm1336_vm13, %v1295_v49 }
 0x161   : > { %v1293_v43 = vpop.permute.xlu0 %1292 }
 0x162   : > { %1339 = vst.msk [vmem:[#allocation2 + $0x8] sm:$0xf] %vm1336_vm13, %v1293_v43 }
 0x163   : > { %v1319_v53 = vpop.permute.xlu1 %1318  ;;  %v4142_v4 = vpop.f32.mrf.mxu0 }
 0x164   : > { %1352 = vst.msk [vmem:[#allocation2 + $0x3c] sm:$0xf] %vm1336_vm13, %v1319_v53 }
 0x165   : > { %v1317_v54 = vpop.permute.xlu0 %1316  ;;  %v4145_v5 = vpop.f32.mrf.mxu0 }
 0x166   : > { %1351 = vst.msk [vmem:[#allocation2 + $0x38] sm:$0xf] %vm1336_vm13, %v1317_v54 }
 0x167   : > { %v1460_v56 = vpop.permute.xlu1 %1459  ;;  %v2967_v9 = vpop.f32.mrf.mxu0 }
 0x168   : > { %1507 = vst.msk [vmem:[#allocation2 + $0x4] sm:$0xf] %vm1505_vm14, %v1460_v56 }
 0x169   : > { %v1458_v52 = vpop.permute.xlu0 %1457  ;;  %v2253_v3 = vpop.f32.mrf.mxu0 }
 0x16a   : > { %1506 = vst.msk [vmem:[#allocation2] sm:$0xf] %vm1505_vm14, %v1458_v52 }
 0x16b   : > { %v1484_v57 = vpop.permute.xlu1 %1483 }
 0x16c   : > { %1519 = vst.msk [vmem:[#allocation2 + $0x34] sm:$0xf] %vm1505_vm14, %v1484_v57 }
 0x16d   : > { %v1482_v58 = vpop.permute.xlu0 %1481 }
 0x16e   : > { %1518 = vst.msk [vmem:[#allocation2 + $0x30] sm:$0xf] %vm1505_vm14, %v1482_v58 }
 0x16f   : > { %v1464_v59 = vpop.permute.xlu1 %1463 }
 0x170   : > { %1509 = vst.msk [vmem:[#allocation2 + $0xc] sm:$0xf] %vm1505_vm14, %v1464_v59 }
 0x171   : > { %v1462_v60 = vpop.permute.xlu0 %1461 }
 0x172   : > { %1508 = vst.msk [vmem:[#allocation2 + $0x8] sm:$0xf] %vm1505_vm14, %v1462_v60 }
 0x173   : > { %v1488_v37 = vpop.permute.xlu1 %1487 }
 0x174   : > { %1521 = vst.msk [vmem:[#allocation2 + $0x3c] sm:$0xf] %vm1505_vm14, %v1488_v37 }
 0x175   : > { %v1486_v61 = vpop.permute.xlu0 %1485 }
 0x176   : > { %1520 = vst.msk [vmem:[#allocation2 + $0x38] sm:$0xf] %vm1505_vm14, %v1486_v61 }
 0x177   : > { %v1561_v62 = vpop.permute.xlu1 %1560 }
 0x178   : > { %1608 = vst.msk [vmem:[#allocation2 + $0x4] sm:$0xf] %vm1606_vm15, %v1561_v62 }
 0x179   : > { %v1559_v63 = vpop.permute.xlu0 %1558 }
 0x17a   : > { %1607 = vst.msk [vmem:[#allocation2] sm:$0xf] %vm1606_vm15, %v1559_v63 }
 0x17b   : > { %v1585_v1 = vpop.permute.xlu1 %1584 }
 0x17c   : > { %1620 = vst.msk [vmem:[#allocation2 + $0x34] sm:$0xf] %vm1606_vm15, %v1585_v1 }
 0x17d   : > { %v1583_v2 = vpop.permute.xlu0 %1582 }
 0x17e   : > { %1619 = vst.msk [vmem:[#allocation2 + $0x30] sm:$0xf] %vm1606_vm15, %v1583_v2 }
 0x17f   : > { %v1565_v7 = vpop.permute.xlu1 %1564 }
 0x180   : > { %1610 = vst.msk [vmem:[#allocation2 + $0xc] sm:$0xf] %vm1606_vm15, %v1565_v7 }
 0x181   : > { %v1563_v8 = vpop.permute.xlu0 %1562 }
 0x182   : > { %1609 = vst.msk [vmem:[#allocation2 + $0x8] sm:$0xf] %vm1606_vm15, %v1563_v8 }
 0x183   : > { %v1589_v10 = vpop.permute.xlu1 %1588 }
 0x184   : > { %1622 = vst.msk [vmem:[#allocation2 + $0x3c] sm:$0xf] %vm1606_vm15, %v1589_v10 }
 0x185   : > { %v1587_v51 = vpop.permute.xlu0 %1586 }
 0x186   : > { %1621 = vst.msk [vmem:[#allocation2 + $0x38] sm:$0xf] %vm1606_vm15, %v1587_v51 }
 0x187   : > { %v1842_v11 = vpop.permute.xlu1 %1841 }
 0x188   : > { %1889 = vst.msk [vmem:[#allocation2 + $0x4] sm:$0xf] %vm1887_vm0, %v1842_v11 }
 0x189   : > { %v1840_v13 = vpop.permute.xlu0 %1839 }
 0x18a   : > { %1888 = vst.msk [vmem:[#allocation2] sm:$0xf] %vm1887_vm0, %v1840_v13 }
 0x18b   : > { %v1866_v14 = vpop.permute.xlu1 %1865 }
 0x18c   : > { %1901 = vst.msk [vmem:[#allocation2 + $0x34] sm:$0xf] %vm1887_vm0, %v1866_v14 }
 0x18d   : > { %v1864_v12 = vpop.permute.xlu0 %1863 }
 0x18e   : > { %1900 = vst.msk [vmem:[#allocation2 + $0x30] sm:$0xf] %vm1887_vm0, %v1864_v12 }
 0x18f   : > { %v1846_v15 = vpop.permute.xlu1 %1845 }
 0x190   : > { %1891 = vst.msk [vmem:[#allocation2 + $0xc] sm:$0xf] %vm1887_vm0, %v1846_v15 }
 0x191   : > { %v1844_v17 = vpop.permute.xlu0 %1843 }
 0x192   : > { %1890 = vst.msk [vmem:[#allocation2 + $0x8] sm:$0xf] %vm1887_vm0, %v1844_v17 }
 0x193   : > { %v1870_v19 = vpop.permute.xlu1 %1869 }
 0x194   : > { %1903 = vst.msk [vmem:[#allocation2 + $0x3c] sm:$0xf] %vm1887_vm0, %v1870_v19 }
 0x195   : > { %v1868_v20 = vpop.permute.xlu0 %1867 }
 0x196   : > { %1902 = vst.msk [vmem:[#allocation2 + $0x38] sm:$0xf] %vm1887_vm0, %v1868_v20 }
 0x197   : > { %v2011_v21 = vpop.permute.xlu1 %2010 }
 0x198   : > { %2058 = vst.msk [vmem:[#allocation2 + $0x4] sm:$0xf] %vm2056_vm1, %v2011_v21 }
 0x199   : > { %v2009_v23 = vpop.permute.xlu0 %2008 }
 0x19a   : > { %2057 = vst.msk [vmem:[#allocation2] sm:$0xf] %vm2056_vm1, %v2009_v23 }
 0x19b   : > { %v2035_v25 = vpop.permute.xlu1 %2034 }
 0x19c   : > { %2070 = vst.msk [vmem:[#allocation2 + $0x34] sm:$0xf] %vm2056_vm1, %v2035_v25 }
 0x19d   : > { %v2033_v16 = vpop.permute.xlu0 %2032 }
 0x19e   : > { %2069 = vst.msk [vmem:[#allocation2 + $0x30] sm:$0xf] %vm2056_vm1, %v2033_v16 }
 0x19f   : > { %v2015_v26 = vpop.permute.xlu1 %2014 }
 0x1a0   : > { %2060 = vst.msk [vmem:[#allocation2 + $0xc] sm:$0xf] %vm2056_vm1, %v2015_v26 }
 0x1a1   : > { %v2013_v18 = vpop.permute.xlu0 %2012  ;;  %v3110_v28 = vld [vmem:[#allocation2] sm:$0xff]  }
 0x1a2   : > { %2059 = vst.msk [vmem:[#allocation2 + $0x8] sm:$0xf] %vm2056_vm1, %v2013_v18  ;;  %2982 = vmatprep.mubr.msk.bf16.mxu0 %vm2348_vm3, %v3110_v28 }
 0x1a3   : > { %v2039_v27 = vpop.permute.xlu1 %2038 }
 0x1a4   : > { %2072 = vst.msk [vmem:[#allocation2 + $0x3c] sm:$0xf] %vm2056_vm1, %v2039_v27 }
 0x1a5   : > { %v2037_v29 = vpop.permute.xlu0 %2036  ;;  %v3111_v6 = vld [vmem:[#allocation2 + $0x30] sm:$0xff]  }
 0x1a6   : > { %2071 = vst.msk [vmem:[#allocation2 + $0x38] sm:$0xf] %vm2056_vm1, %v2037_v29  ;;  %2994 = vmatprep.mubr.msk.bf16.mxu1 %vm2348_vm3, %v3111_v6 }
 0x1a9   : > { %v3112_v30 = vld [vmem:[#allocation2 + $0x8] sm:$0xff]  }
 0x1aa   : > { %2983 = vmatmul.mubr.msk.bf16.vlgmr.msra.gmra.mxu0 %vm2348_vm3, %v3112_v30 }
 0x1ad   : > { %v3113_v31 = vld [vmem:[#allocation2 + $0x38] sm:$0xff]  }
 0x1ae   : > { %2995 = vmatmul.mubr.msk.bf16.gmra.mxu1 %vm2348_vm3, %v3113_v31 }
 0x1b2   : > { %v2988_v32 = vpop.f32.mrf.mxu1 }
 0x1b3   : > { %v2436_v33 = vadd.f32 %v2988_v32, %v4124_v50 }
 0x1b4   : > { %v2427_v35 = vpop.f32.mrf.mxu1 }
 0x1b5   : > { %v2480_v36 = vmax.f32 %v2436_v33, 0.0  ;;  %v2428_v34 = vadd.f32 %v2427_v35, %v4127_v0 }
 0x1b6   : > { %v2989_v38 = vpop.f32.mrf.mxu1 }
 0x1b7   : > { %2518 = vst.msk [vmem:[%s4080_s24 + $0x30] sm:$0xff] %vm2511_vm2, %v2480_v36  ;;  %v2478_v39 = vmax.f32 %v2428_v34, 0.0 }
 0x1b8   : > { %v2430_v40 = vpop.f32.mrf.mxu1 }
 0x1b9   : > { %2516 = vst.msk [vmem:[%s4080_s24 + $0x20] sm:$0xff] %vm2511_vm2, %v2478_v39 }
 0x1d0   : > { %v2970_v42 = vpop.f32.mrf.mxu0 }
 0x1d2   : > { %v2266_v41 = vpop.f32.mrf.mxu0 }
 0x1d4   : > { %v2971_v45 = vpop.f32.mrf.mxu0 }
 0x1d6   : > { %v2269_v46 = vpop.f32.mrf.mxu0 }
 0x1f6   : > { %v2992_v47 = vpop.f32.mrf.mxu1 }
 0x1f7   : > { %v2452_v48 = vadd.f32 %v2992_v47, %v4142_v4 }
 0x1f8   : > { %v2443_v49 = vpop.f32.mrf.mxu1 }
 0x1f9   : > { %v2484_v43 = vmax.f32 %v2452_v48, 0.0  ;;  %v2444_v50 = vadd.f32 %v2443_v49, %v4145_v5 }
 0x1fa   : > { %v2993_v0 = vpop.f32.mrf.mxu1 }
 0x1fb   : > { %2522 = vst.msk [vmem:[%s4080_s24 + $0x50] sm:$0xff] %vm2511_vm2, %v2484_v43  ;;  %v2482_v53 = vmax.f32 %v2444_v50, 0.0 }
 0x1fc   : > { %v2446_v54 = vpop.f32.mrf.mxu1 }
 0x1fd   : > { %2520 = vst.msk [vmem:[%s4080_s24 + $0x40] sm:$0xff] %vm2511_vm2, %v2482_v53 }
 0x26a   : > { %v2984_v22 = vpop.f32.mrf.mxu0 }
 0x26b   : > { %v2420_v55 = vadd.f32 %v2984_v22, %v4116_v24 }
 0x26c   : > { %v2411_v56 = vpop.f32.mrf.mxu0 }
 0x26d   : > { %v2476_v52 = vmax.f32 %v2420_v55, 0.0  ;;  %v2412_v57 = vadd.f32 %v2411_v56, %v4119_v44 }
 0x26e   : > { %v2985_v58 = vpop.f32.mrf.mxu0  ;;  %v2996_v59 = vpop.f32.mrf.mxu1 }
 0x26f   : > { %2514 = vst.msk [vmem:[%s4080_s24 + $0x10] sm:$0xff] %vm2511_vm2, %v2476_v52  ;;  %v2474_v60 = vmax.f32 %v2412_v57, 0.0  ;;  %v2468_v37 = vadd.f32 %v2996_v59, %v2970_v42 }
 0x270   : > { %v2414_v61 = vpop.f32.mrf.mxu0  ;;  %v2459_v62 = vpop.f32.mrf.mxu1 }
 0x271   : > { %2512 = vst.msk [vmem:[%s4080_s24] sm:$0xff] %vm2511_vm2, %v2474_v60  ;;  %v2488_v63 = vmax.f32 %v2468_v37, 0.0  ;;  %v2460_v1 = vadd.f32 %v2459_v62, %v2266_v41 }
 0x272   : > { %v2997_v2 = vpop.f32.mrf.mxu1 }
 0x273   : > { %2526 = vst.msk [vmem:[%s4080_s24 + $0x70] sm:$0xff] %vm2511_vm2, %v2488_v63  ;;  %v2486_v24 = vmax.f32 %v2460_v1, 0.0 }
 0x274   : > { %v2462_v4 = vpop.f32.mrf.mxu1 }
 0x275   : > { %2524 = vst.msk [vmem:[%s4080_s24 + $0x60] sm:$0xff] %vm2511_vm2, %v2486_v24 }
 0x276 PF: > { %s14_s19 = sadd.s32 1, %s3168_s19   ;;  %s4219_s15 = smov %s3156_s16 }
 0x277   : > { %p11_p11 = scmp.ge.s32.totalorder %s14_s19, 4   ;;  %s4220_s16 = smov %s3247_s27 }
 0x278   : > { %s4221_s17 = smov %s3164_s18  ;;  %s4222_s18 = smov %s4224_s20 }
 0x279   :  { %13 = sbr.rel (!%p11_p11) target bundleno = 3 (0x3), region = 175 }

</bundles_post_ra>
